<compile_context>
chip_gen: v7x
topology: tpu7x:2x2x1
jax: 0.10.0
libtpu: 0.0.40
codegen_flags: <defaults>
</compile_context>

<pallas_src>
import jax
import jax.numpy as jnp
from jax.experimental import pallas as pl
from jax.experimental.pallas import tpu as pltpu

BN_EPS = 1e-5           # PyTorch BatchNorm2d default eps
LRELU_SLOPE = 0.1       # nn.LeakyReLU(negative_slope=0.1)
LANE = 128              # channel padding multiple (TPU lane width)
TM_TARGET = 512         # output-row tile (512-1024 sweet spot; fits v7x 64MiB)
TK_MAX = 2304           # max reduction block before splitting the K grid axis
VMEM_LIMIT = 48 * 1024 * 1024   # safe on v7x (64 MiB) and v5e/v6e (128 MiB)


def _round_up(x, m):
    return (x + m - 1) // m * m


# ----------------------------------------------------------------------------
# Pallas kernel: fused (BN affine + LeakyReLU) -> matmul -> (+ residual) epilogue
# ----------------------------------------------------------------------------
def _make_conv_kernel(fuse_act: bool, has_residual: bool, multi_k: bool, mm_dtype):
    def kernel(*refs):
        idx = 0
        p_ref = refs[idx]; idx += 1
        w_ref = refs[idx]; idx += 1
        s_ref = b_ref = r_ref = None
        if fuse_act:
            s_ref, b_ref = refs[idx], refs[idx + 1]
            idx += 2
        if has_residual:
            r_ref = refs[idx]
            idx += 1
        o_ref = refs[idx]; idx += 1
        acc_ref = refs[idx] if multi_k else None

        if fuse_act:
            # training-mode BN folded to per-channel scale/shift + LeakyReLU,
            # computed in f32 on the VPU (hidden under the MXU matmul).
            xf = p_ref[...].astype(jnp.float32) * s_ref[...] + b_ref[...]
            xf = jnp.where(xf >= 0.0, xf, LRELU_SLOPE * xf)
            x = xf.astype(mm_dtype)
        else:
            x = p_ref[...].astype(mm_dtype)

        partial = jnp.dot(x, w_ref[...], preferred_element_type=jnp.float32)

        if not multi_k:
            # Single reduction block: no scratch, direct epilogue store.
            acc = partial
            if has_residual:
                acc = acc + r_ref[...]          # fused residual add (f32)
            o_ref[...] = acc.astype(o_ref.dtype)
        else:
            k = pl.program_id(2)

            @pl.when(k == 0)
            def _init():
                acc_ref[...] = partial          # init with first partial (no zero-fill)

            @pl.when(k != 0)
            def _acc():
                acc_ref[...] += partial

            @pl.when(k == pl.num_programs(2) - 1)
            def _finalize():
                acc = acc_ref[...]
                if has_residual:
                    acc = acc + r_ref[...]      # fused residual add (f32)
                o_ref[...] = acc.astype(o_ref.dtype)

    return kernel


# ----------------------------------------------------------------------------
# Wrapper: 'same'-padded KxK conv (bias=False) with fused input activation /
# fused residual, on channel-padded NHWC tensors.
# ----------------------------------------------------------------------------
def conv2d_fused(x_nhwc, w_oihw, stride, *, scale=None, shift=None,
                 residual=None, mm_dtype=jnp.bfloat16):
    N, H, W, Cp_in = x_nhwc.shape
    Cout, Cin, K, _ = w_oihw.shape
    assert Cp_in % LANE == 0 and Cin <= Cp_in
    Cp_out = _round_up(Cout, LANE)
    pad = (K - 1) // 2
    Ho = (H + 2 * pad - K) // stride + 1
    Wo = (W + 2 * pad - K) // stride + 1
    M = N * Ho * Wo
    KKC = K * K * Cp_in
    fuse_act = scale is not None
    has_residual = residual is not None

    # ---- XLA-side glue: spatial pad + im2col + weight repack ----
    if fuse_act:
        scale = jnp.pad(scale.astype(jnp.float32), (0, Cp_in - scale.shape[0]))
        shift = jnp.pad(shift.astype(jnp.float32), (0, Cp_in - shift.shape[0]))
        # pad value v with lrelu(scale*v + shift) == 0, so the fused activation maps
        # spatial-pad positions to exactly 0 ("pad after activation" semantics).
        # TODO(synk): degenerate only if a real-channel gamma is exactly 0.
        safe = jnp.where(scale != 0.0, scale, 1.0)
        pad_val = jnp.where(scale != 0.0, -shift / safe, 0.0)
    else:
        pad_val = jnp.zeros((Cp_in,), jnp.float32)

    if pad > 0:
        xp = jnp.broadcast_to(pad_val.astype(x_nhwc.dtype),
                              (N, H + 2 * pad, W + 2 * pad, Cp_in))
        xp = xp.at[:, pad:pad + H, pad:pad + W, :].set(x_nhwc)
    else:
        xp = x_nhwc

    taps = []
    for kh in range(K):
        for kw in range(K):
            sl = jax.lax.slice(
                xp, (0, kh, kw, 0),
                (N, kh + stride * (Ho - 1) + 1, kw + stride * (Wo - 1) + 1, Cp_in),
                (1, stride, stride, 1))
            taps.append(sl.reshape(M, Cp_in))
    patches = jnp.concatenate(taps, axis=1).astype(mm_dtype)        # (M, KKC)

    wt = jnp.transpose(w_oihw.astype(jnp.float32), (2, 3, 1, 0))    # (K, K, Cin, Cout)
    wt = jnp.pad(wt, ((0, 0), (0, 0), (0, Cp_in - Cin), (0, Cp_out - Cout)))
    wt = wt.reshape(KKC, Cp_out).astype(mm_dtype)

    # ---- tiling ----
    TM = min(TM_TARGET, _round_up(M, 8))
    Mp = _round_up(M, TM)
    TN = 256 if Cp_out % 256 == 0 else LANE
    TK = KKC if KKC <= TK_MAX else K * Cp_in      # K*Cp_in always divides K*K*Cp_in
    num_k = KKC // TK
    multi_k = num_k > 1

    if Mp != M:
        patches = jnp.pad(patches, ((0, Mp - M), (0, 0)))

    inputs = [patches, wt]
    if multi_k:
        grid = (Mp // TM, Cp_out // TN, num_k)
        in_specs = [pl.BlockSpec((TM, TK), lambda i, j, k: (i, k)),
                    pl.BlockSpec((TK, TN), lambda i, j, k: (k, j))]
        act_spec = pl.BlockSpec((1, TK), lambda i, j, k: (0, k))
        res_spec = pl.BlockSpec((TM, TN), lambda i, j, k: (i, j))
        out_spec = pl.BlockSpec((TM, TN), lambda i, j, k: (i, j))
        scratch = [pltpu.VMEM((TM, TN), jnp.float32)]
        dims = ("parallel", "parallel", "arbitrary")
    else:
        grid = (Mp // TM, Cp_out // TN)
        in_specs = [pl.BlockSpec((TM, TK), lambda i, j: (i, 0)),
                    pl.BlockSpec((TK, TN), lambda i, j: (0, j))]
        act_spec = pl.BlockSpec((1, TK), lambda i, j: (0, 0))
        res_spec = pl.BlockSpec((TM, TN), lambda i, j: (i, j))
        out_spec = pl.BlockSpec((TM, TN), lambda i, j: (i, j))
        scratch = []
        dims = ("parallel", "parallel")

    if fuse_act:
        scale_r = jnp.tile(scale, K * K).reshape(1, KKC)
        shift_r = jnp.tile(shift, K * K).reshape(1, KKC)
        inputs += [scale_r, shift_r]
        in_specs += [act_spec, act_spec]
    if has_residual:
        res = residual.reshape(M, Cp_out).astype(jnp.float32)
        if Mp != M:
            res = jnp.pad(res, ((0, Mp - M), (0, 0)))
        inputs.append(res)
        in_specs.append(res_spec)

    out = pl.pallas_call(
        _make_conv_kernel(fuse_act, has_residual, multi_k, mm_dtype),
        out_shape=jax.ShapeDtypeStruct((Mp, Cp_out), jnp.float32),
        grid_spec=pltpu.PrefetchScalarGridSpec(
            num_scalar_prefetch=0,
            grid=grid,
            in_specs=in_specs,
            out_specs=out_spec,
            scratch_shapes=scratch),
        compiler_params=pltpu.CompilerParams(
            dimension_semantics=dims,
            vmem_limit_bytes=VMEM_LIMIT),
    )(*inputs)

    return out[:M].reshape(N, Ho, Wo, Cp_out)


# ----------------------------------------------------------------------------
# Training-mode BatchNorm folded to per-channel (scale, shift).  Tiny XLA
# reduction; the normalize + LeakyReLU itself runs fused inside the conv kernel.
# ----------------------------------------------------------------------------
def _bn_scale_shift(x_nhwc, gamma, beta, cp):
    g = jnp.pad(gamma.astype(jnp.float32), (0, cp - gamma.shape[0]))
    b = jnp.pad(beta.astype(jnp.float32), (0, cp - beta.shape[0]))
    xf = x_nhwc.astype(jnp.float32)
    mean = jnp.mean(xf, axis=(0, 1, 2))
    var = jnp.mean(jnp.square(xf - mean), axis=(0, 1, 2))   # two-pass, biased
    scale = g * jax.lax.rsqrt(var + BN_EPS)
    shift = b - mean * scale
    return scale, shift


# ----------------------------------------------------------------------------
# BasicBlock + NetworkBlock orchestration (2-3 pallas_calls per block)
# ----------------------------------------------------------------------------
def basic_block_forward(x, p, stride, activate_before_residual, mm_dtype):
    """x: channel-padded NHWC f32.  Returns channel-padded NHWC f32."""
    out_c, in_c = p['conv1_w'].shape[0], p['conv1_w'].shape[1]
    equal_in_out = (in_c == out_c)
    cp_in = x.shape[-1]

    scale1, shift1 = _bn_scale_shift(x, p['bn1_g'], p['bn1_b'], cp_in)

    if equal_in_out:
        act1_scale, act1_shift = scale1, shift1        # conv1(lrelu(bn1(x)))
    elif activate_before_residual:
        act1_scale, act1_shift = scale1, shift1        # x <- lrelu(bn1(x)) feeds conv1 AND shortcut
    else:
        act1_scale, act1_shift = None, None            # conv1/shortcut consume raw x

    out1 = conv2d_fused(x, p['conv1_w'], stride,
                        scale=act1_scale, shift=act1_shift, mm_dtype=mm_dtype)

    cp_out = out1.shape[-1]
    scale2, shift2 = _bn_scale_shift(out1, p['bn2_g'], p['bn2_b'], cp_out)

    # TODO(synk): dropout omitted -- drop_rate defaults to 0.0 in the module.

    if equal_in_out:
        shortcut = x                                   # identity residual (raw x)
    else:
        shortcut = conv2d_fused(x, p['short_w'], stride,
                                scale=act1_scale, shift=act1_shift, mm_dtype=mm_dtype)

    # conv2 with fused BN2+LeakyReLU on its input and the residual add in its epilogue
    return conv2d_fused(out1, p['conv2_w'], 1,
                        scale=scale2, shift=shift2,
                        residual=shortcut, mm_dtype=mm_dtype)


def network_block_forward(x_nchw, params_list, stride, activate_before_residual,
                          mm_dtype=jnp.bfloat16):
    x = jnp.transpose(x_nchw, (0, 2, 3, 1)).astype(jnp.float32)       # NCHW -> NHWC
    cp = _round_up(x.shape[-1], LANE)
    x = jnp.pad(x, ((0, 0), (0, 0), (0, 0), (0, cp - x.shape[-1])))   # lane-dense channels
    for i, p in enumerate(params_list):
        x = basic_block_forward(x, p, stride if i == 0 else 1,
                                activate_before_residual, mm_dtype)
    out_c = params_list[-1]['conv1_w'].shape[0]
    return jnp.transpose(x[..., :out_c], (0, 3, 1, 2))                # NHWC -> NCHW


# ----------------------------------------------------------------------------
# Deterministic parameter initialization (mirrors the module's __init__ shapes)
# ----------------------------------------------------------------------------
def init_basic_block(key, in_c, out_c, k=3):
    ks = jax.random.split(key, 7)
    p = {}
    p['conv1_w'] = jax.random.normal(ks[0], (out_c, in_c, k, k), jnp.float32) \
        * (2.0 / (in_c * k * k)) ** 0.5
    p['conv2_w'] = jax.random.normal(ks[1], (out_c, out_c, k, k), jnp.float32) \
        * (2.0 / (out_c * k * k)) ** 0.5
    p['bn1_g'] = 1.0 + 0.1 * jax.random.normal(ks[2], (in_c,), jnp.float32)
    p['bn1_b'] = 0.1 * jax.random.normal(ks[3], (in_c,), jnp.float32)
    p['bn2_g'] = 1.0 + 0.1 * jax.random.normal(ks[4], (out_c,), jnp.float32)
    p['bn2_b'] = 0.1 * jax.random.normal(ks[5], (out_c,), jnp.float32)
    if in_c != out_c:
        p['short_w'] = jax.random.normal(ks[6], (out_c, in_c, 1, 1), jnp.float32) \
            * (2.0 / in_c) ** 0.5
    return p


def init_network_block(key, num_layers, in_c, out_c, k=3):
    keys = jax.random.split(key, num_layers)
    return [init_basic_block(keys[i], in_c if i == 0 else out_c, out_c, k)
            for i in range(num_layers)]


# ----------------------------------------------------------------------------
# Pure-JAX reference (correctness checking only)
# ----------------------------------------------------------------------------
def _bn_lrelu_ref(x, g, b):
    mean = jnp.mean(x, axis=(0, 1, 2), keepdims=True)
    var = jnp.mean(jnp.square(x - mean), axis=(0, 1, 2), keepdims=True)
    y = (x - mean) * jax.lax.rsqrt(var + BN_EPS) * g + b
    return jnp.where(y >= 0.0, y, LRELU_SLOPE * y)


def _conv_ref(x, w_oihw, stride):
    K = w_oihw.shape[-1]
    pad = (K - 1) // 2
    return jax.lax.conv_general_dilated(
        x, jnp.transpose(w_oihw, (2, 3, 1, 0)),
        window_strides=(stride, stride),
        padding=[(pad, pad), (pad, pad)],
        dimension_numbers=('NHWC', 'HWIO', 'NHWC'),
        precision=jax.lax.Precision.HIGHEST)


def _block_ref(x, p, stride, abr):
    out_c, in_c = p['conv1_w'].shape[0], p['conv1_w'].shape[1]
    equal = (in_c == out_c)
    if (not equal) and abr:
        x = _bn_lrelu_ref(x, p['bn1_g'], p['bn1_b'])
        out = x
    else:
        out = _bn_lrelu_ref(x, p['bn1_g'], p['bn1_b'])
    out = _conv_ref(out if equal else x, p['conv1_w'], stride)
    out = _bn_lrelu_ref(out, p['bn2_g'], p['bn2_b'])
    out = _conv_ref(out, p['conv2_w'], 1)
    shortcut = x if equal else _conv_ref(x, p['short_w'], stride)
    return shortcut + out


def _network_block_ref(x_nchw, params_list, stride, abr):
    x = jnp.transpose(x_nchw, (0, 2, 3, 1))
    for i, p in enumerate(params_list):
        x = _block_ref(x, p, stride if i == 0 else 1, abr)
    return jnp.transpose(x, (0, 3, 1, 2))


# ----------------------------------------------------------------------------
if __name__ == "__main__":
    key = jax.random.PRNGKey(0)
    k_x, k_p, k_x2, k_p2 = jax.random.split(key, 4)

    fwd = jax.jit(network_block_forward, static_argnums=(2, 3, 4))

    # --- Test 1: NetworkBlock(num_layers=2, in=4, out=8, stride=2, abr=True) ---
    num_layers, in_c, out_c, stride, abr = 2, 4, 8, 2, True
    x = jax.random.normal(k_x, (2, in_c, 16, 16), jnp.float32)       # NCHW
    params = init_network_block(k_p, num_layers, in_c, out_c)

    y_ref = jax.block_until_ready(_network_block_ref(x, params, stride, abr))

    # 1a) exactness check: f32 matmul operands, tight tolerance
    y32 = jax.block_until_ready(fwd(x, params, stride, abr, jnp.float32))
    assert y32.shape == (2, out_c, 8, 8), y32.shape
    assert jnp.allclose(y32, y_ref, rtol=1e-3, atol=1e-3), \
        float(jnp.max(jnp.abs(y32 - y_ref)))

    # 1b) fast path: bf16 MXU operands with f32 accumulation (looser tolerance)
    y16 = jax.block_until_ready(fwd(x, params, stride, abr, jnp.bfloat16))
    err = float(jnp.max(jnp.abs(y16 - y_ref)))
    assert err <= 0.05 * float(jnp.max(jnp.abs(y_ref))) + 5e-3, err

    # --- Test 2: wide input channels -> exercises the split-K (3-D grid) path
    #     and the non-fused-activation (raw conv) path (abr=False, in != out). ---
    num_layers2, in_c2, out_c2, stride2, abr2 = 1, 384, 16, 1, False
    x2 = jax.random.normal(k_x2, (1, in_c2, 8, 8), jnp.float32)
    params2 = init_network_block(k_p2, num_layers2, in_c2, out_c2)

    y2_ref = jax.block_until_ready(_network_block_ref(x2, params2, stride2, abr2))
    y2 = jax.block_until_ready(fwd(x2, params2, stride2, abr2, jnp.bfloat16))
    assert y2.shape == (1, out_c2, 8, 8), y2.shape
    err2 = float(jnp.max(jnp.abs(y2 - y2_ref)))
    assert err2 <= 0.05 * float(jnp.max(jnp.abs(y2_ref))) + 5e-3, err2

    print("KERNEL_OK")
</pallas_src>

<mosaic_0001>
module attributes {stable_mosaic.version = 11 : i64} {
  func.func @kernel(%arg0: i32, %arg1: i32, %arg2: memref<128x1152xf32, #tpu.memory_space<vmem>>, %arg3: memref<1152x128xf32, #tpu.memory_space<vmem>>, %arg4: memref<1x1152xf32, #tpu.memory_space<vmem>>, %arg5: memref<1x1152xf32, #tpu.memory_space<vmem>>, %arg6: memref<128x128xf32, #tpu.memory_space<vmem>>) attributes {dimension_semantics = [#tpu.dimension_semantics<parallel>, #tpu.dimension_semantics<parallel>], iteration_bounds = array<i64: 1, 1>, scalar_prefetch = 0 : i64, scratch_operands = 0 : i64, tpu.core_type = #tpu.core_type<tc>, window_params = [{transform_indices = @transform_0, window_bounds = array<i64: 128, 1152>}, {transform_indices = @transform_1, window_bounds = array<i64: 1152, 128>}, {pipeline_mode = #tpu.pipeline_mode<synchronous>, transform_indices = @transform_2, window_bounds = array<i64: 1, 1152>}, {pipeline_mode = #tpu.pipeline_mode<synchronous>, transform_indices = @transform_3, window_bounds = array<i64: 1, 1152>}, {transform_indices = @transform_4, window_bounds = array<i64: 128, 128>}]} {
    %c0 = arith.constant 0 : index
    %c0_0 = arith.constant 0 : index
    %0 = vector.load %arg2[%c0, %c0_0] : memref<128x1152xf32, #tpu.memory_space<vmem>>, vector<128x1152xf32>
    %c0_1 = arith.constant 0 : index
    %c0_2 = arith.constant 0 : index
    %1 = vector.load %arg4[%c0_1, %c0_2] : memref<1x1152xf32, #tpu.memory_space<vmem>>, vector<1x1152xf32>
    %2 = vector.broadcast %1 : vector<1x1152xf32> to vector<128x1152xf32>
    %3 = arith.mulf %0, %2 : vector<128x1152xf32>
    %c0_3 = arith.constant 0 : index
    %c0_4 = arith.constant 0 : index
    %4 = vector.load %arg5[%c0_3, %c0_4] : memref<1x1152xf32, #tpu.memory_space<vmem>>, vector<1x1152xf32>
    %5 = vector.broadcast %4 : vector<1x1152xf32> to vector<128x1152xf32>
    %6 = arith.addf %3, %5 : vector<128x1152xf32>
    %cst = arith.constant 0.000000e+00 : f32
    %7 = vector.broadcast %cst : f32 to vector<128x1152xf32>
    %8 = arith.cmpf oge, %6, %7 : vector<128x1152xf32>
    %cst_5 = arith.constant 1.000000e-01 : f32
    %9 = vector.broadcast %cst_5 : f32 to vector<128x1152xf32>
    %10 = arith.mulf %9, %6 : vector<128x1152xf32>
    %11 = arith.select %8, %6, %10 : vector<128x1152xi1>, vector<128x1152xf32>
    %c0_6 = arith.constant 0 : index
    %c0_7 = arith.constant 0 : index
    %12 = vector.load %arg3[%c0_6, %c0_7] : memref<1152x128xf32, #tpu.memory_space<vmem>>, vector<1152x128xf32>
    %cst_8 = arith.constant dense<0.000000e+00> : vector<128x128xf32>
    %13 = tpu.matmul %11, %12, %cst_8 {dimension_numbers = #tpu.dot_dimension_numbers<[1], [0], [0], [1], [0, 0, 1, 1], [], []>} : vector<128x1152xf32>, vector<1152x128xf32>, vector<128x128xf32> -> vector<128x128xf32>
    %c0_9 = arith.constant 0 : index
    %c0_10 = arith.constant 0 : index
    %14 = vector.load %arg6[%c0_9, %c0_10] : memref<128x128xf32, #tpu.memory_space<vmem>>, vector<128x128xf32>
    tpu.vector_store %arg6[%c0_9, %c0_10], %13 {strides = array<i32>} : memref<128x128xf32, #tpu.memory_space<vmem>>, vector<128x128xf32>,
    return
  }
  func.func @transform_0(%arg0: i32, %arg1: i32) -> (i32, i32) {
    %c0_i32 = arith.constant 0 : i32
    %c0_i32_0 = arith.constant 0 : i32
    return %arg0, %c0_i32 : i32, i32
  }
  func.func @transform_1(%arg0: i32, %arg1: i32) -> (i32, i32) {
    %c0_i32 = arith.constant 0 : i32
    %c0_i32_0 = arith.constant 0 : i32
    return %c0_i32, %arg1 : i32, i32
  }
  func.func @transform_2(%arg0: i32, %arg1: i32) -> (i32, i32) {
    %c0_i32 = arith.constant 0 : i32
    %c0_i32_0 = arith.constant 0 : i32
    %c0_i32_1 = arith.constant 0 : i32
    return %c0_i32, %c0_i32_0 : i32, i32
  }
  func.func @transform_3(%arg0: i32, %arg1: i32) -> (i32, i32) {
    %c0_i32 = arith.constant 0 : i32
    %c0_i32_0 = arith.constant 0 : i32
    %c0_i32_1 = arith.constant 0 : i32
    return %c0_i32, %c0_i32_0 : i32, i32
  }
  func.func @transform_4(%arg0: i32, %arg1: i32) -> (i32, i32) {
    %c0_i32 = arith.constant 0 : i32
    return %arg0, %arg1 : i32, i32
  }
}

module attributes {stable_mosaic.version = 11 : i64} {
  func.func @kernel(%arg0: i32, %arg1: i32, %arg2: memref<128x128xf32, #tpu.memory_space<vmem>>, %arg3: memref<128x128xf32, #tpu.memory_space<vmem>>, %arg4: memref<1x128xf32, #tpu.memory_space<vmem>>, %arg5: memref<1x128xf32, #tpu.memory_space<vmem>>, %arg6: memref<128x128xf32, #tpu.memory_space<vmem>>) attributes {dimension_semantics = [#tpu.dimension_semantics<parallel>, #tpu.dimension_semantics<parallel>], iteration_bounds = array<i64: 1, 1>, scalar_prefetch = 0 : i64, scratch_operands = 0 : i64, tpu.core_type = #tpu.core_type<tc>, window_params = [{transform_indices = @transform_0, window_bounds = array<i64: 128, 128>}, {transform_indices = @transform_1, window_bounds = array<i64: 128, 128>}, {pipeline_mode = #tpu.pipeline_mode<synchronous>, transform_indices = @transform_2, window_bounds = array<i64: 1, 128>}, {pipeline_mode = #tpu.pipeline_mode<synchronous>, transform_indices = @transform_3, window_bounds = array<i64: 1, 128>}, {transform_indices = @transform_4, window_bounds = array<i64: 128, 128>}]} {
    %c0 = arith.constant 0 : index
    %c0_0 = arith.constant 0 : index
    %0 = vector.load %arg2[%c0, %c0_0] : memref<128x128xf32, #tpu.memory_space<vmem>>, vector<128x128xf32>
    %c0_1 = arith.constant 0 : index
    %c0_2 = arith.constant 0 : index
    %1 = vector.load %arg4[%c0_1, %c0_2] : memref<1x128xf32, #tpu.memory_space<vmem>>, vector<1x128xf32>
    %2 = vector.broadcast %1 : vector<1x128xf32> to vector<128x128xf32>
    %3 = arith.mulf %0, %2 : vector<128x128xf32>
    %c0_3 = arith.constant 0 : index
    %c0_4 = arith.constant 0 : index
    %4 = vector.load %arg5[%c0_3, %c0_4] : memref<1x128xf32, #tpu.memory_space<vmem>>, vector<1x128xf32>
    %5 = vector.broadcast %4 : vector<1x128xf32> to vector<128x128xf32>
    %6 = arith.addf %3, %5 : vector<128x128xf32>
    %cst = arith.constant 0.000000e+00 : f32
    %7 = vector.broadcast %cst : f32 to vector<128x128xf32>
    %8 = arith.cmpf oge, %6, %7 : vector<128x128xf32>
    %cst_5 = arith.constant 1.000000e-01 : f32
    %9 = vector.broadcast %cst_5 : f32 to vector<128x128xf32>
    %10 = arith.mulf %9, %6 : vector<128x128xf32>
    %11 = arith.select %8, %6, %10 : vector<128x128xi1>, vector<128x128xf32>
    %c0_6 = arith.constant 0 : index
    %c0_7 = arith.constant 0 : index
    %12 = vector.load %arg3[%c0_6, %c0_7] : memref<128x128xf32, #tpu.memory_space<vmem>>, vector<128x128xf32>
    %cst_8 = arith.constant dense<0.000000e+00> : vector<128x128xf32>
    %13 = tpu.matmul %11, %12, %cst_8 {dimension_numbers = #tpu.dot_dimension_numbers<[1], [0], [0], [1], [0, 0, 1, 1], [], []>} : vector<128x128xf32>, vector<128x128xf32>, vector<128x128xf32> -> vector<128x128xf32>
    %c0_9 = arith.constant 0 : index
    %c0_10 = arith.constant 0 : index
    %14 = vector.load %arg6[%c0_9, %c0_10] : memref<128x128xf32, #tpu.memory_space<vmem>>, vector<128x128xf32>
    tpu.vector_store %arg6[%c0_9, %c0_10], %13 {strides = array<i32>} : memref<128x128xf32, #tpu.memory_space<vmem>>, vector<128x128xf32>,
    return
  }
  func.func @transform_0(%arg0: i32, %arg1: i32) -> (i32, i32) {
    %c0_i32 = arith.constant 0 : i32
    %c0_i32_0 = arith.constant 0 : i32
    return %arg0, %c0_i32 : i32, i32
  }
  func.func @transform_1(%arg0: i32, %arg1: i32) -> (i32, i32) {
    %c0_i32 = arith.constant 0 : i32
    %c0_i32_0 = arith.constant 0 : i32
    return %c0_i32, %arg1 : i32, i32
  }
  func.func @transform_2(%arg0: i32, %arg1: i32) -> (i32, i32) {
    %c0_i32 = arith.constant 0 : i32
    %c0_i32_0 = arith.constant 0 : i32
    %c0_i32_1 = arith.constant 0 : i32
    return %c0_i32, %c0_i32_0 : i32, i32
  }
  func.func @transform_3(%arg0: i32, %arg1: i32) -> (i32, i32) {
    %c0_i32 = arith.constant 0 : i32
    %c0_i32_0 = arith.constant 0 : i32
    %c0_i32_1 = arith.constant 0 : i32
    return %c0_i32, %c0_i32_0 : i32, i32
  }
  func.func @transform_4(%arg0: i32, %arg1: i32) -> (i32, i32) {
    %c0_i32 = arith.constant 0 : i32
    return %arg0, %arg1 : i32, i32
  }
}

module attributes {stable_mosaic.version = 11 : i64} {
  func.func @kernel(%arg0: i32, %arg1: i32, %arg2: memref<128x1152xf32, #tpu.memory_space<vmem>>, %arg3: memref<1152x128xf32, #tpu.memory_space<vmem>>, %arg4: memref<1x1152xf32, #tpu.memory_space<vmem>>, %arg5: memref<1x1152xf32, #tpu.memory_space<vmem>>, %arg6: memref<128x128xf32, #tpu.memory_space<vmem>>, %arg7: memref<128x128xf32, #tpu.memory_space<vmem>>) attributes {dimension_semantics = [#tpu.dimension_semantics<parallel>, #tpu.dimension_semantics<parallel>], iteration_bounds = array<i64: 1, 1>, scalar_prefetch = 0 : i64, scratch_operands = 0 : i64, tpu.core_type = #tpu.core_type<tc>, window_params = [{transform_indices = @transform_0, window_bounds = array<i64: 128, 1152>}, {transform_indices = @transform_1, window_bounds = array<i64: 1152, 128>}, {pipeline_mode = #tpu.pipeline_mode<synchronous>, transform_indices = @transform_2, window_bounds = array<i64: 1, 1152>}, {pipeline_mode = #tpu.pipeline_mode<synchronous>, transform_indices = @transform_3, window_bounds = array<i64: 1, 1152>}, {transform_indices = @transform_4, window_bounds = array<i64: 128, 128>}, {transform_indices = @transform_5, window_bounds = array<i64: 128, 128>}]} {
    %c0 = arith.constant 0 : index
    %c0_0 = arith.constant 0 : index
    %0 = vector.load %arg2[%c0, %c0_0] : memref<128x1152xf32, #tpu.memory_space<vmem>>, vector<128x1152xf32>
    %c0_1 = arith.constant 0 : index
    %c0_2 = arith.constant 0 : index
    %1 = vector.load %arg4[%c0_1, %c0_2] : memref<1x1152xf32, #tpu.memory_space<vmem>>, vector<1x1152xf32>
    %2 = vector.broadcast %1 : vector<1x1152xf32> to vector<128x1152xf32>
    %3 = arith.mulf %0, %2 : vector<128x1152xf32>
    %c0_3 = arith.constant 0 : index
    %c0_4 = arith.constant 0 : index
    %4 = vector.load %arg5[%c0_3, %c0_4] : memref<1x1152xf32, #tpu.memory_space<vmem>>, vector<1x1152xf32>
    %5 = vector.broadcast %4 : vector<1x1152xf32> to vector<128x1152xf32>
    %6 = arith.addf %3, %5 : vector<128x1152xf32>
    %cst = arith.constant 0.000000e+00 : f32
    %7 = vector.broadcast %cst : f32 to vector<128x1152xf32>
    %8 = arith.cmpf oge, %6, %7 : vector<128x1152xf32>
    %cst_5 = arith.constant 1.000000e-01 : f32
    %9 = vector.broadcast %cst_5 : f32 to vector<128x1152xf32>
    %10 = arith.mulf %9, %6 : vector<128x1152xf32>
    %11 = arith.select %8, %6, %10 : vector<128x1152xi1>, vector<128x1152xf32>
    %c0_6 = arith.constant 0 : index
    %c0_7 = arith.constant 0 : index
    %12 = vector.load %arg3[%c0_6, %c0_7] : memref<1152x128xf32, #tpu.memory_space<vmem>>, vector<1152x128xf32>
    %cst_8 = arith.constant dense<0.000000e+00> : vector<128x128xf32>
    %13 = tpu.matmul %11, %12, %cst_8 {dimension_numbers = #tpu.dot_dimension_numbers<[1], [0], [0], [1], [0, 0, 1, 1], [], []>} : vector<128x1152xf32>, vector<1152x128xf32>, vector<128x128xf32> -> vector<128x128xf32>
    %c0_9 = arith.constant 0 : index
    %c0_10 = arith.constant 0 : index
    %14 = vector.load %arg6[%c0_9, %c0_10] : memref<128x128xf32, #tpu.memory_space<vmem>>, vector<128x128xf32>
    %15 = arith.addf %13, %14 : vector<128x128xf32>
    %c0_11 = arith.constant 0 : index
    %c0_12 = arith.constant 0 : index
    %16 = vector.load %arg7[%c0_11, %c0_12] : memref<128x128xf32, #tpu.memory_space<vmem>>, vector<128x128xf32>
    tpu.vector_store %arg7[%c0_11, %c0_12], %15 {strides = array<i32>} : memref<128x128xf32, #tpu.memory_space<vmem>>, vector<128x128xf32>,
    return
  }
  func.func @transform_0(%arg0: i32, %arg1: i32) -> (i32, i32) {
    %c0_i32 = arith.constant 0 : i32
    %c0_i32_0 = arith.constant 0 : i32
    return %arg0, %c0_i32 : i32, i32
  }
  func.func @transform_1(%arg0: i32, %arg1: i32) -> (i32, i32) {
    %c0_i32 = arith.constant 0 : i32
    %c0_i32_0 = arith.constant 0 : i32
    return %c0_i32, %arg1 : i32, i32
  }
  func.func @transform_2(%arg0: i32, %arg1: i32) -> (i32, i32) {
    %c0_i32 = arith.constant 0 : i32
    %c0_i32_0 = arith.constant 0 : i32
    %c0_i32_1 = arith.constant 0 : i32
    return %c0_i32, %c0_i32_0 : i32, i32
  }
  func.func @transform_3(%arg0: i32, %arg1: i32) -> (i32, i32) {
    %c0_i32 = arith.constant 0 : i32
    %c0_i32_0 = arith.constant 0 : i32
    %c0_i32_1 = arith.constant 0 : i32
    return %c0_i32, %c0_i32_0 : i32, i32
  }
  func.func @transform_4(%arg0: i32, %arg1: i32) -> (i32, i32) {
    %c0_i32 = arith.constant 0 : i32
    return %arg0, %arg1 : i32, i32
  }
  func.func @transform_5(%arg0: i32, %arg1: i32) -> (i32, i32) {
    %c0_i32 = arith.constant 0 : i32
    return %arg0, %arg1 : i32, i32
  }
}

</mosaic_0001>

<bundles_post_ra>
// kernel: network_block_forward.5
= control target key start
LH: loop header
LB: loop body
LE: loop exit
PB: predicated region body
PF: predicated region fallthrough
CT: control target
= control target key end

     0   :  { %v165_v47 = vlaneseq  ;;  %s3919_s1 = inlined_call_operand.vmem [shape: f32[1152,128], index: 1, kind: input, shape index: {}]   ;;  %s3920_s0 = inlined_call_operand.vmem [shape: f32[128,1152], index: 0, kind: input, shape index: {}]   ;;  %s3921_s2 = inlined_call_operand.vmem [shape: f32[1,1152], index: 2, kind: input, shape index: {}]   ;;  %s3922_s3 = inlined_call_operand.vmem [shape: f32[1,1152], index: 3, kind: input, shape index: {}]   ;;  %s3923_s4 = inlined_call_operand.vmem [shape: f32[128,128], index: 4, kind: output, shape index: {}]  }
   0x1   :  { %v995_v0 = vld [vmem:[%s3919_s1 + $0x80] sm:$0xff]  ;;  %v996_v1 = vld [vmem:[%s3919_s1 + $0x88] sm:$0xff]  ;;  %v997_v11 = vld [vmem:[%s3919_s1 + $0x90] sm:$0xff] }
   0x2   :  { %v1027_v2 = vld [vmem:[%s3919_s1 + $0x180] sm:$0xff]  ;;  %v2278_v3 = vpack.c.bf16 %v996_v1, %v995_v0  ;;  %v1028_v4 = vld [vmem:[%s3919_s1 + $0x188] sm:$0xff]  ;;  %v998_v13 = vld [vmem:[%s3919_s1 + $0x98] sm:$0xff]  ;;  %v2618_v0 = vshrl.u32 %v165_v47, 7 }
   0x3   :  { %v979_v5 = vld [vmem:[%s3919_s1] sm:$0xff]  ;;  %v980_v6 = vld [vmem:[%s3919_s1 + $0x8] sm:$0xff]  ;;  %v2310_v7 = vpack.c.bf16 %v1028_v4, %v1027_v2  ;;  %v1029_v14 = vld [vmem:[%s3919_s1 + $0x190] sm:$0xff]  ;;  %v2282_v16 = vpack.c.bf16 %v998_v13, %v997_v11 }
   0x4   :  { %v2280_v8 = vpack.c.bf16 %v980_v6, %v979_v5  ;;  %v1011_v9 = vld [vmem:[%s3919_s1 + $0x100] sm:$0xff]  ;;  %v1012_v10 = vld [vmem:[%s3919_s1 + $0x108] sm:$0xff]  ;;  %2279 = vmatprep.subr.bf16.mxu0 %v2278_v3  ;;  %v1030_v15 = vld [vmem:[%s3919_s1 + $0x198] sm:$0xff] }
   0x5   :  { %v2312_v12 = vpack.c.bf16 %v1012_v10, %v1011_v9  ;;  %2311 = vmatprep.subr.bf16.mxu1 %v2310_v7  ;;  %v2314_v17 = vpack.c.bf16 %v1030_v15, %v1029_v14  ;;  %v981_v18 = vld [vmem:[%s3919_s1 + $0x10] sm:$0xff]  ;;  %v982_v19 = vld [vmem:[%s3919_s1 + $0x18] sm:$0xff]  ;;  %v999_v23 = vld [vmem:[%s3919_s1 + $0xa0] sm:$0xff] }
   0x6   :  { %2281 = vmatpush3.bf16.msra.mxu0 %v2280_v8  ;;  %v1013_v20 = vld [vmem:[%s3919_s1 + $0x110] sm:$0xff]  ;;  %v2284_v21 = vpack.c.bf16 %v982_v19, %v981_v18  ;;  %v1014_v22 = vld [vmem:[%s3919_s1 + $0x118] sm:$0xff]  ;;  %v1000_v24 = vld [vmem:[%s3919_s1 + $0xa8] sm:$0xff]  ;;  %v179_v18 = vsub.s32 3, %v2618_v0  ;;  %v167_v19 = vsub.s32 0, %v2618_v0 }
   0x7   :  { %2313 = vmatpush3.bf16.msra.mxu1 %v2312_v12  ;;  %2283 = vmatprep.subr.bf16.mxu0 %v2282_v16  ;;  %v2316_v25 = vpack.c.bf16 %v1014_v22, %v1013_v20  ;;  %v2286_v26 = vpack.c.bf16 %v1000_v24, %v999_v23  ;;  %v1031_v27 = vld [vmem:[%s3919_s1 + $0x1a0] sm:$0xff]  ;;  %v1032_v28 = vld [vmem:[%s3919_s1 + $0x1a8] sm:$0xff]  ;;  %v1001_v35 = vld [vmem:[%s3919_s1 + $0xb0] sm:$0xff] }
   0x8   :  { %2315 = vmatprep.subr.bf16.mxu1 %v2314_v17  ;;  %v983_v29 = vld [vmem:[%s3919_s1 + $0x20] sm:$0xff]  ;;  %v2318_v30 = vpack.c.bf16 %v1032_v28, %v1031_v27  ;;  %v984_v31 = vld [vmem:[%s3919_s1 + $0x28] sm:$0xff]  ;;  %v1002_v36 = vld [vmem:[%s3919_s1 + $0xb8] sm:$0xff]  ;;  %v171_v17 = vsub.s32 1, %v2618_v0 }
   0x9   :  { %v1015_v32 = vld [vmem:[%s3919_s1 + $0x120] sm:$0xff]  ;;  %v1016_v33 = vld [vmem:[%s3919_s1 + $0x128] sm:$0xff]  ;;  %v2288_v34 = vpack.c.bf16 %v984_v31, %v983_v29  ;;  %v1033_v37 = vld [vmem:[%s3919_s1 + $0x1b0] sm:$0xff]  ;;  %v2290_v39 = vpack.c.bf16 %v1002_v36, %v1001_v35 }
   0xa   :  { %2285 = vmatpush3.bf16.msra.mxu0 %v2284_v21  ;;  %v2320_v38 = vpack.c.bf16 %v1016_v33, %v1015_v32  ;;  %v1034_v40 = vld [vmem:[%s3919_s1 + $0x1b8] sm:$0xff]  ;;  %v985_v41 = vld [vmem:[%s3919_s1 + $0x30] sm:$0xff]  ;;  %v1003_v46 = vld [vmem:[%s3919_s1 + $0xc0] sm:$0xff] }
   0xb   :  { %2317 = vmatpush3.bf16.msra.mxu1 %v2316_v25  ;;  %2287 = vmatprep.subr.bf16.mxu0 %v2286_v26  ;;  %v986_v42 = vld [vmem:[%s3919_s1 + $0x38] sm:$0xff]  ;;  %v2322_v43 = vpack.c.bf16 %v1034_v40, %v1033_v37  ;;  %v1017_v44 = vld [vmem:[%s3919_s1 + $0x130] sm:$0xff]  ;;  %v1004_v48 = vld [vmem:[%s3919_s1 + $0xc8] sm:$0xff]  ;;  %v175_v25 = vsub.s32 2, %v2618_v0 }
   0xc   :  { %2319 = vmatprep.subr.bf16.mxu1 %v2318_v30  ;;  %v1018_v45 = vld [vmem:[%s3919_s1 + $0x138] sm:$0xff]  ;;  %v1035_v49 = vld [vmem:[%s3919_s1 + $0x1c0] sm:$0xff]  ;;  %v1036_v50 = vld [vmem:[%s3919_s1 + $0x1c8] sm:$0xff]  ;;  %v2292_v51 = vpack.c.bf16 %v986_v42, %v985_v41  ;;  %v2294_v56 = vpack.c.bf16 %v1004_v48, %v1003_v46 }
   0xd   :  { %v987_v52 = vld [vmem:[%s3919_s1 + $0x40] sm:$0xff]  ;;  %v988_v53 = vld [vmem:[%s3919_s1 + $0x48] sm:$0xff]  ;;  %v2324_v55 = vpack.c.bf16 %v1018_v45, %v1017_v44  ;;  %v1005_v58 = vld [vmem:[%s3919_s1 + $0xd0] sm:$0xff]  ;;  %v2326_v60 = vpack.c.bf16 %v1036_v50, %v1035_v49 }
   0xe   :  { %2289 = vmatpush3.bf16.msra.mxu0 %v2288_v34  ;;  %v1019_v54 = vld [vmem:[%s3919_s1 + $0x140] sm:$0xff]  ;;  %v1020_v57 = vld [vmem:[%s3919_s1 + $0x148] sm:$0xff]  ;;  %v1006_v59 = vld [vmem:[%s3919_s1 + $0xd8] sm:$0xff]  ;;  %v2296_v4 = vpack.c.bf16 %v988_v53, %v987_v52 }
   0xf   :  { %2321 = vmatpush3.bf16.msra.mxu1 %v2320_v38  ;;  %2291 = vmatprep.subr.bf16.mxu0 %v2290_v39  ;;  %v1037_v61 = vld [vmem:[%s3919_s1 + $0x1d0] sm:$0xff]  ;;  %v1038_v62 = vld [vmem:[%s3919_s1 + $0x1d8] sm:$0xff]  ;;  %v2638_v5 = vld [vmem:[%s3919_s1 + $0xe0] sm:$0xff]  ;;  %v2328_v8 = vpack.c.bf16 %v1020_v57, %v1019_v54  ;;  %v2298_v9 = vpack.c.bf16 %v1006_v59, %v1005_v58 }
  0x10   :  { %2323 = vmatprep.subr.bf16.mxu1 %v2322_v43  ;;  %v2616_v63 = vld [vmem:[%s3919_s1 + $0x50] sm:$0xff]  ;;  %v2623_v1 = vld [vmem:[%s3919_s1 + $0x58] sm:$0xff]  ;;  %v2643_v6 = vld [vmem:[%s3919_s1 + $0xe8] sm:$0xff]  ;;  %v2330_v13 = vpack.c.bf16 %v1038_v62, %v1037_v61 }
  0x11   :  { %v2628_v2 = vld [vmem:[%s3919_s1 + $0x150] sm:$0xff]  ;;  %v2633_v3 = vld [vmem:[%s3919_s1 + $0x158] sm:$0xff]  ;;  %v2648_v7 = vld [vmem:[%s3919_s1 + $0x1e0] sm:$0xff]  ;;  %v2300_v20 = vpack.c.bf16 %v2623_v1, %v2616_v63  ;;  %v2302_v26 = vpack.c.bf16 %v2643_v6, %v2638_v5 }
  0x12   :  { %2293 = vmatpush3.bf16.msra.mxu0 %v2292_v51  ;;  %v2653_v10 = vld [vmem:[%s3919_s1 + $0x1e8] sm:$0xff]  ;;  %v2658_v11 = vld [vmem:[%s3919_s1 + $0x60] sm:$0xff]  ;;  %v2678_v16 = vld [vmem:[%s3919_s1 + $0xf0] sm:$0xff]  ;;  %v2332_v21 = vpack.c.bf16 %v2633_v3, %v2628_v2 }
  0x13   :  { %2325 = vmatpush3.bf16.msra.mxu1 %v2324_v55  ;;  %2295 = vmatprep.subr.bf16.mxu0 %v2294_v56  ;;  %v2663_v12 = vld [vmem:[%s3919_s1 + $0x68] sm:$0xff]  ;;  %v2668_v14 = vld [vmem:[%s3919_s1 + $0x160] sm:$0xff]  ;;  %v2690_v22 = vld [vmem:[%s3919_s1 + $0xf8] sm:$0xff]  ;;  %v2334_v27 = vpack.c.bf16 %v2653_v10, %v2648_v7 }
  0x14   :  { %2327 = vmatprep.subr.bf16.mxu1 %v2326_v60  ;;  %v2673_v15 = vld [vmem:[%s3919_s1 + $0x168] sm:$0xff]  ;;  %v2695_v23 = vld [vmem:[%s3919_s1 + $0x1f0] sm:$0xff]  ;;  %v2700_v24 = vld [vmem:[%s3919_s1 + $0x1f8] sm:$0xff]  ;;  %v2304_v28 = vpack.c.bf16 %v2663_v12, %v2658_v11  ;;  %v2306_v33 = vpack.c.bf16 %v2690_v22, %v2678_v16 }
  0x15   :  { %v2336_v29 = vpack.c.bf16 %v2673_v15, %v2668_v14  ;;  %v2714_v30 = vld [vmem:[%s3919_s1 + $0x70] sm:$0xff]  ;;  %v2719_v31 = vld [vmem:[%s3919_s1 + $0x78] sm:$0xff]  ;;  %v2338_v34 = vpack.c.bf16 %v2700_v24, %v2695_v23  ;;  %v18_v37 = vld [vmem:[%s3920_s0 + $0x8] sm:$0xff] }
  0x16   :  { %2297 = vmatpush3.bf16.msra.mxu0 %v2296_v4  ;;  %v2724_v32 = vld [vmem:[%s3919_s1 + $0x170] sm:$0xff]  ;;  %v2308_v35 = vpack.c.bf16 %v2719_v31, %v2714_v30  ;;  %v2735_v36 = vld [vmem:[%s3919_s1 + $0x178] sm:$0xff]  ;;  %v161_v38 = vld [vmem:[%s3921_s2] sm:$0xff] }
  0x17   :  { %2329 = vmatpush3.bf16.msra.mxu1 %v2328_v8  ;;  %2299 = vmatprep.subr.bf16.mxu0 %v2298_v9  ;;  %v2340_v39 = vpack.c.bf16 %v2735_v36, %v2724_v32  ;;  %v2745_v40 = vrot.slane %v161_v38, %v171_v17  ;;  %v354_v41 = vld [vmem:[%s3922_s3] sm:$0xff]  ;;  %v20_v42 = vld [vmem:[%s3920_s0 + $0x18] sm:$0xff]  ;;  %v2753_v43 = vrot.slane %v161_v38, %v179_v18  ;;  %v19_v49 = vld [vmem:[%s3920_s0 + $0x10] sm:$0xff] }
  0x18   :  { %2331 = vmatprep.subr.bf16.mxu1 %v2330_v13  ;;  %v17_v44 = vld [vmem:[%s3920_s0] sm:$0xff]  ;;  %v2758_v45 = vrot.slane %v161_v38, %v167_v19  ;;  %v2760_v46 = vrot.slane %v354_v41, %v171_v17  ;;  %v2762_v47 = vrot.slane %v354_v41, %v179_v18  ;;  %v2764_v48 = vrot.slane %v354_v41, %v167_v19  ;;  %v1060_v52 = vld [vmem:[%s3919_s1 + $0x288] sm:$0xff]  ;;  %v27_v7 = vld [vmem:[%s3920_s0 + $0x50] sm:$0xff] }
  0x19   :  { %v2769_v50 = vrot.slane %v161_v38, %v175_v25  ;;  %v1059_v51 = vld [vmem:[%s3919_s1 + $0x280] sm:$0xff]  ;;  %v211_v53 = vmul.f32 %v2745_v40, %v18_v37  ;;  %v213_v54 = vmul.f32 %v2753_v43, %v20_v42  ;;  %v2780_v56 = vrot.slane %v354_v41, %v175_v25  ;;  %v1092_v58 = vld [vmem:[%s3919_s1 + $0x388] sm:$0xff]  ;;  %v28_v22 = vld [vmem:[%s3920_s0 + $0x58] sm:$0xff] }
  0x1a   :  { %2301 = vmatpush3.bf16.msra.mxu0 %v2300_v20  ;;  %v210_v55 = vmul.f32 %v2758_v45, %v17_v44  ;;  %v1091_v57 = vld [vmem:[%s3919_s1 + $0x380] sm:$0xff]  ;;  %v2342_v61 = vpack.c.bf16 %v1060_v52, %v1059_v51  ;;  %v2797_v63 = vld [vmem:[%s3919_s1 + $0x208] sm:$0xff]  ;;  %v220_v11 = vmul.f32 %v2745_v40, %v27_v7  ;;  %v36_v23 = vld [vmem:[%s3920_s0 + $0x98] sm:$0xff] }
  0x1b   :  { %v2791_v59 = vld [vmem:[%s3919_s1 + $0x200] sm:$0xff]  ;;  %2333 = vmatpush3.bf16.msra.mxu1 %v2332_v21  ;;  %2303 = vmatprep.subr.bf16.mxu0 %v2302_v26  ;;  %v212_v60 = vmul.f32 %v2769_v50, %v19_v49  ;;  %v2374_v62 = vpack.c.bf16 %v1092_v58, %v1091_v57  ;;  %v2807_v2 = vld [vmem:[%s3919_s1 + $0x308] sm:$0xff]  ;;  %v404_v3 = vadd.f32 %v2760_v46, %v211_v53  ;;  %v1061_v44 = vld [vmem:[%s3919_s1 + $0x290] sm:$0xff] }
  0x1c   :  { %v2802_v1 = vld [vmem:[%s3919_s1 + $0x300] sm:$0xff]  ;;  %2335 = vmatprep.subr.bf16.mxu1 %v2334_v27  ;;  %v406_v4 = vadd.f32 %v2762_v47, %v213_v54  ;;  %v403_v5 = vadd.f32 %v2764_v48, %v210_v55  ;;  %v2344_v6 = vpack.c.bf16 %v2797_v63, %v2791_v59  ;;  %v26_v13 = vld [vmem:[%s3920_s0 + $0x48] sm:$0xff]  ;;  %v413_v20 = vadd.f32 %v2760_v46, %v220_v11  ;;  %v1062_v49 = vld [vmem:[%s3919_s1 + $0x298] sm:$0xff] }
  0x1d   :  { %v29_v8 = vld [vmem:[%s3920_s0 + $0x60] sm:$0xff]  ;;  %v405_v9 = vadd.f32 %v2780_v56, %v212_v60  ;;  %v2376_v10 = vpack.c.bf16 %v2807_v2, %v2802_v1  ;;  %vm548_vm0 = vcmp.ge.f32.partialorder %v404_v3, 0.0  ;;  %v692_v14 = vmul.f32 0.1, %v404_v3  ;;  %v38_v27 = vld [vmem:[%s3920_s0 + $0xa8] sm:$0xff]  ;;  %v1093_v51 = vld [vmem:[%s3919_s1 + $0x390] sm:$0xff] }
  0x1e   :  { %v222_v12 = vmul.f32 %v2753_v43, %v29_v8  ;;  %2305 = vmatpush3.bf16.msra.mxu0 %v2304_v28  ;;  %vm550_vm1 = vcmp.ge.f32.partialorder %v406_v4, 0.0  ;;  %v694_v15 = vmul.f32 0.1, %v406_v4  ;;  %vm547_vm2 = vcmp.ge.f32.partialorder %v403_v5, 0.0  ;;  %v35_v28 = vld [vmem:[%s3920_s0 + $0x90] sm:$0xff]  ;;  %v37_v30 = vld [vmem:[%s3920_s0 + $0xa0] sm:$0xff] }
  0x1f   :  { %2337 = vmatpush3.bf16.msra.mxu1 %v2336_v29  ;;  %2307 = vmatprep.subr.bf16.mxu0 %v2306_v33  ;;  %v691_v16 = vmul.f32 0.1, %v403_v5  ;;  %vm549_vm3 = vcmp.ge.f32.partialorder %v405_v9, 0.0  ;;  %v693_v17 = vmul.f32 0.1, %v405_v9  ;;  %v836_v18 = vsel %vm548_vm0, %v404_v3, %v692_v14  ;;  %v1094_v55 = vld [vmem:[%s3919_s1 + $0x398] sm:$0xff] }
  0x20   :  { %2339 = vmatprep.subr.bf16.mxu1 %v2338_v34  ;;  %v838_v19 = vsel %vm550_vm1, %v406_v4, %v694_v15  ;;  %v415_v21 = vadd.f32 %v2762_v47, %v222_v12  ;;  %1187 = vmatprep.mubr.f32.mxu0 %v836_v18  ;;  %v219_v26 = vmul.f32 %v2758_v45, %v26_v13  ;;  %vm557_vm4 = vcmp.ge.f32.partialorder %v413_v20, 0.0  ;;  %v1045_v57 = vld [vmem:[%s3919_s1 + $0x210] sm:$0xff]  ;;  %v1046_v58 = vld [vmem:[%s3919_s1 + $0x218] sm:$0xff]  ;;  %v46_v13 = vld [vmem:[%s3920_s0 + $0xe8] sm:$0xff] }
  0x21   :  { %1332 = vmatprep.mubr.f32.mxu1 %v838_v19  ;;  %v835_v24 = vsel %vm547_vm2, %v403_v5, %v691_v16  ;;  %v837_v25 = vsel %vm549_vm3, %v405_v9, %v693_v17  ;;  %v701_v29 = vmul.f32 0.1, %v413_v20  ;;  %v221_v37 = vmul.f32 %v2769_v50, %v28_v22  ;;  %v47_v7 = vld [vmem:[%s3920_s0 + $0xf0] sm:$0xff]  ;;  %v44_v8 = vld [vmem:[%s3920_s0 + $0xd8] sm:$0xff]  ;;  %v54_v14 = vld [vmem:[%s3920_s0 + $0x128] sm:$0xff] }
  0x22   :  { %2309 = vmatpush3.bf16.msra.mxu0 %v2308_v35  ;;  %vm559_vm5 = vcmp.ge.f32.partialorder %v415_v21, 0.0  ;;  %v703_v33 = vmul.f32 0.1, %v415_v21  ;;  %v412_v34 = vadd.f32 %v2764_v48, %v219_v26  ;;  %v229_v38 = vmul.f32 %v2745_v40, %v36_v23  ;;  %v53_v22 = vld [vmem:[%s3920_s0 + $0x120] sm:$0xff] }
  0x23   :  { %2341 = vmatpush3.bf16.msra.mxu1 %v2340_v39  ;;  %2343 = vmatprep.subr.bf16.mxu0 %v2342_v61  ;;  %v845_v31 = vsel %vm557_vm4, %v413_v20, %v701_v29  ;;  %v231_v41 = vmul.f32 %v2753_v43, %v38_v27  ;;  %v228_v42 = vmul.f32 %v2758_v45, %v35_v28  ;;  %v1077_v61 = vld [vmem:[%s3919_s1 + $0x310] sm:$0xff] }
  0x24   :  { %2375 = vmatprep.subr.bf16.mxu1 %v2374_v62  ;;  %v847_v35 = vsel %vm559_vm5, %v415_v21, %v703_v33  ;;  %vm556_vm6 = vcmp.ge.f32.partialorder %v412_v34, 0.0  ;;  %v700_v32 = vmul.f32 0.1, %v412_v34  ;;  %v414_v36 = vadd.f32 %v2780_v56, %v221_v37  ;;  %v1078_v62 = vld [vmem:[%s3919_s1 + $0x318] sm:$0xff] }
  0x25   :  { %1188 = vmatmul.mubr.f32.vlgmr.msra.gmra.mrb[0].mxu0 %v835_v24  ;;  %v422_v39 = vadd.f32 %v2760_v46, %v229_v38  ;;  %v424_v52 = vadd.f32 %v2762_v47, %v231_v41  ;;  %v421_v53 = vadd.f32 %v2764_v48, %v228_v42  ;;  %v230_v54 = vmul.f32 %v2769_v50, %v37_v30  ;;  %v56_v21 = vld [vmem:[%s3920_s0 + $0x138] sm:$0xff]  ;;  %v55_v38 = vld [vmem:[%s3920_s0 + $0x130] sm:$0xff] }
  0x26   :  { %1333 = vmatmul.mubr.f32.vlgmr.msra.gmra.mrb[0].mxu1 %v837_v25  ;;  %2345 = vmatpush3.bf16.msra.mxu0 %v2344_v6  ;;  %v844_v59 = vsel %vm556_vm6, %v412_v34, %v700_v32  ;;  %vm558_vm7 = vcmp.ge.f32.partialorder %v414_v36, 0.0  ;;  %v702_v60 = vmul.f32 0.1, %v414_v36  ;;  %v2346_v5 = vpack.c.bf16 %v1062_v49, %v1061_v44  ;;  %v45_v6 = vld [vmem:[%s3920_s0 + $0xe0] sm:$0xff]  ;;  %v1064_v44 = vld [vmem:[%s3919_s1 + $0x2a8] sm:$0xff] }
  0x27   :  { %2377 = vmatpush3.bf16.msra.mxu1 %v2376_v10  ;;  %1192 = vmatprep.mubr.f32.mxu0 %v845_v31  ;;  %vm566_vm8 = vcmp.ge.f32.partialorder %v422_v39, 0.0  ;;  %v710_v63 = vmul.f32 0.1, %v422_v39  ;;  %vm568_vm9 = vcmp.ge.f32.partialorder %v424_v52, 0.0  ;;  %v712_v1 = vmul.f32 0.1, %v424_v52 }
  0x28   :  { %1337 = vmatprep.mubr.f32.mxu1 %v847_v35  ;;  %vm565_vm10 = vcmp.ge.f32.partialorder %v421_v53, 0.0  ;;  %v846_v2 = vsel %vm558_vm7, %v414_v36, %v702_v60  ;;  %v709_v3 = vmul.f32 0.1, %v421_v53  ;;  %v423_v4 = vadd.f32 %v2780_v56, %v230_v54  ;;  %2347 = vmatprep.subr.bf16.mxu0 %v2346_v5  ;;  %v1063_v35 = vld [vmem:[%s3919_s1 + $0x2a0] sm:$0xff] }
  0x29   :  { %1193 = vmatmul.mubr.f32.gmra.mrb[2].mxu0 %v844_v59  ;;  %v854_v9 = vsel %vm566_vm8, %v422_v39, %v710_v63  ;;  %v856_v10 = vsel %vm568_vm9, %v424_v52, %v712_v1  ;;  %v2378_v11 = vpack.c.bf16 %v1094_v55, %v1093_v51  ;;  %v2348_v12 = vpack.c.bf16 %v1046_v58, %v1045_v57  ;;  %v1095_v49 = vld [vmem:[%s3919_s1 + $0x3a0] sm:$0xff]  ;;  %v1096_v51 = vld [vmem:[%s3919_s1 + $0x3a8] sm:$0xff]  ;;  %v63_v63 = vld [vmem:[%s3920_s0 + $0x170] sm:$0xff] }
  0x2a   :  { %1338 = vmatmul.mubr.f32.gmra.mrb[2].mxu1 %v846_v2  ;;  %1197 = vmatprep.mubr.f32.mxu0 %v854_v9  ;;  %v853_v15 = vsel %vm565_vm10, %v421_v53, %v709_v3  ;;  %vm567_vm11 = vcmp.ge.f32.partialorder %v423_v4, 0.0  ;;  %v711_v16 = vmul.f32 0.1, %v423_v4  ;;  %v2380_v17 = vpack.c.bf16 %v1078_v62, %v1077_v61  ;;  %v1047_v55 = vld [vmem:[%s3919_s1 + $0x220] sm:$0xff]  ;;  %v1048_v57 = vld [vmem:[%s3919_s1 + $0x228] sm:$0xff]  ;;  %v64_v9 = vld [vmem:[%s3920_s0 + $0x178] sm:$0xff] }
  0x2b   :  { %1342 = vmatprep.mubr.f32.mxu1 %v856_v10  ;;  %2379 = vmatprep.subr.bf16.mxu1 %v2378_v11  ;;  %v238_v18 = vmul.f32 %v2745_v40, %v45_v6  ;;  %v240_v19 = vmul.f32 %v2753_v43, %v47_v7  ;;  %v237_v20 = vmul.f32 %v2758_v45, %v44_v8  ;;  %v1079_v61 = vld [vmem:[%s3919_s1 + $0x320] sm:$0xff]  ;;  %v1080_v62 = vld [vmem:[%s3919_s1 + $0x328] sm:$0xff] }
  0x2c   :  { %v855_v23 = vsel %vm567_vm11, %v423_v4, %v711_v16  ;;  %2381 = vmatpush3.bf16.msra.mxu1 %v2380_v17  ;;  %v239_v24 = vmul.f32 %v2769_v50, %v46_v13  ;;  %v247_v25 = vmul.f32 %v2745_v40, %v54_v14  ;;  %2349 = vmatpush3.bf16.msra.mxu0 %v2348_v12  ;;  %v65_v4 = vld [vmem:[%s3920_s0 + $0x180] sm:$0xff]  ;;  %v62_v8 = vld [vmem:[%s3920_s0 + $0x168] sm:$0xff]  ;;  %v72_v13 = vld [vmem:[%s3920_s0 + $0x1b8] sm:$0xff] }
  0x2d   :  { %1198 = vmatmul.mubr.f32.gmra.mrb[4].mxu0 %v853_v15  ;;  %v431_v26 = vadd.f32 %v2760_v46, %v238_v18  ;;  %v433_v27 = vadd.f32 %v2762_v47, %v240_v19  ;;  %v430_v28 = vadd.f32 %v2764_v48, %v237_v20  ;;  %v249_v34 = vmul.f32 %v2753_v43, %v56_v21  ;;  %v74_v14 = vld [vmem:[%s3920_s0 + $0x1c8] sm:$0xff] }
  0x2e   :  { %1343 = vmatmul.mubr.f32.gmra.mrb[4].mxu1 %v855_v23  ;;  %v432_v29 = vadd.f32 %v2780_v56, %v239_v24  ;;  %v440_v33 = vadd.f32 %v2760_v46, %v247_v25  ;;  %v246_v37 = vmul.f32 %v2758_v45, %v53_v22  ;;  %v248_v60 = vmul.f32 %v2769_v50, %v55_v38  ;;  %v1065_v38 = vld [vmem:[%s3919_s1 + $0x2b0] sm:$0xff] }
  0x2f   :  { %vm575_vm12 = vcmp.ge.f32.partialorder %v431_v26, 0.0  ;;  %v719_v30 = vmul.f32 0.1, %v431_v26  ;;  %vm577_vm13 = vcmp.ge.f32.partialorder %v433_v27, 0.0  ;;  %v721_v31 = vmul.f32 0.1, %v433_v27 }
  0x30   :  { %vm574_vm14 = vcmp.ge.f32.partialorder %v430_v28, 0.0  ;;  %v718_v41 = vmul.f32 0.1, %v430_v28  ;;  %vm576_vm15 = vcmp.ge.f32.partialorder %v432_v29, 0.0  ;;  %v720_v42 = vmul.f32 0.1, %v432_v29 }
  0x31   :  { %v863_v32 = vsel %vm575_vm12, %v431_v26, %v719_v30  ;;  %v865_v36 = vsel %vm577_vm13, %v433_v27, %v721_v31  ;;  %vm584_vm0 = vcmp.ge.f32.partialorder %v440_v33, 0.0  ;;  %v728_v39 = vmul.f32 0.1, %v440_v33  ;;  %v1066_v30 = vld [vmem:[%s3919_s1 + $0x2b8] sm:$0xff] }
  0x32   :  { %1202 = vmatprep.mubr.f32.mxu0 %v863_v32  ;;  %1347 = vmatprep.mubr.f32.mxu1 %v865_v36  ;;  %v862_v52 = vsel %vm574_vm14, %v430_v28, %v718_v41  ;;  %v864_v53 = vsel %vm576_vm15, %v432_v29, %v720_v42  ;;  %v442_v54 = vadd.f32 %v2762_v47, %v249_v34  ;;  %v71_v28 = vld [vmem:[%s3920_s0 + $0x1b0] sm:$0xff]  ;;  %v1098_v42 = vld [vmem:[%s3919_s1 + $0x3b8] sm:$0xff] }
  0x33   :  { %1203 = vmatmul.mubr.f32.gmra.mrb[6].mxu0 %v862_v52  ;;  %1348 = vmatmul.mubr.f32.gmra.mrb[6].mxu1 %v864_v53  ;;  %v872_v58 = vsel %vm584_vm0, %v440_v33, %v728_v39  ;;  %v439_v59 = vadd.f32 %v2764_v48, %v246_v37  ;;  %v2350_v2 = vpack.c.bf16 %v1064_v44, %v1063_v35  ;;  %v73_v37 = vld [vmem:[%s3920_s0 + $0x1c0] sm:$0xff]  ;;  %v1097_v41 = vld [vmem:[%s3919_s1 + $0x3b0] sm:$0xff]  ;;  %v1050_v53 = vld [vmem:[%s3919_s1 + $0x238] sm:$0xff] }
  0x34   :  { %1207 = vmatprep.mubr.f32.mxu0 %v872_v58  ;;  %vm586_vm1 = vcmp.ge.f32.partialorder %v442_v54, 0.0  ;;  %v730_v1 = vmul.f32 0.1, %v442_v54  ;;  %v2382_v3 = vpack.c.bf16 %v1096_v51, %v1095_v49  ;;  %v441_v6 = vadd.f32 %v2780_v56, %v248_v60  ;;  %v1049_v44 = vld [vmem:[%s3919_s1 + $0x230] sm:$0xff] }
  0x35   :  { %vm583_vm2 = vcmp.ge.f32.partialorder %v439_v59, 0.0  ;;  %v727_v5 = vmul.f32 0.1, %v439_v59  ;;  %v2352_v7 = vpack.c.bf16 %v1048_v57, %v1047_v55  ;;  %2351 = vmatprep.subr.bf16.mxu0 %v2350_v2  ;;  %v2384_v11 = vpack.c.bf16 %v1080_v62, %v1079_v61  ;;  %v1082_v55 = vld [vmem:[%s3919_s1 + $0x338] sm:$0xff]  ;;  %v81_v61 = vld [vmem:[%s3920_s0 + $0x200] sm:$0xff]  ;;  %v83_v62 = vld [vmem:[%s3920_s0 + $0x210] sm:$0xff] }
  0x36   :  { %v874_v10 = vsel %vm586_vm1, %v442_v54, %v730_v1  ;;  %2383 = vmatprep.subr.bf16.mxu1 %v2382_v3  ;;  %v256_v12 = vmul.f32 %v2745_v40, %v63_v63  ;;  %vm585_vm3 = vcmp.ge.f32.partialorder %v441_v6, 0.0  ;;  %v729_v16 = vmul.f32 0.1, %v441_v6  ;;  %v1081_v54 = vld [vmem:[%s3919_s1 + $0x330] sm:$0xff]  ;;  %v80_v3 = vld [vmem:[%s3920_s0 + $0x1f8] sm:$0xff] }
  0x37   :  { %1352 = vmatprep.mubr.f32.mxu1 %v874_v10  ;;  %v871_v15 = vsel %vm583_vm2, %v439_v59, %v727_v5  ;;  %2353 = vmatpush3.bf16.msra.mxu0 %v2352_v7  ;;  %v258_v17 = vmul.f32 %v2753_v43, %v65_v4  ;;  %v255_v19 = vmul.f32 %v2758_v45, %v62_v8  ;;  %v82_v4 = vld [vmem:[%s3920_s0 + $0x208] sm:$0xff] }
  0x38   :  { %1208 = vmatmul.mubr.f32.gmra.mrb[8].mxu0 %v871_v15  ;;  %2385 = vmatpush3.bf16.msra.mxu1 %v2384_v11  ;;  %v449_v18 = vadd.f32 %v2760_v46, %v256_v12  ;;  %v257_v20 = vmul.f32 %v2769_v50, %v64_v9  ;;  %v873_v21 = vsel %vm585_vm3, %v441_v6, %v729_v16  ;;  %v90_v8 = vld [vmem:[%s3920_s0 + $0x248] sm:$0xff]  ;;  %v92_v12 = vld [vmem:[%s3920_s0 + $0x258] sm:$0xff] }
  0x39   :  { %v451_v22 = vadd.f32 %v2762_v47, %v258_v17  ;;  %v265_v23 = vmul.f32 %v2745_v40, %v72_v13  ;;  %v267_v24 = vmul.f32 %v2753_v43, %v74_v14  ;;  %1353 = vmatmul.mubr.f32.gmra.mrb[8].mxu1 %v873_v21  ;;  %v448_v26 = vadd.f32 %v2764_v48, %v255_v19 }
  0x3a   :  { %vm593_vm4 = vcmp.ge.f32.partialorder %v449_v18, 0.0  ;;  %v737_v25 = vmul.f32 0.1, %v449_v18  ;;  %v450_v27 = vadd.f32 %v2780_v56, %v257_v20  ;;  %v264_v52 = vmul.f32 %v2758_v45, %v71_v28  ;;  %v1067_v28 = vld [vmem:[%s3919_s1 + $0x2c0] sm:$0xff] }
  0x3b   :  { %vm595_vm5 = vcmp.ge.f32.partialorder %v451_v22, 0.0  ;;  %v739_v29 = vmul.f32 0.1, %v451_v22  ;;  %v458_v33 = vadd.f32 %v2760_v46, %v265_v23  ;;  %v460_v34 = vadd.f32 %v2762_v47, %v267_v24  ;;  %v89_v24 = vld [vmem:[%s3920_s0 + $0x240] sm:$0xff] }
  0x3c   :  { %v881_v31 = vsel %vm593_vm4, %v449_v18, %v737_v25  ;;  %vm592_vm6 = vcmp.ge.f32.partialorder %v448_v26, 0.0  ;;  %v736_v35 = vmul.f32 0.1, %v448_v26  ;;  %vm594_vm7 = vcmp.ge.f32.partialorder %v450_v27, 0.0 }
  0x3d   :  { %1212 = vmatprep.mubr.f32.mxu0 %v881_v31  ;;  %v883_v32 = vsel %vm595_vm5, %v451_v22, %v739_v29  ;;  %v738_v36 = vmul.f32 0.1, %v450_v27  ;;  %vm602_vm8 = vcmp.ge.f32.partialorder %v458_v33, 0.0  ;;  %v746_v39 = vmul.f32 0.1, %v458_v33  ;;  %v1068_v29 = vld [vmem:[%s3919_s1 + $0x2c8] sm:$0xff] }
  0x3e   :  { %1357 = vmatprep.mubr.f32.mxu1 %v883_v32  ;;  %v880_v49 = vsel %vm592_vm6, %v448_v26, %v736_v35  ;;  %vm604_vm9 = vcmp.ge.f32.partialorder %v460_v34, 0.0  ;;  %v748_v51 = vmul.f32 0.1, %v460_v34  ;;  %v266_v59 = vmul.f32 %v2769_v50, %v73_v37  ;;  %v1052_v32 = vld [vmem:[%s3919_s1 + $0x248] sm:$0xff] }
  0x3f   :  { %1213 = vmatmul.mubr.f32.gmra.mrb[10].mxu0 %v880_v49  ;;  %v882_v57 = vsel %vm594_vm7, %v450_v27, %v738_v36  ;;  %v890_v58 = vsel %vm602_vm8, %v458_v33, %v746_v39  ;;  %v2354_v60 = vpack.c.bf16 %v1066_v30, %v1065_v38  ;;  %v457_v1 = vadd.f32 %v2764_v48, %v264_v52  ;;  %v91_v27 = vld [vmem:[%s3920_s0 + $0x250] sm:$0xff]  ;;  %v1099_v33 = vld [vmem:[%s3919_s1 + $0x3c0] sm:$0xff] }
  0x40   :  { %1358 = vmatmul.mubr.f32.gmra.mrb[10].mxu1 %v882_v57  ;;  %1217 = vmatprep.mubr.f32.mxu0 %v890_v58  ;;  %v892_v63 = vsel %vm604_vm9, %v460_v34, %v748_v51  ;;  %v2386_v2 = vpack.c.bf16 %v1098_v42, %v1097_v41  ;;  %v459_v5 = vadd.f32 %v2780_v56, %v266_v59  ;;  %v1100_v41 = vld [vmem:[%s3919_s1 + $0x3c8] sm:$0xff]  ;;  %v1051_v42 = vld [vmem:[%s3919_s1 + $0x240] sm:$0xff]  ;;  %v99_v52 = vld [vmem:[%s3920_s0 + $0x290] sm:$0xff] }
  0x41   :  { %1362 = vmatprep.mubr.f32.mxu1 %v892_v63  ;;  %2355 = vmatprep.subr.bf16.mxu0 %v2354_v60  ;;  %v2356_v6 = vpack.c.bf16 %v1050_v53, %v1049_v44  ;;  %v2388_v7 = vpack.c.bf16 %v1082_v55, %v1081_v54  ;;  %vm601_vm10 = vcmp.ge.f32.partialorder %v457_v1, 0.0  ;;  %v745_v9 = vmul.f32 0.1, %v457_v1  ;;  %v1083_v49 = vld [vmem:[%s3919_s1 + $0x340] sm:$0xff]  ;;  %v1084_v51 = vld [vmem:[%s3919_s1 + $0x348] sm:$0xff] }
  0x42   :  { %2387 = vmatprep.subr.bf16.mxu1 %v2386_v2  ;;  %v274_v10 = vmul.f32 %v2745_v40, %v81_v61  ;;  %v276_v11 = vmul.f32 %v2753_v43, %v83_v62  ;;  %vm603_vm11 = vcmp.ge.f32.partialorder %v459_v5, 0.0  ;;  %v747_v13 = vmul.f32 0.1, %v459_v5  ;;  %v101_v60 = vld [vmem:[%s3920_s0 + $0x2a0] sm:$0xff]  ;;  %v98_v61 = vld [vmem:[%s3920_s0 + $0x288] sm:$0xff]  ;;  %v100_v62 = vld [vmem:[%s3920_s0 + $0x298] sm:$0xff] }
  0x43   :  { %2357 = vmatpush3.bf16.msra.mxu0 %v2356_v6  ;;  %2389 = vmatpush3.bf16.msra.mxu1 %v2388_v7  ;;  %v273_v14 = vmul.f32 %v2758_v45, %v80_v3  ;;  %v275_v15 = vmul.f32 %v2769_v50, %v82_v4  ;;  %v889_v16 = vsel %vm601_vm10, %v457_v1, %v745_v9  ;;  %v108_v7 = vld [vmem:[%s3920_s0 + $0x2d8] sm:$0xff] }
  0x44   :  { %v467_v17 = vadd.f32 %v2760_v46, %v274_v10  ;;  %v469_v18 = vadd.f32 %v2762_v47, %v276_v11  ;;  %v283_v19 = vmul.f32 %v2745_v40, %v90_v8  ;;  %1218 = vmatmul.mubr.f32.gmra.mrb[12].mxu0 %v889_v16  ;;  %v891_v20 = vsel %vm603_vm11, %v459_v5, %v747_v13  ;;  %v110_v11 = vld [vmem:[%s3920_s0 + $0x2e8] sm:$0xff] }
  0x45   :  { %v466_v21 = vadd.f32 %v2764_v48, %v273_v14  ;;  %v468_v22 = vadd.f32 %v2780_v56, %v275_v15  ;;  %v285_v23 = vmul.f32 %v2753_v43, %v92_v12  ;;  %1363 = vmatmul.mubr.f32.gmra.mrb[12].mxu1 %v891_v20  ;;  %v282_v44 = vmul.f32 %v2758_v45, %v89_v24 }
  0x46   :  { %vm611_vm12 = vcmp.ge.f32.partialorder %v467_v17, 0.0  ;;  %v755_v25 = vmul.f32 0.1, %v467_v17  ;;  %vm613_vm13 = vcmp.ge.f32.partialorder %v469_v18, 0.0  ;;  %v757_v26 = vmul.f32 0.1, %v469_v18 }
  0x47   :  { %vm610_vm14 = vcmp.ge.f32.partialorder %v466_v21, 0.0  ;;  %v754_v34 = vmul.f32 0.1, %v466_v21  ;;  %vm612_vm15 = vcmp.ge.f32.partialorder %v468_v22, 0.0  ;;  %v756_v37 = vmul.f32 0.1, %v468_v22 }
  0x48   :  { %v899_v38 = vsel %vm611_vm12, %v467_v17, %v755_v25  ;;  %v901_v30 = vsel %vm613_vm13, %v469_v18, %v757_v26  ;;  %v476_v31 = vadd.f32 %v2760_v46, %v283_v19  ;;  %v478_v35 = vadd.f32 %v2762_v47, %v285_v23  ;;  %v109_v23 = vld [vmem:[%s3920_s0 + $0x2e0] sm:$0xff] }
  0x49   :  { %1222 = vmatprep.mubr.f32.mxu0 %v899_v38  ;;  %1367 = vmatprep.mubr.f32.mxu1 %v901_v30  ;;  %v898_v36 = vsel %vm610_vm14, %v466_v21, %v754_v34  ;;  %v900_v39 = vsel %vm612_vm15, %v468_v22, %v756_v37  ;;  %v475_v55 = vadd.f32 %v2764_v48, %v282_v44  ;;  %v107_v22 = vld [vmem:[%s3920_s0 + $0x2d0] sm:$0xff] }
  0x4a   :  { %1223 = vmatmul.mubr.f32.gmra.mrb[14].mxu0 %v898_v36  ;;  %1368 = vmatmul.mubr.f32.gmra.mrb[14].mxu1 %v900_v39  ;;  %vm620_vm0 = vcmp.ge.f32.partialorder %v476_v31, 0.0  ;;  %v764_v53 = vmul.f32 0.1, %v476_v31  ;;  %vm622_vm1 = vcmp.ge.f32.partialorder %v478_v35, 0.0  ;;  %v766_v54 = vmul.f32 0.1, %v478_v35 }
  0x4b   :  { %v284_v57 = vmul.f32 %v2769_v50, %v91_v27  ;;  %v2358_v58 = vpack.c.bf16 %v1068_v29, %v1067_v28  ;;  %v2390_v59 = vpack.c.bf16 %v1100_v41, %v1099_v33  ;;  %v2360_v2 = vpack.c.bf16 %v1052_v32, %v1051_v42  ;;  %v1069_v29 = vld [vmem:[%s3919_s1 + $0x2d0] sm:$0xff]  ;;  %v1070_v33 = vld [vmem:[%s3919_s1 + $0x2d8] sm:$0xff] }
  0x4c   :  { %v908_v63 = vsel %vm620_vm0, %v476_v31, %v764_v53  ;;  %v910_v1 = vsel %vm622_vm1, %v478_v35, %v766_v54  ;;  %v2392_v3 = vpack.c.bf16 %v1084_v51, %v1083_v49  ;;  %vm619_vm2 = vcmp.ge.f32.partialorder %v475_v55, 0.0  ;;  %v1101_v34 = vld [vmem:[%s3919_s1 + $0x3d0] sm:$0xff]  ;;  %v1102_v35 = vld [vmem:[%s3919_s1 + $0x3d8] sm:$0xff]  ;;  %v117_v54 = vld [vmem:[%s3920_s0 + $0x320] sm:$0xff] }
  0x4d   :  { %1227 = vmatprep.mubr.f32.mxu0 %v908_v63  ;;  %1372 = vmatprep.mubr.f32.mxu1 %v910_v1  ;;  %v763_v4 = vmul.f32 0.1, %v475_v55  ;;  %v477_v5 = vadd.f32 %v2780_v56, %v284_v57  ;;  %v292_v6 = vmul.f32 %v2745_v40, %v99_v52  ;;  %v294_v8 = vmul.f32 %v2753_v43, %v101_v60  ;;  %v1053_v41 = vld [vmem:[%s3919_s1 + $0x250] sm:$0xff]  ;;  %v1054_v42 = vld [vmem:[%s3919_s1 + $0x258] sm:$0xff] }
  0x4e   :  { %2359 = vmatprep.subr.bf16.mxu0 %v2358_v58  ;;  %2391 = vmatprep.subr.bf16.mxu1 %v2390_v59  ;;  %v291_v9 = vmul.f32 %v2758_v45, %v98_v61  ;;  %v293_v10 = vmul.f32 %v2769_v50, %v100_v62  ;;  %v301_v18 = vmul.f32 %v2745_v40, %v108_v7  ;;  %v1085_v44 = vld [vmem:[%s3919_s1 + $0x350] sm:$0xff]  ;;  %v1086_v49 = vld [vmem:[%s3919_s1 + $0x358] sm:$0xff]  ;;  %v118_v62 = vld [vmem:[%s3920_s0 + $0x328] sm:$0xff] }
  0x4f   :  { %v907_v12 = vsel %vm619_vm2, %v475_v55, %v763_v4  ;;  %vm621_vm3 = vcmp.ge.f32.partialorder %v477_v5, 0.0  ;;  %v765_v13 = vmul.f32 0.1, %v477_v5  ;;  %2361 = vmatpush3.bf16.msra.mxu0 %v2360_v2  ;;  %2393 = vmatpush3.bf16.msra.mxu1 %v2392_v3  ;;  %v485_v14 = vadd.f32 %v2760_v46, %v292_v6  ;;  %v119_v55 = vld [vmem:[%s3920_s0 + $0x330] sm:$0xff]  ;;  %v116_v61 = vld [vmem:[%s3920_s0 + $0x318] sm:$0xff]  ;;  %v126_v3 = vld [vmem:[%s3920_s0 + $0x368] sm:$0xff] }
  0x50   :  { %1228 = vmatmul.mubr.f32.gmra.mrb[16].mxu0 %v907_v12  ;;  %v487_v15 = vadd.f32 %v2762_v47, %v294_v8  ;;  %v484_v16 = vadd.f32 %v2764_v48, %v291_v9  ;;  %v486_v17 = vadd.f32 %v2780_v56, %v293_v10  ;;  %v303_v21 = vmul.f32 %v2753_v43, %v110_v11  ;;  %v128_v7 = vld [vmem:[%s3920_s0 + $0x378] sm:$0xff]  ;;  %v125_v8 = vld [vmem:[%s3920_s0 + $0x360] sm:$0xff] }
  0x51   :  { %v909_v19 = vsel %vm621_vm3, %v477_v5, %v765_v13  ;;  %vm629_vm4 = vcmp.ge.f32.partialorder %v485_v14, 0.0  ;;  %v773_v20 = vmul.f32 0.1, %v485_v14  ;;  %v494_v28 = vadd.f32 %v2760_v46, %v301_v18 }
  0x52   :  { %1373 = vmatmul.mubr.f32.gmra.mrb[16].mxu1 %v909_v19  ;;  %vm631_vm5 = vcmp.ge.f32.partialorder %v487_v15, 0.0  ;;  %v775_v24 = vmul.f32 0.1, %v487_v15  ;;  %vm628_vm6 = vcmp.ge.f32.partialorder %v484_v16, 0.0  ;;  %v772_v25 = vmul.f32 0.1, %v484_v16 }
  0x53   :  { %v917_v26 = vsel %vm629_vm4, %v485_v14, %v773_v20  ;;  %vm630_vm7 = vcmp.ge.f32.partialorder %v486_v17, 0.0  ;;  %v774_v27 = vmul.f32 0.1, %v486_v17  ;;  %v496_v30 = vadd.f32 %v2762_v47, %v303_v21 }
  0x54   :  { %1232 = vmatprep.mubr.f32.mxu0 %v917_v26  ;;  %v919_v37 = vsel %vm631_vm5, %v487_v15, %v775_v24  ;;  %v916_v38 = vsel %vm628_vm6, %v484_v16, %v772_v25  ;;  %v300_v31 = vmul.f32 %v2758_v45, %v107_v22  ;;  %vm638_vm8 = vcmp.ge.f32.partialorder %v494_v28, 0.0  ;;  %v127_v22 = vld [vmem:[%s3920_s0 + $0x370] sm:$0xff]  ;;  %v1072_v24 = vld [vmem:[%s3919_s1 + $0x2e8] sm:$0xff] }
  0x55   :  { %1377 = vmatprep.mubr.f32.mxu1 %v919_v37  ;;  %1233 = vmatmul.mubr.f32.gmra.mrb[18].mxu0 %v916_v38  ;;  %v918_v32 = vsel %vm630_vm7, %v486_v17, %v774_v27  ;;  %v782_v36 = vmul.f32 0.1, %v494_v28  ;;  %v302_v39 = vmul.f32 %v2769_v50, %v109_v23  ;;  %vm640_vm9 = vcmp.ge.f32.partialorder %v496_v30, 0.0  ;;  %v1071_v23 = vld [vmem:[%s3919_s1 + $0x2e0] sm:$0xff]  ;;  %v1104_v37 = vld [vmem:[%s3919_s1 + $0x3e8] sm:$0xff] }
  0x56   :  { %1378 = vmatmul.mubr.f32.gmra.mrb[18].mxu1 %v918_v32  ;;  %v784_v51 = vmul.f32 0.1, %v496_v30  ;;  %v493_v52 = vadd.f32 %v2764_v48, %v300_v31  ;;  %v2362_v53 = vpack.c.bf16 %v1070_v33, %v1069_v29  ;;  %v2394_v59 = vpack.c.bf16 %v1102_v35, %v1101_v34  ;;  %v1103_v34 = vld [vmem:[%s3919_s1 + $0x3e0] sm:$0xff]  ;;  %v1088_v32 = vld [vmem:[%s3919_s1 + $0x368] sm:$0xff] }
  0x57   :  { %v926_v57 = vsel %vm638_vm8, %v494_v28, %v782_v36  ;;  %v495_v58 = vadd.f32 %v2780_v56, %v302_v39  ;;  %v2364_v60 = vpack.c.bf16 %v1054_v42, %v1053_v41  ;;  %v2396_v2 = vpack.c.bf16 %v1086_v49, %v1085_v44  ;;  %v1055_v38 = vld [vmem:[%s3919_s1 + $0x260] sm:$0xff]  ;;  %v1056_v41 = vld [vmem:[%s3919_s1 + $0x268] sm:$0xff] }
  0x58   :  { %1237 = vmatprep.mubr.f32.mxu0 %v926_v57  ;;  %v928_v63 = vsel %vm640_vm9, %v496_v30, %v784_v51  ;;  %vm637_vm10 = vcmp.ge.f32.partialorder %v493_v52, 0.0  ;;  %v781_v1 = vmul.f32 0.1, %v493_v52  ;;  %2363 = vmatprep.subr.bf16.mxu0 %v2362_v53  ;;  %v310_v5 = vmul.f32 %v2745_v40, %v117_v54  ;;  %v1087_v42 = vld [vmem:[%s3919_s1 + $0x360] sm:$0xff]  ;;  %v134_v54 = vld [vmem:[%s3920_s0 + $0x3a8] sm:$0xff] }
  0x59   :  { %1382 = vmatprep.mubr.f32.mxu1 %v928_v63  ;;  %vm639_vm11 = vcmp.ge.f32.partialorder %v495_v58, 0.0  ;;  %v783_v4 = vmul.f32 0.1, %v495_v58  ;;  %2395 = vmatprep.subr.bf16.mxu1 %v2394_v59  ;;  %v312_v6 = vmul.f32 %v2753_v43, %v119_v55  ;;  %v309_v10 = vmul.f32 %v2758_v45, %v116_v61  ;;  %v137_v53 = vld [vmem:[%s3920_s0 + $0x3c0] sm:$0xff]  ;;  %v144_v61 = vld [vmem:[%s3920_s0 + $0x3f8] sm:$0xff] }
  0x5a   :  { %v925_v9 = vsel %vm637_vm10, %v493_v52, %v781_v1  ;;  %2365 = vmatpush3.bf16.msra.mxu0 %v2364_v60  ;;  %2397 = vmatpush3.bf16.msra.mxu1 %v2396_v2  ;;  %v311_v11 = vmul.f32 %v2769_v50, %v118_v62  ;;  %v503_v13 = vadd.f32 %v2760_v46, %v310_v5  ;;  %v135_v52 = vld [vmem:[%s3920_s0 + $0x3b0] sm:$0xff]  ;;  %v136_v60 = vld [vmem:[%s3920_s0 + $0x3b8] sm:$0xff]  ;;  %v146_v2 = vld [vmem:[%s3920_s0 + $0x408] sm:$0xff] }
  0x5b   :  { %1238 = vmatmul.mubr.f32.gmra.mrb[20].mxu0 %v925_v9  ;;  %v927_v12 = vsel %vm639_vm11, %v495_v58, %v783_v4  ;;  %v505_v14 = vadd.f32 %v2762_v47, %v312_v6  ;;  %v319_v15 = vmul.f32 %v2745_v40, %v126_v3  ;;  %v502_v16 = vadd.f32 %v2764_v48, %v309_v10  ;;  %v143_v6 = vld [vmem:[%s3920_s0 + $0x3f0] sm:$0xff] }
  0x5c   :  { %1383 = vmatmul.mubr.f32.gmra.mrb[20].mxu1 %v927_v12  ;;  %v504_v17 = vadd.f32 %v2780_v56, %v311_v11  ;;  %v321_v18 = vmul.f32 %v2753_v43, %v128_v7  ;;  %v318_v19 = vmul.f32 %v2758_v45, %v125_v8  ;;  %vm647_vm12 = vcmp.ge.f32.partialorder %v503_v13, 0.0 }
  0x5d   :  { %v791_v20 = vmul.f32 0.1, %v503_v13  ;;  %vm649_vm13 = vcmp.ge.f32.partialorder %v505_v14, 0.0  ;;  %v793_v21 = vmul.f32 0.1, %v505_v14  ;;  %vm646_vm14 = vcmp.ge.f32.partialorder %v502_v16, 0.0 }
  0x5e   :  { %v790_v25 = vmul.f32 0.1, %v502_v16  ;;  %vm648_vm15 = vcmp.ge.f32.partialorder %v504_v17, 0.0  ;;  %v792_v26 = vmul.f32 0.1, %v504_v17  ;;  %v512_v29 = vadd.f32 %v2760_v46, %v319_v15 }
  0x5f   :  { %v935_v27 = vsel %vm647_vm12, %v503_v13, %v791_v20  ;;  %v937_v28 = vsel %vm649_vm13, %v505_v14, %v793_v21  ;;  %v514_v33 = vadd.f32 %v2762_v47, %v321_v18  ;;  %v511_v35 = vadd.f32 %v2764_v48, %v318_v19  ;;  %v145_v18 = vld [vmem:[%s3920_s0 + $0x400] sm:$0xff]  ;;  %v1073_v21 = vld [vmem:[%s3919_s1 + $0x2f0] sm:$0xff] }
  0x60   :  { %1242 = vmatprep.mubr.f32.mxu0 %v935_v27  ;;  %1387 = vmatprep.mubr.f32.mxu1 %v937_v28  ;;  %v934_v30 = vsel %vm646_vm14, %v502_v16, %v790_v25  ;;  %v936_v31 = vsel %vm648_vm15, %v504_v17, %v792_v26  ;;  %vm656_vm0 = vcmp.ge.f32.partialorder %v512_v29, 0.0  ;;  %v800_v36 = vmul.f32 0.1, %v512_v29  ;;  %v1074_v27 = vld [vmem:[%s3919_s1 + $0x2f8] sm:$0xff]  ;;  %v1105_v28 = vld [vmem:[%s3919_s1 + $0x3f0] sm:$0xff] }
  0x61   :  { %1243 = vmatmul.mubr.f32.gmra.mrb[22].mxu0 %v934_v30  ;;  %1388 = vmatmul.mubr.f32.gmra.mrb[22].mxu1 %v936_v31  ;;  %vm658_vm1 = vcmp.ge.f32.partialorder %v514_v33, 0.0  ;;  %v802_v39 = vmul.f32 0.1, %v514_v33  ;;  %vm655_vm2 = vcmp.ge.f32.partialorder %v511_v35, 0.0  ;;  %v799_v44 = vmul.f32 0.1, %v511_v35 }
  0x62   :  { %v320_v49 = vmul.f32 %v2769_v50, %v127_v22  ;;  %v2366_v51 = vpack.c.bf16 %v1072_v24, %v1071_v23  ;;  %v944_v55 = vsel %vm656_vm0, %v512_v29, %v800_v36  ;;  %v2398_v58 = vpack.c.bf16 %v1104_v37, %v1103_v34  ;;  %v1106_v29 = vld [vmem:[%s3919_s1 + $0x3f8] sm:$0xff] }
  0x63   :  { %v946_v57 = vsel %vm658_vm1, %v514_v33, %v802_v39  ;;  %v2368_v59 = vpack.c.bf16 %v1056_v41, %v1055_v38  ;;  %1247 = vmatprep.mubr.f32.mxu0 %v944_v55  ;;  %v943_v62 = vsel %vm655_vm2, %v511_v35, %v799_v44  ;;  %v2400_v1 = vpack.c.bf16 %v1088_v32, %v1087_v42  ;;  %v1057_v38 = vld [vmem:[%s3919_s1 + $0x270] sm:$0xff]  ;;  %v1058_v30 = vld [vmem:[%s3919_s1 + $0x278] sm:$0xff]  ;;  %v153_v39 = vld [vmem:[%s3920_s0 + $0x440] sm:$0xff] }
  0x64   :  { %1392 = vmatprep.mubr.f32.mxu1 %v946_v57  ;;  %v513_v63 = vadd.f32 %v2780_v56, %v320_v49  ;;  %2367 = vmatprep.subr.bf16.mxu0 %v2366_v51  ;;  %v328_v3 = vmul.f32 %v2745_v40, %v135_v52  ;;  %v330_v4 = vmul.f32 %v2753_v43, %v137_v53  ;;  %v187_v31 = vsub.s32 5, %v2618_v0  ;;  %v1089_v32 = vld [vmem:[%s3919_s1 + $0x370] sm:$0xff]  ;;  %v1090_v36 = vld [vmem:[%s3919_s1 + $0x378] sm:$0xff] }
  0x65   :  { %1248 = vmatmul.mubr.f32.gmra.mrb[24].mxu0 %v943_v62  ;;  %v327_v5 = vmul.f32 %v2758_v45, %v134_v54  ;;  %2399 = vmatprep.subr.bf16.mxu1 %v2398_v58  ;;  %v329_v8 = vmul.f32 %v2769_v50, %v136_v60  ;;  %v337_v9 = vmul.f32 %v2745_v40, %v144_v61  ;;  %v195_v44 = vsub.s32 7, %v2618_v0  ;;  %v155_v53 = vld [vmem:[%s3920_s0 + $0x450] sm:$0xff]  ;;  %v152_v58 = vld [vmem:[%s3920_s0 + $0x438] sm:$0xff] }
  0x66   :  { %vm657_vm3 = vcmp.ge.f32.partialorder %v513_v63, 0.0  ;;  %v801_v7 = vmul.f32 0.1, %v513_v63  ;;  %2369 = vmatpush3.bf16.msra.mxu0 %v2368_v59  ;;  %2401 = vmatpush3.bf16.msra.mxu1 %v2400_v1  ;;  %v521_v10 = vadd.f32 %v2760_v46, %v328_v3  ;;  %v523_v11 = vadd.f32 %v2762_v47, %v330_v4  ;;  %v154_v59 = vld [vmem:[%s3920_s0 + $0x448] sm:$0xff] }
  0x67   :  { %v520_v12 = vadd.f32 %v2764_v48, %v327_v5  ;;  %v339_v13 = vmul.f32 %v2753_v43, %v146_v2  ;;  %v522_v15 = vadd.f32 %v2780_v56, %v329_v8  ;;  %v530_v16 = vadd.f32 %v2760_v46, %v337_v9 }
  0x68   :  { %v945_v14 = vsel %vm657_vm3, %v513_v63, %v801_v7  ;;  %v336_v17 = vmul.f32 %v2758_v45, %v143_v6  ;;  %vm665_vm4 = vcmp.ge.f32.partialorder %v521_v10, 0.0  ;;  %v809_v19 = vmul.f32 0.1, %v521_v10 }
  0x69   :  { %1393 = vmatmul.mubr.f32.gmra.mrb[24].mxu1 %v945_v14  ;;  %vm667_vm5 = vcmp.ge.f32.partialorder %v523_v11, 0.0  ;;  %v811_v20 = vmul.f32 0.1, %v523_v11  ;;  %vm664_vm6 = vcmp.ge.f32.partialorder %v520_v12, 0.0  ;;  %v808_v22 = vmul.f32 0.1, %v520_v12 }
  0x6a   :  { %vm666_vm7 = vcmp.ge.f32.partialorder %v522_v15, 0.0  ;;  %v810_v23 = vmul.f32 0.1, %v522_v15  ;;  %v953_v24 = vsel %vm665_vm4, %v521_v10, %v809_v19  ;;  %vm674_vm8 = vcmp.ge.f32.partialorder %v530_v16, 0.0 }
  0x6b   :  { %v955_v25 = vsel %vm667_vm5, %v523_v11, %v811_v20  ;;  %v818_v26 = vmul.f32 0.1, %v530_v16  ;;  %1252 = vmatprep.mubr.f32.mxu0 %v953_v24  ;;  %v952_v33 = vsel %vm664_vm6, %v520_v12, %v808_v22  ;;  %v532_v37 = vadd.f32 %v2762_v47, %v339_v13  ;;  %v21_v20 = vld [vmem:[%s3920_s0 + $0x20] sm:$0xff]  ;;  %v1108_v22 = vld [vmem:[%s3919_s1 + $0x408] sm:$0xff] }
  0x6c   :  { %1397 = vmatprep.mubr.f32.mxu1 %v955_v25  ;;  %v954_v34 = vsel %vm666_vm7, %v522_v15, %v810_v23  ;;  %1253 = vmatmul.mubr.f32.gmra.mrb[26].mxu0 %v952_v33  ;;  %v529_v41 = vadd.f32 %v2764_v48, %v336_v17  ;;  %v338_v42 = vmul.f32 %v2769_v50, %v145_v18  ;;  %v183_v63 = vsub.s32 4, %v2618_v0 }
  0x6d   :  { %1398 = vmatmul.mubr.f32.gmra.mrb[26].mxu1 %v954_v34  ;;  %v962_v35 = vsel %vm674_vm8, %v530_v16, %v818_v26  ;;  %vm676_vm9 = vcmp.ge.f32.partialorder %v532_v37, 0.0  ;;  %v820_v49 = vmul.f32 0.1, %v532_v37  ;;  %v2370_v51 = vpack.c.bf16 %v1074_v27, %v1073_v21  ;;  %v1107_v21 = vld [vmem:[%s3919_s1 + $0x400] sm:$0xff]  ;;  %v23_v27 = vld [vmem:[%s3920_s0 + $0x30] sm:$0xff] }
  0x6e   :  { %1257 = vmatprep.mubr.f32.mxu0 %v962_v35  ;;  %v2402_v52 = vpack.c.bf16 %v1106_v29, %v1105_v28  ;;  %vm673_vm10 = vcmp.ge.f32.partialorder %v529_v41, 0.0  ;;  %v817_v54 = vmul.f32 0.1, %v529_v41  ;;  %v531_v55 = vadd.f32 %v2780_v56, %v338_v42  ;;  %v31_v28 = vld [vmem:[%s3920_s0 + $0x70] sm:$0xff]  ;;  %v33_v29 = vld [vmem:[%s3920_s0 + $0x80] sm:$0xff] }
  0x6f   :  { %v2372_v57 = vpack.c.bf16 %v1058_v30, %v1057_v38  ;;  %v964_v60 = vsel %vm676_vm9, %v532_v37, %v820_v49  ;;  %2371 = vmatprep.subr.bf16.mxu0 %v2370_v51  ;;  %v2404_v61 = vpack.c.bf16 %v1090_v36, %v1089_v32  ;;  %v346_v62 = vmul.f32 %v2745_v40, %v153_v39  ;;  %v22_v40 = vld [vmem:[%s3920_s0 + $0x28] sm:$0xff] }
  0x70   :  { %2403 = vmatprep.subr.bf16.mxu1 %v2402_v52  ;;  %1402 = vmatprep.mubr.f32.mxu1 %v964_v60  ;;  %v961_v1 = vsel %vm673_vm10, %v529_v41, %v817_v54  ;;  %vm675_vm11 = vcmp.ge.f32.partialorder %v531_v55, 0.0  ;;  %v819_v2 = vmul.f32 0.1, %v531_v55  ;;  %v348_v3 = vmul.f32 %v2753_v43, %v155_v53  ;;  %v2454_v43 = vld [vmem:[%s3921_s2] sm:$0xff]  ;;  %v30_v37 = vld [vmem:[%s3920_s0 + $0x68] sm:$0xff]  ;;  %v32_v41 = vld [vmem:[%s3920_s0 + $0x78] sm:$0xff] }
  0x71   :  { %2373 = vmatpush3.bf16.msra.mxu0 %v2372_v57  ;;  %2405 = vmatpush3.bf16.msra.mxu1 %v2404_v61  ;;  %v539_v4 = vadd.f32 %v2760_v46, %v346_v62  ;;  %v345_v5 = vmul.f32 %v2758_v45, %v152_v58  ;;  %v347_v6 = vmul.f32 %v2769_v50, %v154_v59  ;;  %v191_v7 = vsub.s32 6, %v2618_v0  ;;  %v2455_v45 = vld [vmem:[%s3922_s3] sm:$0xff]  ;;  %v40_v60 = vld [vmem:[%s3920_s0 + $0xb8] sm:$0xff]  ;;  %v42_v61 = vld [vmem:[%s3920_s0 + $0xc8] sm:$0xff] }
  0x72   :  { %1258 = vmatmul.mubr.f32.gmra.mrb[28].mxu0 %v961_v1  ;;  %v963_v8 = vsel %vm675_vm11, %v531_v55, %v819_v2  ;;  %v541_v9 = vadd.f32 %v2762_v47, %v348_v3  ;;  %v3304_v10 = vrot.slane %v2454_v43, %v187_v31  ;;  %v3309_v46 = vrot.slane %v2455_v45, %v187_v31  ;;  %v24_v47 = vld [vmem:[%s3920_s0 + $0x38] sm:$0xff]  ;;  %v39_v3 = vld [vmem:[%s3920_s0 + $0xb0] sm:$0xff] }
  0x73   :  { %1403 = vmatmul.mubr.f32.gmra.mrb[28].mxu1 %v963_v8  ;;  %vm683_vm12 = vcmp.ge.f32.partialorder %v539_v4, 0.0  ;;  %v827_v50 = vmul.f32 0.1, %v539_v4  ;;  %v538_v11 = vadd.f32 %v2764_v48, %v345_v5  ;;  %v540_v12 = vadd.f32 %v2780_v56, %v347_v6  ;;  %v1109_v8 = vld [vmem:[%s3919_s1 + $0x410] sm:$0xff] }
  0x74   :  { %vm685_vm13 = vcmp.ge.f32.partialorder %v541_v9, 0.0  ;;  %v829_v13 = vmul.f32 0.1, %v541_v9  ;;  %v215_v14 = vmul.f32 %v3304_v10, %v22_v40  ;;  %v3319_v15 = vrot.slane %v2454_v43, %v195_v44 }
  0x75   :  { %v971_v16 = vsel %vm683_vm12, %v539_v4, %v827_v50  ;;  %vm682_vm14 = vcmp.ge.f32.partialorder %v538_v11, 0.0  ;;  %v826_v17 = vmul.f32 0.1, %v538_v11  ;;  %vm684_vm15 = vcmp.ge.f32.partialorder %v540_v12, 0.0 }
  0x76   :  { %1262 = vmatprep.mubr.f32.mxu0 %v971_v16  ;;  %v973_v48 = vsel %vm685_vm13, %v541_v9, %v829_v13  ;;  %v828_v18 = vmul.f32 0.1, %v540_v12  ;;  %v408_v56 = vadd.f32 %v3309_v46, %v215_v14  ;;  %v217_v19 = vmul.f32 %v3319_v15, %v24_v47  ;;  %v1110_v9 = vld [vmem:[%s3919_s1 + $0x418] sm:$0xff] }
  0x77   :  { %1407 = vmatprep.mubr.f32.mxu1 %v973_v48  ;;  %v970_v23 = vsel %vm682_vm14, %v538_v11, %v826_v17  ;;  %v3334_v24 = vrot.slane %v2455_v45, %v195_v44  ;;  %v3336_v25 = vrot.slane %v2454_v43, %v183_v63  ;;  %v3338_v26 = vrot.slane %v2455_v45, %v183_v63  ;;  %v49_v11 = vld [vmem:[%s3920_s0 + $0x100] sm:$0xff] }
  0x78   :  { %1263 = vmatmul.mubr.f32.gmra.mrb[30].mxu0 %v970_v23  ;;  %v972_v0 = vsel %vm684_vm15, %v540_v12, %v828_v18  ;;  %vm552_vm0 = vcmp.ge.f32.partialorder %v408_v56, 0.0  ;;  %v696_v33 = vmul.f32 0.1, %v408_v56  ;;  %v3350_v34 = vrot.slane %v2454_v43, %v191_v7  ;;  %v51_v12 = vld [vmem:[%s3920_s0 + $0x110] sm:$0xff] }
  0x79   :  { %1408 = vmatmul.mubr.f32.gmra.mrb[30].mxu1 %v972_v0  ;;  %v410_v38 = vadd.f32 %v3334_v24, %v217_v19  ;;  %v214_v30 = vmul.f32 %v3336_v25, %v21_v20  ;;  %v3357_v31 = vrot.slane %v2455_v45, %v191_v7  ;;  %v2406_v35 = vpack.c.bf16 %v1108_v22, %v1107_v21  ;;  %v41_v7 = vld [vmem:[%s3920_s0 + $0xc0] sm:$0xff]  ;;  %v48_v22 = vld [vmem:[%s3920_s0 + $0xf8] sm:$0xff] }
  0x7a   :  { %v840_v42 = vsel %vm552_vm0, %v408_v56, %v696_v33  ;;  %v216_v32 = vmul.f32 %v3350_v34, %v23_v27  ;;  %v224_v36 = vmul.f32 %v3304_v10, %v31_v28  ;;  %v226_v39 = vmul.f32 %v3319_v15, %v33_v29 }
  0x7b   :  { %1477 = vmatprep.mubr.f32.mxu0 %v840_v42  ;;  %vm554_vm1 = vcmp.ge.f32.partialorder %v410_v38, 0.0  ;;  %v698_v44 = vmul.f32 0.1, %v410_v38  ;;  %v407_v49 = vadd.f32 %v3338_v26, %v214_v30  ;;  %2407 = vmatprep.subr.bf16.mxu0 %v2406_v35  ;;  %v223_v51 = vmul.f32 %v3336_v25, %v30_v37  ;;  %v60_v42 = vld [vmem:[%s3920_s0 + $0x158] sm:$0xff] }
  0x7c   :  { %v409_v52 = vadd.f32 %v3357_v31, %v216_v32  ;;  %2438 = vmatprep.subr.bf16.mxu1 %v2406_v35  ;;  %v417_v53 = vadd.f32 %v3309_v46, %v224_v36  ;;  %v419_v54 = vadd.f32 %v3334_v24, %v226_v39  ;;  %v225_v55 = vmul.f32 %v3350_v34, %v32_v41  ;;  %v58_v41 = vld [vmem:[%s3920_s0 + $0x148] sm:$0xff] }
  0x7d   :  { %v842_v57 = vsel %vm554_vm1, %v410_v38, %v698_v44  ;;  %vm551_vm2 = vcmp.ge.f32.partialorder %v407_v49, 0.0  ;;  %v695_v58 = vmul.f32 0.1, %v407_v49  ;;  %v416_v59 = vadd.f32 %v3338_v26, %v223_v51  ;;  %v57_v51 = vld [vmem:[%s3920_s0 + $0x140] sm:$0xff] }
  0x7e   :  { %1622 = vmatprep.mubr.f32.mxu1 %v842_v57  ;;  %vm553_vm3 = vcmp.ge.f32.partialorder %v409_v52, 0.0  ;;  %v697_v62 = vmul.f32 0.1, %v409_v52  ;;  %vm561_vm4 = vcmp.ge.f32.partialorder %v417_v53, 0.0  ;;  %v705_v63 = vmul.f32 0.1, %v417_v53 }
  0x7f   :  { %v839_v1 = vsel %vm551_vm2, %v407_v49, %v695_v58  ;;  %vm563_vm5 = vcmp.ge.f32.partialorder %v419_v54, 0.0  ;;  %v707_v2 = vmul.f32 0.1, %v419_v54  ;;  %vm560_vm6 = vcmp.ge.f32.partialorder %v416_v59, 0.0  ;;  %v59_v57 = vld [vmem:[%s3920_s0 + $0x150] sm:$0xff]  ;;  %v1111_v58 = vld [vmem:[%s3919_s1 + $0x420] sm:$0xff] }
  0x80   :  { %1478 = vmatmul.mubr.f32.vlgmr.msra.gmra.mrb[32].mxu0 %v839_v1  ;;  %v841_v4 = vsel %vm553_vm3, %v409_v52, %v697_v62  ;;  %v849_v5 = vsel %vm561_vm4, %v417_v53, %v705_v63  ;;  %v704_v6 = vmul.f32 0.1, %v416_v59  ;;  %v418_v40 = vadd.f32 %v3357_v31, %v225_v55 }
  0x81   :  { %1623 = vmatmul.mubr.f32.vlgmr.msra.gmra.mrb[32].mxu1 %v841_v4  ;;  %2409 = vmatpush3.bf16.msra.mxu0 %v2406_v35  ;;  %v851_v43 = vsel %vm563_vm5, %v419_v54, %v707_v2  ;;  %v233_v45 = vmul.f32 %v3304_v10, %v40_v60  ;;  %v235_v50 = vmul.f32 %v3319_v15, %v42_v61 }
  0x82   :  { %2446 = vmatpush3.bf16.msra.mxu1 %v2406_v35  ;;  %1482 = vmatprep.mubr.f32.mxu0 %v849_v5  ;;  %v848_v47 = vsel %vm560_vm6, %v416_v59, %v704_v6  ;;  %vm562_vm7 = vcmp.ge.f32.partialorder %v418_v40, 0.0  ;;  %v706_v13 = vmul.f32 0.1, %v418_v40  ;;  %v232_v14 = vmul.f32 %v3336_v25, %v39_v3  ;;  %v50_v35 = vld [vmem:[%s3920_s0 + $0x108] sm:$0xff] }
  0x83   :  { %1627 = vmatprep.mubr.f32.mxu1 %v851_v43  ;;  %v426_v16 = vadd.f32 %v3309_v46, %v233_v45  ;;  %v428_v17 = vadd.f32 %v3334_v24, %v235_v50  ;;  %v234_v48 = vmul.f32 %v3350_v34, %v41_v7  ;;  %v2410_v18 = vpack.c.bf16 %v1110_v9, %v1109_v8  ;;  %v1112_v59 = vld [vmem:[%s3919_s1 + $0x428] sm:$0xff]  ;;  %v69_v50 = vld [vmem:[%s3920_s0 + $0x1a0] sm:$0xff] }
  0x84   :  { %1483 = vmatmul.mubr.f32.gmra.mrb[34].mxu0 %v848_v47  ;;  %v850_v56 = vsel %vm562_vm7, %v418_v40, %v706_v13  ;;  %v425_v19 = vadd.f32 %v3338_v26, %v232_v14  ;;  %v242_v20 = vmul.f32 %v3304_v10, %v49_v11  ;;  %v244_v21 = vmul.f32 %v3319_v15, %v51_v12  ;;  %v67_v40 = vld [vmem:[%s3920_s0 + $0x190] sm:$0xff]  ;;  %v66_v11 = vld [vmem:[%s3920_s0 + $0x188] sm:$0xff]  ;;  %v68_v14 = vld [vmem:[%s3920_s0 + $0x198] sm:$0xff] }
  0x85   :  { %1628 = vmatmul.mubr.f32.gmra.mrb[34].mxu1 %v850_v56  ;;  %vm570_vm8 = vcmp.ge.f32.partialorder %v426_v16, 0.0  ;;  %v714_v23 = vmul.f32 0.1, %v426_v16  ;;  %vm572_vm9 = vcmp.ge.f32.partialorder %v428_v17, 0.0  ;;  %v716_v27 = vmul.f32 0.1, %v428_v17  ;;  %2411 = vmatprep.subr.bf16.mxu0 %v2410_v18 }
  0x86   :  { %vm569_vm10 = vcmp.ge.f32.partialorder %v425_v19, 0.0  ;;  %v713_v28 = vmul.f32 0.1, %v425_v19  ;;  %v427_v29 = vadd.f32 %v3357_v31, %v234_v48  ;;  %2439 = vmatprep.subr.bf16.mxu1 %v2410_v18  ;;  %2413 = vmatpush3.bf16.msra.mxu0 %v2410_v18  ;;  %v435_v0 = vadd.f32 %v3309_v46, %v242_v20 }
  0x87   :  { %v858_v33 = vsel %vm570_vm8, %v426_v16, %v714_v23  ;;  %v860_v37 = vsel %vm572_vm9, %v428_v17, %v716_v27  ;;  %2447 = vmatpush3.bf16.msra.mxu1 %v2410_v18  ;;  %v437_v38 = vadd.f32 %v3334_v24, %v244_v21  ;;  %v241_v30 = vmul.f32 %v3336_v25, %v48_v22  ;;  %v76_v16 = vld [vmem:[%s3920_s0 + $0x1d8] sm:$0xff]  ;;  %v78_v17 = vld [vmem:[%s3920_s0 + $0x1e8] sm:$0xff] }
  0x88   :  { %1487 = vmatprep.mubr.f32.mxu0 %v858_v33  ;;  %1632 = vmatprep.mubr.f32.mxu1 %v860_v37  ;;  %v857_v32 = vsel %vm569_vm10, %v425_v19, %v713_v28  ;;  %vm571_vm11 = vcmp.ge.f32.partialorder %v427_v29, 0.0  ;;  %v715_v36 = vmul.f32 0.1, %v427_v29  ;;  %vm579_vm12 = vcmp.ge.f32.partialorder %v435_v0, 0.0 }
  0x89   :  { %1488 = vmatmul.mubr.f32.gmra.mrb[36].mxu0 %v857_v32  ;;  %v723_v39 = vmul.f32 0.1, %v435_v0  ;;  %vm581_vm13 = vcmp.ge.f32.partialorder %v437_v38, 0.0  ;;  %v725_v44 = vmul.f32 0.1, %v437_v38  ;;  %v434_v49 = vadd.f32 %v3338_v26, %v241_v30 }
  0x8a   :  { %v859_v52 = vsel %vm571_vm11, %v427_v29, %v715_v36  ;;  %v243_v53 = vmul.f32 %v3350_v34, %v50_v35  ;;  %v251_v54 = vmul.f32 %v3304_v10, %v58_v41  ;;  %v253_v55 = vmul.f32 %v3319_v15, %v60_v42  ;;  %v75_v29 = vld [vmem:[%s3920_s0 + $0x1d0] sm:$0xff] }
  0x8b   :  { %1633 = vmatmul.mubr.f32.gmra.mrb[36].mxu1 %v859_v52  ;;  %v867_v60 = vsel %vm579_vm12, %v435_v0, %v723_v39  ;;  %v869_v61 = vsel %vm581_vm13, %v437_v38, %v725_v44  ;;  %vm578_vm14 = vcmp.ge.f32.partialorder %v434_v49, 0.0  ;;  %v722_v62 = vmul.f32 0.1, %v434_v49  ;;  %v77_v39 = vld [vmem:[%s3920_s0 + $0x1e0] sm:$0xff]  ;;  %v1113_v44 = vld [vmem:[%s3919_s1 + $0x430] sm:$0xff] }
  0x8c   :  { %1492 = vmatprep.mubr.f32.mxu0 %v867_v60  ;;  %1637 = vmatprep.mubr.f32.mxu1 %v869_v61  ;;  %v436_v63 = vadd.f32 %v3357_v31, %v243_v53  ;;  %v444_v1 = vadd.f32 %v3309_v46, %v251_v54  ;;  %v446_v2 = vadd.f32 %v3334_v24, %v253_v55  ;;  %v85_v55 = vld [vmem:[%s3920_s0 + $0x220] sm:$0xff]  ;;  %v87_v61 = vld [vmem:[%s3920_s0 + $0x230] sm:$0xff] }
  0x8d   :  { %v866_v3 = vsel %vm578_vm14, %v434_v49, %v722_v62  ;;  %v250_v4 = vmul.f32 %v3336_v25, %v57_v51  ;;  %v252_v5 = vmul.f32 %v3350_v34, %v59_v57  ;;  %v2414_v6 = vpack.c.bf16 %v1112_v59, %v1111_v58  ;;  %v1114_v49 = vld [vmem:[%s3919_s1 + $0x438] sm:$0xff] }
  0x8e   :  { %1493 = vmatmul.mubr.f32.gmra.mrb[38].mxu0 %v866_v3  ;;  %vm580_vm15 = vcmp.ge.f32.partialorder %v436_v63, 0.0  ;;  %v724_v7 = vmul.f32 0.1, %v436_v63  ;;  %vm588_vm0 = vcmp.ge.f32.partialorder %v444_v1, 0.0  ;;  %v732_v8 = vmul.f32 0.1, %v444_v1 }
  0x8f   :  { %vm590_vm1 = vcmp.ge.f32.partialorder %v446_v2, 0.0  ;;  %v734_v9 = vmul.f32 0.1, %v446_v2  ;;  %v443_v43 = vadd.f32 %v3338_v26, %v250_v4  ;;  %v445_v45 = vadd.f32 %v3357_v31, %v252_v5  ;;  %2415 = vmatprep.subr.bf16.mxu0 %v2414_v6  ;;  %2440 = vmatprep.subr.bf16.mxu1 %v2414_v6  ;;  %v84_v62 = vld [vmem:[%s3920_s0 + $0x218] sm:$0xff]  ;;  %v86_v3 = vld [vmem:[%s3920_s0 + $0x228] sm:$0xff] }
  0x90   :  { %v868_v12 = vsel %vm580_vm15, %v436_v63, %v724_v7  ;;  %v876_v47 = vsel %vm588_vm0, %v444_v1, %v732_v8  ;;  %2417 = vmatpush3.bf16.msra.mxu0 %v2414_v6  ;;  %2448 = vmatpush3.bf16.msra.mxu1 %v2414_v6  ;;  %v260_v13 = vmul.f32 %v3304_v10, %v67_v40 }
  0x91   :  { %1638 = vmatmul.mubr.f32.gmra.mrb[38].mxu1 %v868_v12  ;;  %1497 = vmatprep.mubr.f32.mxu0 %v876_v47  ;;  %v878_v48 = vsel %vm590_vm1, %v446_v2, %v734_v9  ;;  %vm587_vm2 = vcmp.ge.f32.partialorder %v443_v43, 0.0  ;;  %v731_v18 = vmul.f32 0.1, %v443_v43  ;;  %vm589_vm3 = vcmp.ge.f32.partialorder %v445_v45, 0.0  ;;  %v94_v9 = vld [vmem:[%s3920_s0 + $0x268] sm:$0xff] }
  0x92   :  { %1642 = vmatprep.mubr.f32.mxu1 %v878_v48  ;;  %v733_v56 = vmul.f32 0.1, %v445_v45  ;;  %v453_v19 = vadd.f32 %v3309_v46, %v260_v13  ;;  %v262_v20 = vmul.f32 %v3319_v15, %v69_v50  ;;  %v259_v21 = vmul.f32 %v3336_v25, %v66_v11  ;;  %v93_v48 = vld [vmem:[%s3920_s0 + $0x260] sm:$0xff] }
  0x93   :  { %v875_v22 = vsel %vm587_vm2, %v443_v43, %v731_v18  ;;  %v261_v23 = vmul.f32 %v3350_v34, %v68_v14  ;;  %v269_v27 = vmul.f32 %v3304_v10, %v76_v16  ;;  %v271_v28 = vmul.f32 %v3319_v15, %v78_v17  ;;  %v96_v17 = vld [vmem:[%s3920_s0 + $0x278] sm:$0xff]  ;;  %v95_v18 = vld [vmem:[%s3920_s0 + $0x270] sm:$0xff] }
  0x94   :  { %1498 = vmatmul.mubr.f32.gmra.mrb[40].mxu0 %v875_v22  ;;  %v877_v0 = vsel %vm589_vm3, %v445_v45, %v733_v56  ;;  %vm597_vm4 = vcmp.ge.f32.partialorder %v453_v19, 0.0  ;;  %v741_v33 = vmul.f32 0.1, %v453_v19  ;;  %v455_v37 = vadd.f32 %v3334_v24, %v262_v20  ;;  %v1115_v20 = vld [vmem:[%s3919_s1 + $0x440] sm:$0xff] }
  0x95   :  { %1643 = vmatmul.mubr.f32.gmra.mrb[40].mxu1 %v877_v0  ;;  %v452_v38 = vadd.f32 %v3338_v26, %v259_v21  ;;  %v454_v30 = vadd.f32 %v3357_v31, %v261_v23  ;;  %v462_v35 = vadd.f32 %v3309_v46, %v269_v27  ;;  %v464_v41 = vadd.f32 %v3334_v24, %v271_v28  ;;  %v1116_v21 = vld [vmem:[%s3919_s1 + $0x448] sm:$0xff] }
  0x96   :  { %v885_v42 = vsel %vm597_vm4, %v453_v19, %v741_v33  ;;  %vm599_vm5 = vcmp.ge.f32.partialorder %v455_v37, 0.0  ;;  %v743_v32 = vmul.f32 0.1, %v455_v37  ;;  %v268_v36 = vmul.f32 %v3336_v25, %v75_v29 }
  0x97   :  { %1502 = vmatprep.mubr.f32.mxu0 %v885_v42  ;;  %vm596_vm6 = vcmp.ge.f32.partialorder %v452_v38, 0.0  ;;  %v740_v51 = vmul.f32 0.1, %v452_v38  ;;  %vm598_vm7 = vcmp.ge.f32.partialorder %v454_v30, 0.0  ;;  %v742_v52 = vmul.f32 0.1, %v454_v30 }
  0x98   :  { %v887_v53 = vsel %vm599_vm5, %v455_v37, %v743_v32  ;;  %vm606_vm8 = vcmp.ge.f32.partialorder %v462_v35, 0.0  ;;  %v750_v54 = vmul.f32 0.1, %v462_v35  ;;  %vm608_vm9 = vcmp.ge.f32.partialorder %v464_v41, 0.0  ;;  %v103_v37 = vld [vmem:[%s3920_s0 + $0x2b0] sm:$0xff] }
  0x99   :  { %1647 = vmatprep.mubr.f32.mxu1 %v887_v53  ;;  %v884_v57 = vsel %vm596_vm6, %v452_v38, %v740_v51  ;;  %v886_v58 = vsel %vm598_vm7, %v454_v30, %v742_v52  ;;  %v752_v59 = vmul.f32 0.1, %v464_v41  ;;  %v461_v60 = vadd.f32 %v3338_v26, %v268_v36  ;;  %v105_v38 = vld [vmem:[%s3920_s0 + $0x2c0] sm:$0xff]  ;;  %v102_v52 = vld [vmem:[%s3920_s0 + $0x2a8] sm:$0xff]  ;;  %v104_v53 = vld [vmem:[%s3920_s0 + $0x2b8] sm:$0xff] }
  0x9a   :  { %1503 = vmatmul.mubr.f32.gmra.mrb[42].mxu0 %v884_v57  ;;  %1648 = vmatmul.mubr.f32.gmra.mrb[42].mxu1 %v886_v58  ;;  %v894_v63 = vsel %vm606_vm8, %v462_v35, %v750_v54  ;;  %v270_v1 = vmul.f32 %v3350_v34, %v77_v39  ;;  %v2418_v2 = vpack.c.bf16 %v1114_v49, %v1113_v44 }
  0x9b   :  { %1507 = vmatprep.mubr.f32.mxu0 %v894_v63  ;;  %v896_v4 = vsel %vm608_vm9, %v464_v41, %v752_v59  ;;  %vm605_vm10 = vcmp.ge.f32.partialorder %v461_v60, 0.0  ;;  %v749_v5 = vmul.f32 0.1, %v461_v60  ;;  %v278_v6 = vmul.f32 %v3304_v10, %v85_v55 }
  0x9c   :  { %1652 = vmatprep.mubr.f32.mxu1 %v896_v4  ;;  %v463_v40 = vadd.f32 %v3357_v31, %v270_v1  ;;  %2419 = vmatprep.subr.bf16.mxu0 %v2418_v2  ;;  %v280_v7 = vmul.f32 %v3319_v15, %v87_v61  ;;  %v277_v8 = vmul.f32 %v3336_v25, %v84_v62  ;;  %v112_v1 = vld [vmem:[%s3920_s0 + $0x2f8] sm:$0xff] }
  0x9d   :  { %v893_v43 = vsel %vm605_vm10, %v461_v60, %v749_v5  ;;  %2441 = vmatprep.subr.bf16.mxu1 %v2418_v2  ;;  %2421 = vmatpush3.bf16.msra.mxu0 %v2418_v2  ;;  %v471_v45 = vadd.f32 %v3309_v46, %v278_v6  ;;  %v279_v50 = vmul.f32 %v3350_v34, %v86_v3  ;;  %v111_v3 = vld [vmem:[%s3920_s0 + $0x2f0] sm:$0xff] }
  0x9e   :  { %1508 = vmatmul.mubr.f32.gmra.mrb[44].mxu0 %v893_v43  ;;  %vm607_vm11 = vcmp.ge.f32.partialorder %v463_v40, 0.0  ;;  %v751_v11 = vmul.f32 0.1, %v463_v40  ;;  %2449 = vmatpush3.bf16.msra.mxu1 %v2418_v2  ;;  %v473_v12 = vadd.f32 %v3334_v24, %v280_v7  ;;  %v470_v47 = vadd.f32 %v3338_v26, %v277_v8  ;;  %v114_v2 = vld [vmem:[%s3920_s0 + $0x308] sm:$0xff] }
  0x9f   :  { %vm615_vm12 = vcmp.ge.f32.partialorder %v471_v45, 0.0  ;;  %v759_v13 = vmul.f32 0.1, %v471_v45  ;;  %v472_v14 = vadd.f32 %v3357_v31, %v279_v50  ;;  %v287_v16 = vmul.f32 %v3304_v10, %v94_v9  ;;  %v113_v9 = vld [vmem:[%s3920_s0 + $0x300] sm:$0xff] }
  0xa0   :  { %v895_v56 = vsel %vm607_vm11, %v463_v40, %v751_v11  ;;  %vm617_vm13 = vcmp.ge.f32.partialorder %v473_v12, 0.0  ;;  %v761_v19 = vmul.f32 0.1, %v473_v12  ;;  %vm614_vm14 = vcmp.ge.f32.partialorder %v470_v47, 0.0 }
  0xa1   :  { %1653 = vmatmul.mubr.f32.gmra.mrb[44].mxu1 %v895_v56  ;;  %v903_v22 = vsel %vm615_vm12, %v471_v45, %v759_v13  ;;  %v758_v23 = vmul.f32 0.1, %v470_v47  ;;  %vm616_vm15 = vcmp.ge.f32.partialorder %v472_v14, 0.0  ;;  %v760_v27 = vmul.f32 0.1, %v472_v14  ;;  %v121_v13 = vld [vmem:[%s3920_s0 + $0x340] sm:$0xff] }
  0xa2   :  { %1512 = vmatprep.mubr.f32.mxu0 %v903_v22  ;;  %v905_v28 = vsel %vm617_vm13, %v473_v12, %v761_v19  ;;  %v480_v29 = vadd.f32 %v3309_v46, %v287_v16  ;;  %v289_v0 = vmul.f32 %v3319_v15, %v96_v17  ;;  %v286_v33 = vmul.f32 %v3336_v25, %v93_v48  ;;  %v1117_v12 = vld [vmem:[%s3919_s1 + $0x450] sm:$0xff] }
  0xa3   :  { %1657 = vmatprep.mubr.f32.mxu1 %v905_v28  ;;  %v902_v30 = vsel %vm614_vm14, %v470_v47, %v758_v23  ;;  %v904_v35 = vsel %vm616_vm15, %v472_v14, %v760_v27  ;;  %v288_v41 = vmul.f32 %v3350_v34, %v95_v18  ;;  %v2422_v42 = vpack.c.bf16 %v1116_v21, %v1115_v20  ;;  %v1118_v47 = vld [vmem:[%s3919_s1 + $0x458] sm:$0xff]  ;;  %v123_v23 = vld [vmem:[%s3920_s0 + $0x350] sm:$0xff] }
  0xa4   :  { %1513 = vmatmul.mubr.f32.gmra.mrb[46].mxu0 %v902_v30  ;;  %vm624_vm0 = vcmp.ge.f32.partialorder %v480_v29, 0.0  ;;  %v768_v32 = vmul.f32 0.1, %v480_v29  ;;  %v482_v36 = vadd.f32 %v3334_v24, %v289_v0  ;;  %v479_v39 = vadd.f32 %v3338_v26, %v286_v33 }
  0xa5   :  { %1658 = vmatmul.mubr.f32.gmra.mrb[46].mxu1 %v904_v35  ;;  %v481_v44 = vadd.f32 %v3357_v31, %v288_v41  ;;  %2423 = vmatprep.subr.bf16.mxu0 %v2422_v42  ;;  %v296_v49 = vmul.f32 %v3304_v10, %v103_v37  ;;  %v298_v51 = vmul.f32 %v3319_v15, %v105_v38  ;;  %v120_v37 = vld [vmem:[%s3920_s0 + $0x338] sm:$0xff]  ;;  %v122_v41 = vld [vmem:[%s3920_s0 + $0x348] sm:$0xff] }
  0xa6   :  { %v912_v54 = vsel %vm624_vm0, %v480_v29, %v768_v32  ;;  %vm626_vm1 = vcmp.ge.f32.partialorder %v482_v36, 0.0  ;;  %v770_v55 = vmul.f32 0.1, %v482_v36  ;;  %vm623_vm2 = vcmp.ge.f32.partialorder %v479_v39, 0.0  ;;  %2442 = vmatprep.subr.bf16.mxu1 %v2422_v42  ;;  %2425 = vmatpush3.bf16.msra.mxu0 %v2422_v42  ;;  %v132_v32 = vld [vmem:[%s3920_s0 + $0x398] sm:$0xff] }
  0xa7   :  { %1517 = vmatprep.mubr.f32.mxu0 %v912_v54  ;;  %v767_v57 = vmul.f32 0.1, %v479_v39  ;;  %vm625_vm3 = vcmp.ge.f32.partialorder %v481_v44, 0.0  ;;  %v769_v58 = vmul.f32 0.1, %v481_v44  ;;  %2450 = vmatpush3.bf16.msra.mxu1 %v2422_v42  ;;  %v489_v59 = vadd.f32 %v3309_v46, %v296_v49  ;;  %v130_v42 = vld [vmem:[%s3920_s0 + $0x388] sm:$0xff] }
  0xa8   :  { %v914_v60 = vsel %vm626_vm1, %v482_v36, %v770_v55  ;;  %v491_v61 = vadd.f32 %v3334_v24, %v298_v51  ;;  %v295_v62 = vmul.f32 %v3336_v25, %v102_v52  ;;  %v297_v63 = vmul.f32 %v3350_v34, %v104_v53  ;;  %v129_v53 = vld [vmem:[%s3920_s0 + $0x380] sm:$0xff] }
  0xa9   :  { %1662 = vmatprep.mubr.f32.mxu1 %v914_v60  ;;  %v911_v4 = vsel %vm623_vm2, %v479_v39, %v767_v57  ;;  %v913_v5 = vsel %vm625_vm3, %v481_v44, %v769_v58  ;;  %vm633_vm4 = vcmp.ge.f32.partialorder %v489_v59, 0.0  ;;  %v777_v6 = vmul.f32 0.1, %v489_v59 }
  0xaa   :  { %1518 = vmatmul.mubr.f32.gmra.mrb[48].mxu0 %v911_v4  ;;  %1663 = vmatmul.mubr.f32.gmra.mrb[48].mxu1 %v913_v5  ;;  %vm635_vm5 = vcmp.ge.f32.partialorder %v491_v61, 0.0  ;;  %v779_v40 = vmul.f32 0.1, %v491_v61  ;;  %v488_v7 = vadd.f32 %v3338_v26, %v295_v62  ;;  %v490_v8 = vadd.f32 %v3357_v31, %v297_v63 }
  0xab   :  { %v921_v43 = vsel %vm633_vm4, %v489_v59, %v777_v6  ;;  %v305_v45 = vmul.f32 %v3304_v10, %v112_v1  ;;  %v307_v50 = vmul.f32 %v3319_v15, %v114_v2  ;;  %v304_v11 = vmul.f32 %v3336_v25, %v111_v3  ;;  %v131_v59 = vld [vmem:[%s3920_s0 + $0x390] sm:$0xff] }
  0xac   :  { %1522 = vmatprep.mubr.f32.mxu0 %v921_v43  ;;  %v923_v14 = vsel %vm635_vm5, %v491_v61, %v779_v40  ;;  %vm632_vm6 = vcmp.ge.f32.partialorder %v488_v7, 0.0  ;;  %v776_v16 = vmul.f32 0.1, %v488_v7  ;;  %vm634_vm7 = vcmp.ge.f32.partialorder %v490_v8, 0.0  ;;  %v1119_v40 = vld [vmem:[%s3919_s1 + $0x460] sm:$0xff] }
  0xad   :  { %1667 = vmatprep.mubr.f32.mxu1 %v923_v14  ;;  %v778_v17 = vmul.f32 0.1, %v490_v8  ;;  %v498_v48 = vadd.f32 %v3309_v46, %v305_v45  ;;  %v500_v18 = vadd.f32 %v3334_v24, %v307_v50  ;;  %v497_v56 = vadd.f32 %v3338_v26, %v304_v11 }
  0xae   :  { %v920_v19 = vsel %vm632_vm6, %v488_v7, %v776_v16  ;;  %v306_v20 = vmul.f32 %v3350_v34, %v113_v9  ;;  %v2426_v21 = vpack.c.bf16 %v1118_v47, %v1117_v12  ;;  %v314_v22 = vmul.f32 %v3304_v10, %v121_v13  ;;  %v1120_v7 = vld [vmem:[%s3919_s1 + $0x468] sm:$0xff]  ;;  %v141_v12 = vld [vmem:[%s3920_s0 + $0x3e0] sm:$0xff] }
  0xaf   :  { %1523 = vmatmul.mubr.f32.gmra.mrb[50].mxu0 %v920_v19  ;;  %v922_v27 = vsel %vm634_vm7, %v490_v8, %v778_v17  ;;  %vm642_vm8 = vcmp.ge.f32.partialorder %v498_v48, 0.0  ;;  %v786_v28 = vmul.f32 0.1, %v498_v48  ;;  %vm644_vm9 = vcmp.ge.f32.partialorder %v500_v18, 0.0  ;;  %v139_v8 = vld [vmem:[%s3920_s0 + $0x3d0] sm:$0xff]  ;;  %v138_v47 = vld [vmem:[%s3920_s0 + $0x3c8] sm:$0xff] }
  0xb0   :  { %1668 = vmatmul.mubr.f32.gmra.mrb[50].mxu1 %v922_v27  ;;  %v788_v29 = vmul.f32 0.1, %v500_v18  ;;  %vm641_vm10 = vcmp.ge.f32.partialorder %v497_v56, 0.0  ;;  %v785_v0 = vmul.f32 0.1, %v497_v56  ;;  %v499_v33 = vadd.f32 %v3357_v31, %v306_v20  ;;  %2427 = vmatprep.subr.bf16.mxu0 %v2426_v21 }
  0xb1   :  { %v930_v38 = vsel %vm642_vm8, %v498_v48, %v786_v28  ;;  %2443 = vmatprep.subr.bf16.mxu1 %v2426_v21  ;;  %2429 = vmatpush3.bf16.msra.mxu0 %v2426_v21  ;;  %v507_v30 = vadd.f32 %v3309_v46, %v314_v22  ;;  %v316_v35 = vmul.f32 %v3319_v15, %v123_v23  ;;  %v140_v48 = vld [vmem:[%s3920_s0 + $0x3d8] sm:$0xff] }
  0xb2   :  { %1527 = vmatprep.mubr.f32.mxu0 %v930_v38  ;;  %v932_v36 = vsel %vm644_vm9, %v500_v18, %v788_v29  ;;  %v929_v39 = vsel %vm641_vm10, %v497_v56, %v785_v0  ;;  %vm643_vm11 = vcmp.ge.f32.partialorder %v499_v33, 0.0  ;;  %v787_v44 = vmul.f32 0.1, %v499_v33  ;;  %2451 = vmatpush3.bf16.msra.mxu1 %v2426_v21  ;;  %v148_v23 = vld [vmem:[%s3920_s0 + $0x418] sm:$0xff] }
  0xb3   :  { %1672 = vmatprep.mubr.f32.mxu1 %v932_v36  ;;  %1528 = vmatmul.mubr.f32.gmra.mrb[52].mxu0 %v929_v39  ;;  %vm651_vm12 = vcmp.ge.f32.partialorder %v507_v30, 0.0  ;;  %v795_v49 = vmul.f32 0.1, %v507_v30  ;;  %v509_v51 = vadd.f32 %v3334_v24, %v316_v35  ;;  %v313_v52 = vmul.f32 %v3336_v25, %v120_v37 }
  0xb4   :  { %v931_v54 = vsel %vm643_vm11, %v499_v33, %v787_v44  ;;  %v315_v55 = vmul.f32 %v3350_v34, %v122_v41  ;;  %v323_v57 = vmul.f32 %v3304_v10, %v130_v42  ;;  %v325_v58 = vmul.f32 %v3319_v15, %v132_v32  ;;  %v150_v41 = vld [vmem:[%s3920_s0 + $0x428] sm:$0xff]  ;;  %v147_v42 = vld [vmem:[%s3920_s0 + $0x410] sm:$0xff]  ;;  %v149_v32 = vld [vmem:[%s3920_s0 + $0x420] sm:$0xff] }
  0xb5   :  { %1673 = vmatmul.mubr.f32.gmra.mrb[52].mxu1 %v931_v54  ;;  %v939_v60 = vsel %vm651_vm12, %v507_v30, %v795_v49  ;;  %vm653_vm13 = vcmp.ge.f32.partialorder %v509_v51, 0.0  ;;  %v797_v61 = vmul.f32 0.1, %v509_v51  ;;  %v506_v62 = vadd.f32 %v3338_v26, %v313_v52  ;;  %v1121_v52 = vld [vmem:[%s3919_s1 + $0x470] sm:$0xff]  ;;  %v157_v54 = vld [vmem:[%s3920_s0 + $0x460] sm:$0xff] }
  0xb6   :  { %1532 = vmatprep.mubr.f32.mxu0 %v939_v60  ;;  %v508_v63 = vadd.f32 %v3357_v31, %v315_v55  ;;  %v516_v1 = vadd.f32 %v3309_v46, %v323_v57  ;;  %v518_v2 = vadd.f32 %v3334_v24, %v325_v58  ;;  %v322_v3 = vmul.f32 %v3336_v25, %v129_v53  ;;  %v1122_v53 = vld [vmem:[%s3919_s1 + $0x478] sm:$0xff]  ;;  %v159_v60 = vld [vmem:[%s3920_s0 + $0x470] sm:$0xff] }
  0xb7   :  { %v941_v4 = vsel %vm653_vm13, %v509_v51, %v797_v61  ;;  %vm650_vm14 = vcmp.ge.f32.partialorder %v506_v62, 0.0  ;;  %v794_v5 = vmul.f32 0.1, %v506_v62  ;;  %v324_v6 = vmul.f32 %v3350_v34, %v131_v59  ;;  %v156_v61 = vld [vmem:[%s3920_s0 + $0x458] sm:$0xff] }
  0xb8   :  { %1677 = vmatprep.mubr.f32.mxu1 %v941_v4  ;;  %vm652_vm15 = vcmp.ge.f32.partialorder %v508_v63, 0.0  ;;  %v796_v9 = vmul.f32 0.1, %v508_v63  ;;  %vm660_vm0 = vcmp.ge.f32.partialorder %v516_v1, 0.0  ;;  %v804_v43 = vmul.f32 0.1, %v516_v1 }
  0xb9   :  { %v938_v45 = vsel %vm650_vm14, %v506_v62, %v794_v5  ;;  %vm662_vm1 = vcmp.ge.f32.partialorder %v518_v2, 0.0  ;;  %v806_v50 = vmul.f32 0.1, %v518_v2  ;;  %v515_v11 = vadd.f32 %v3338_v26, %v322_v3 }
  0xba   :  { %1533 = vmatmul.mubr.f32.gmra.mrb[54].mxu0 %v938_v45  ;;  %v940_v13 = vsel %vm652_vm15, %v508_v63, %v796_v9  ;;  %v948_v14 = vsel %vm660_vm0, %v516_v1, %v804_v43  ;;  %v517_v16 = vadd.f32 %v3357_v31, %v324_v6  ;;  %v2430_v17 = vpack.c.bf16 %v1120_v7, %v1119_v40  ;;  %v158_v9 = vld [vmem:[%s3920_s0 + $0x468] sm:$0xff] }
  0xbb   :  { %1678 = vmatmul.mubr.f32.gmra.mrb[54].mxu1 %v940_v13  ;;  %1537 = vmatprep.mubr.f32.mxu0 %v948_v14  ;;  %v950_v18 = vsel %vm662_vm1, %v518_v2, %v806_v50  ;;  %vm659_vm2 = vcmp.ge.f32.partialorder %v515_v11, 0.0  ;;  %v803_v56 = vmul.f32 0.1, %v515_v11  ;;  %v332_v19 = vmul.f32 %v3304_v10, %v139_v8  ;;  %v3707_v14 = vld [vmem:[%s3921_s2 + $0x8] ss:$0 sm:$0xff] }
  0xbc   :  { %1682 = vmatprep.mubr.f32.mxu1 %v950_v18  ;;  %vm661_vm3 = vcmp.ge.f32.partialorder %v517_v16, 0.0  ;;  %v805_v20 = vmul.f32 0.1, %v517_v16  ;;  %2431 = vmatprep.subr.bf16.mxu0 %v2430_v17  ;;  %v334_v21 = vmul.f32 %v3319_v15, %v141_v12  ;;  %v331_v22 = vmul.f32 %v3336_v25, %v138_v47 }
  0xbd   :  { %v947_v27 = vsel %vm659_vm2, %v515_v11, %v803_v56  ;;  %2444 = vmatprep.subr.bf16.mxu1 %v2430_v17  ;;  %2433 = vmatpush3.bf16.msra.mxu0 %v2430_v17  ;;  %v525_v28 = vadd.f32 %v3309_v46, %v332_v19  ;;  %v333_v29 = vmul.f32 %v3350_v34, %v140_v48 }
  0xbe   :  { %1538 = vmatmul.mubr.f32.gmra.mrb[56].mxu0 %v947_v27  ;;  %v949_v0 = vsel %vm661_vm3, %v517_v16, %v805_v20  ;;  %2452 = vmatpush3.bf16.msra.mxu1 %v2430_v17  ;;  %v527_v33 = vadd.f32 %v3334_v24, %v334_v21  ;;  %v524_v37 = vadd.f32 %v3338_v26, %v331_v22  ;;  %v106_v22 = vld [vmem:[%s3920_s0 + $0x2c8] sm:$0xff]  ;;  %v115_v27 = vld [vmem:[%s3920_s0 + $0x310] sm:$0xff] }
  0xbf   :  { %1683 = vmatmul.mubr.f32.gmra.mrb[56].mxu1 %v949_v0  ;;  %vm669_vm4 = vcmp.ge.f32.partialorder %v525_v28, 0.0  ;;  %v813_v38 = vmul.f32 0.1, %v525_v28  ;;  %v526_v30 = vadd.f32 %v3357_v31, %v333_v29  ;;  %v341_v35 = vmul.f32 %v3304_v10, %v148_v23  ;;  %v43_v23 = vld [vmem:[%s3920_s0 + $0xd0] sm:$0xff] }
  0xc0   :  { %vm671_vm5 = vcmp.ge.f32.partialorder %v527_v33, 0.0  ;;  %v815_v36 = vmul.f32 0.1, %v527_v33  ;;  %vm668_vm6 = vcmp.ge.f32.partialorder %v524_v37, 0.0  ;;  %v812_v39 = vmul.f32 0.1, %v524_v37 }
  0xc1   :  { %v957_v44 = vsel %vm669_vm4, %v525_v28, %v813_v38  ;;  %vm670_vm7 = vcmp.ge.f32.partialorder %v526_v30, 0.0  ;;  %v814_v49 = vmul.f32 0.1, %v526_v30  ;;  %v534_v51 = vadd.f32 %v3309_v46, %v341_v35 }
  0xc2   :  { %1542 = vmatprep.mubr.f32.mxu0 %v957_v44  ;;  %v959_v55 = vsel %vm671_vm5, %v527_v33, %v815_v36  ;;  %v956_v57 = vsel %vm668_vm6, %v524_v37, %v812_v39  ;;  %v343_v58 = vmul.f32 %v3319_v15, %v150_v41  ;;  %v340_v59 = vmul.f32 %v3336_v25, %v147_v42  ;;  %v52_v42 = vld [vmem:[%s3920_s0 + $0x118] sm:$0xff] }
  0xc3   :  { %1687 = vmatprep.mubr.f32.mxu1 %v959_v55  ;;  %1543 = vmatmul.mubr.f32.gmra.mrb[58].mxu0 %v956_v57  ;;  %v958_v62 = vsel %vm670_vm7, %v526_v30, %v814_v49  ;;  %vm678_vm8 = vcmp.ge.f32.partialorder %v534_v51, 0.0  ;;  %v822_v63 = vmul.f32 0.1, %v534_v51  ;;  %v342_v1 = vmul.f32 %v3350_v34, %v149_v32  ;;  %v124_v55 = vld [vmem:[%s3920_s0 + $0x358] sm:$0xff]  ;;  %v61_v57 = vld [vmem:[%s3920_s0 + $0x160] sm:$0xff] }
  0xc4   :  { %1688 = vmatmul.mubr.f32.gmra.mrb[58].mxu1 %v958_v62  ;;  %v536_v2 = vadd.f32 %v3334_v24, %v343_v58  ;;  %v533_v3 = vadd.f32 %v3338_v26, %v340_v59  ;;  %v2434_v4 = vpack.c.bf16 %v1122_v53, %v1121_v52  ;;  %v350_v5 = vmul.f32 %v3304_v10, %v157_v54  ;;  %v133_v58 = vld [vmem:[%s3920_s0 + $0x3a0] sm:$0xff] }
  0xc5   :  { %v966_v6 = vsel %vm678_vm8, %v534_v51, %v822_v63  ;;  %v535_v40 = vadd.f32 %v3357_v31, %v342_v1  ;;  %v352_v7 = vmul.f32 %v3319_v15, %v159_v60  ;;  %v349_v8 = vmul.f32 %v3336_v25, %v156_v61  ;;  %v25_v25 = vld [vmem:[%s3920_s0 + $0x40] sm:$0xff] }
  0xc6   :  { %1547 = vmatprep.mubr.f32.mxu0 %v966_v6  ;;  %vm680_vm9 = vcmp.ge.f32.partialorder %v536_v2, 0.0  ;;  %v824_v43 = vmul.f32 0.1, %v536_v2  ;;  %vm677_vm10 = vcmp.ge.f32.partialorder %v533_v3, 0.0  ;;  %v821_v45 = vmul.f32 0.1, %v533_v3  ;;  %2435 = vmatprep.subr.bf16.mxu0 %v2434_v4 }
  0xc7   :  { %vm679_vm11 = vcmp.ge.f32.partialorder %v535_v40, 0.0  ;;  %v823_v50 = vmul.f32 0.1, %v535_v40  ;;  %2445 = vmatprep.subr.bf16.mxu1 %v2434_v4  ;;  %2437 = vmatpush3.bf16.msra.mxu0 %v2434_v4  ;;  %v543_v10 = vadd.f32 %v3309_v46, %v350_v5  ;;  %v545_v15 = vadd.f32 %v3334_v24, %v352_v7  ;;  %v97_v46 = vld [vmem:[%s3920_s0 + $0x280] sm:$0xff]  ;;  %v34_v24 = vld [vmem:[%s3920_s0 + $0x88] sm:$0xff] }
  0xc8   :  { %v968_v11 = vsel %vm680_vm9, %v536_v2, %v824_v43  ;;  %v965_v12 = vsel %vm677_vm10, %v533_v3, %v821_v45  ;;  %2453 = vmatpush3.bf16.msra.mxu1 %v2434_v4  ;;  %v542_v47 = vadd.f32 %v3338_v26, %v349_v8  ;;  %v351_v13 = vmul.f32 %v3350_v34, %v158_v9  ;;  %v3719_v34 = vld [vmem:[%s3922_s3 + $0x8] ss:$0 sm:$0xff] }
  0xc9   :  { %1692 = vmatprep.mubr.f32.mxu1 %v968_v11  ;;  %1548 = vmatmul.mubr.f32.gmra.mrb[60].mxu0 %v965_v12  ;;  %v967_v16 = vsel %vm679_vm11, %v535_v40, %v823_v50  ;;  %vm687_vm12 = vcmp.ge.f32.partialorder %v543_v10, 0.0  ;;  %v831_v26 = vmul.f32 0.1, %v543_v10  ;;  %vm689_vm13 = vcmp.ge.f32.partialorder %v545_v15, 0.0  ;;  %v70_v5 = vld [vmem:[%s3920_s0 + $0x1a8] sm:$0xff]  ;;  %v79_v40 = vld [vmem:[%s3920_s0 + $0x1f0] sm:$0xff] }
  0xca   :  { %1693 = vmatmul.mubr.f32.gmra.mrb[60].mxu1 %v967_v16  ;;  %v833_v17 = vmul.f32 0.1, %v545_v15  ;;  %vm686_vm14 = vcmp.ge.f32.partialorder %v542_v47, 0.0  ;;  %v830_v48 = vmul.f32 0.1, %v542_v47  ;;  %v544_v18 = vadd.f32 %v3357_v31, %v351_v13  ;;  %v142_v6 = vld [vmem:[%s3920_s0 + $0x3e8] sm:$0xff] }
  0xcb   :  { %v975_v56 = vsel %vm687_vm12, %v543_v10, %v831_v26  ;;  %v218_v19 = vmul.f32 %v3707_v14, %v25_v25  ;;  %v290_v20 = vmul.f32 %v3707_v14, %v97_v46  ;;  %v227_v21 = vmul.f32 %v3707_v14, %v34_v24  ;;  %v151_v12 = vld [vmem:[%s3920_s0 + $0x430] sm:$0xff] }
  0xcc   :  { %1552 = vmatprep.mubr.f32.mxu0 %v975_v56  ;;  %v977_v31 = vsel %vm689_vm13, %v545_v15, %v833_v17  ;;  %v974_v28 = vsel %vm686_vm14, %v542_v47, %v830_v48  ;;  %vm688_vm15 = vcmp.ge.f32.partialorder %v544_v18, 0.0  ;;  %v832_v29 = vmul.f32 0.1, %v544_v18  ;;  %v88_v56 = vld [vmem:[%s3920_s0 + $0x238] sm:$0xff] }
  0xcd   :  { %1697 = vmatprep.mubr.f32.mxu1 %v977_v31  ;;  %1553 = vmatmul.mubr.f32.gmra.mrb[62].mxu0 %v974_v28  ;;  %v411_v0 = vadd.f32 %v3719_v34, %v218_v19  ;;  %v483_v33 = vadd.f32 %v3719_v34, %v290_v20  ;;  %v420_v37 = vadd.f32 %v3719_v34, %v227_v21  ;;  %v160_v19 = vld [vmem:[%s3920_s0 + $0x478] sm:$0xff] }
  0xce   :  { %v976_v38 = vsel %vm688_vm15, %v544_v18, %v832_v29  ;;  %v299_v30 = vmul.f32 %v3707_v14, %v106_v22  ;;  %v236_v35 = vmul.f32 %v3707_v14, %v43_v23  ;;  %v308_v41 = vmul.f32 %v3707_v14, %v115_v27 }
  0xcf   :  { %1698 = vmatmul.mubr.f32.gmra.mrb[62].mxu1 %v976_v38  ;;  %vm555_vm0 = vcmp.ge.f32.partialorder %v411_v0, 0.0  ;;  %v699_v32 = vmul.f32 0.1, %v411_v0  ;;  %vm627_vm1 = vcmp.ge.f32.partialorder %v483_v33, 0.0  ;;  %v771_v36 = vmul.f32 0.1, %v483_v33 }
  0xd0   :  { %vm564_vm2 = vcmp.ge.f32.partialorder %v420_v37, 0.0  ;;  %v708_v39 = vmul.f32 0.1, %v420_v37  ;;  %v492_v44 = vadd.f32 %v3719_v34, %v299_v30  ;;  %v429_v49 = vadd.f32 %v3719_v34, %v236_v35 }
  0xd1   :  { %v843_v51 = vsel %vm555_vm0, %v411_v0, %v699_v32  ;;  %v915_v52 = vsel %vm627_vm1, %v483_v33, %v771_v36  ;;  %v501_v53 = vadd.f32 %v3719_v34, %v308_v41  ;;  %v245_v54 = vmul.f32 %v3707_v14, %v52_v42 }
  0xd2   :  { %2254 = vmatprep.mubr.f32.mxu0 %v843_v51  ;;  %2266 = vmatprep.mubr.f32.mxu1 %v915_v52  ;;  %v852_v59 = vsel %vm564_vm2, %v420_v37, %v708_v39  ;;  %vm636_vm3 = vcmp.ge.f32.partialorder %v492_v44, 0.0  ;;  %v780_v60 = vmul.f32 0.1, %v492_v44  ;;  %vm573_vm4 = vcmp.ge.f32.partialorder %v429_v49, 0.0 }
  0xd3   :  { %2255 = vmatmul.mubr.f32.vlgmr.msra.gmra.mrb[64].mxu0 %v852_v59  ;;  %v717_v61 = vmul.f32 0.1, %v429_v49  ;;  %vm645_vm5 = vcmp.ge.f32.partialorder %v501_v53, 0.0  ;;  %v789_v62 = vmul.f32 0.1, %v501_v53  ;;  %v438_v63 = vadd.f32 %v3719_v34, %v245_v54 }
  0xd4   :  { %v924_v1 = vsel %vm636_vm3, %v492_v44, %v780_v60  ;;  %v317_v2 = vmul.f32 %v3707_v14, %v124_v55  ;;  %v254_v3 = vmul.f32 %v3707_v14, %v61_v57  ;;  %v326_v4 = vmul.f32 %v3707_v14, %v133_v58 }
  0xd5   :  { %2267 = vmatmul.mubr.f32.vlgmr.msra.gmra.mrb[64].mxu1 %v924_v1  ;;  %v861_v7 = vsel %vm573_vm4, %v429_v49, %v717_v61  ;;  %v933_v8 = vsel %vm645_vm5, %v501_v53, %v789_v62  ;;  %vm582_vm6 = vcmp.ge.f32.partialorder %v438_v63, 0.0  ;;  %v726_v9 = vmul.f32 0.1, %v438_v63 }
  0xd6   :  { %2257 = vmatprep.mubr.f32.mxu0 %v861_v7  ;;  %2269 = vmatprep.mubr.f32.mxu1 %v933_v8  ;;  %v510_v43 = vadd.f32 %v3719_v34, %v317_v2  ;;  %v447_v45 = vadd.f32 %v3719_v34, %v254_v3  ;;  %v519_v50 = vadd.f32 %v3719_v34, %v326_v4 }
  0xd7   :  { %v870_v10 = vsel %vm582_vm6, %v438_v63, %v726_v9  ;;  %v263_v15 = vmul.f32 %v3707_v14, %v70_v5  ;;  %v335_v25 = vmul.f32 %v3707_v14, %v142_v6  ;;  %v272_v11 = vmul.f32 %v3707_v14, %v79_v40 }
  0xd8   :  { %2258 = vmatmul.mubr.f32.gmra.mrb[66].mxu0 %v870_v10  ;;  %vm654_vm7 = vcmp.ge.f32.partialorder %v510_v43, 0.0  ;;  %v798_v47 = vmul.f32 0.1, %v510_v43  ;;  %vm591_vm8 = vcmp.ge.f32.partialorder %v447_v45, 0.0  ;;  %v735_v13 = vmul.f32 0.1, %v447_v45 }
  0xd9   :  { %vm663_vm9 = vcmp.ge.f32.partialorder %v519_v50, 0.0  ;;  %v807_v46 = vmul.f32 0.1, %v519_v50  ;;  %v456_v24 = vadd.f32 %v3719_v34, %v263_v15  ;;  %v528_v16 = vadd.f32 %v3719_v34, %v335_v25 }
  0xda   :  { %v942_v26 = vsel %vm654_vm7, %v510_v43, %v798_v47  ;;  %v879_v17 = vsel %vm591_vm8, %v447_v45, %v735_v13  ;;  %v465_v48 = vadd.f32 %v3719_v34, %v272_v11  ;;  %v344_v18 = vmul.f32 %v3707_v14, %v151_v12 }
  0xdb   :  { %2270 = vmatmul.mubr.f32.gmra.mrb[66].mxu1 %v942_v26  ;;  %2260 = vmatprep.mubr.f32.mxu0 %v879_v17  ;;  %v951_v20 = vsel %vm663_vm9, %v519_v50, %v807_v46  ;;  %vm600_vm10 = vcmp.ge.f32.partialorder %v456_v24, 0.0  ;;  %v744_v21 = vmul.f32 0.1, %v456_v24  ;;  %vm672_vm11 = vcmp.ge.f32.partialorder %v528_v16, 0.0 }
  0xdc   :  { %2272 = vmatprep.mubr.f32.mxu1 %v951_v20  ;;  %v816_v22 = vmul.f32 0.1, %v528_v16  ;;  %vm609_vm12 = vcmp.ge.f32.partialorder %v465_v48, 0.0  ;;  %v753_v23 = vmul.f32 0.1, %v465_v48  ;;  %v537_v27 = vadd.f32 %v3719_v34, %v344_v18 }
  0xdd   :  { %v888_v31 = vsel %vm600_vm10, %v456_v24, %v744_v21  ;;  %v281_v28 = vmul.f32 %v3707_v14, %v88_v56  ;;  %v353_v29 = vmul.f32 %v3707_v14, %v160_v19 }
  0xde   :  { %2261 = vmatmul.mubr.f32.gmra.mrb[68].mxu0 %v888_v31  ;;  %v960_v0 = vsel %vm672_vm11, %v528_v16, %v816_v22  ;;  %v897_v33 = vsel %vm609_vm12, %v465_v48, %v753_v23  ;;  %vm681_vm13 = vcmp.ge.f32.partialorder %v537_v27, 0.0  ;;  %v825_v37 = vmul.f32 0.1, %v537_v27 }
  0xdf   :  { %2273 = vmatmul.mubr.f32.gmra.mrb[68].mxu1 %v960_v0  ;;  %2263 = vmatprep.mubr.f32.mxu0 %v897_v33  ;;  %v474_v38 = vadd.f32 %v3719_v34, %v281_v28  ;;  %v546_v30 = vadd.f32 %v3719_v34, %v353_v29 }
  0xe0   :  { %v969_v35 = vsel %vm681_vm13, %v537_v27, %v825_v37 }
  0xe1   :  { %2275 = vmatprep.mubr.f32.mxu1 %v969_v35  ;;  %vm618_vm14 = vcmp.ge.f32.partialorder %v474_v38, 0.0  ;;  %v762_v41 = vmul.f32 0.1, %v474_v38  ;;  %vm690_vm15 = vcmp.ge.f32.partialorder %v546_v30, 0.0  ;;  %v834_v42 = vmul.f32 0.1, %v546_v30 }
  0xe3   :  { %v906_v32 = vsel %vm618_vm14, %v474_v38, %v762_v41  ;;  %v978_v36 = vsel %vm690_vm15, %v546_v30, %v834_v42 }
  0xe4   :  { %2264 = vmatmul.mubr.f32.gmra.mrb[70].mxu0 %v906_v32  ;;  %2276 = vmatmul.mubr.f32.gmra.mrb[70].mxu1 %v978_v36 }
  0xf8   :  { %v1902_v14 = vpop.f32.mrb[0].mxu0 }
  0xf9   :  { %v1982_v39 = vpop.f32.mrb[0].mxu1  ;;  %v1903_v44 = vpop.f32.mrb[1].mxu0 }
  0xfa   :  { %v1904_v49 = vadd.f32 %v1903_v44, %v1902_v14  ;;  %v1983_v51 = vpop.f32.mrb[1].mxu1 }
  0xfb   :  { %v1984_v52 = vadd.f32 %v1983_v51, %v1982_v39 }
  0xfc   :  { %v1905_v53 = vpop.f32.mrb[2].mxu0 }
  0xfd   :  { %v3793_v54 = vadd.f32 %v1984_v52, %v1904_v49  ;;  %v1985_v34 = vpop.f32.mrb[2].mxu1  ;;  %v1906_v55 = vpop.f32.mrb[3].mxu0 }
  0xfe   :  { %v1907_v57 = vadd.f32 %v1906_v55, %v1905_v53  ;;  %v1986_v58 = vpop.f32.mrb[3].mxu1 }
  0xff   :  { %v1987_v59 = vadd.f32 %v1986_v58, %v1985_v34 }
 0x100   :  { %v1908_v60 = vpop.f32.mrb[4].mxu0 }
 0x101   :  { %v3795_v61 = vadd.f32 %v1987_v59, %v1907_v57  ;;  %v1988_v62 = vpop.f32.mrb[4].mxu1  ;;  %v1909_v63 = vpop.f32.mrb[5].mxu0 }
 0x102   :  { %v1910_v1 = vadd.f32 %v1909_v63, %v1908_v60  ;;  %v1989_v2 = vpop.f32.mrb[5].mxu1 }
 0x103   :  { %v1990_v3 = vadd.f32 %v1989_v2, %v1988_v62 }
 0x105   :  { %v3797_v4 = vadd.f32 %v1990_v3, %v1910_v1 }
 0x106   :  { %v1911_v5 = vpop.f32.mrb[6].mxu0  ;;  %v1991_v6 = vpop.f32.mrb[6].mxu1 }
 0x107   :  { %v1912_v40 = vpop.f32.mrb[7].mxu0  ;;  %v1992_v7 = vpop.f32.mrb[7].mxu1 }
 0x108   :  { %v1913_v8 = vadd.f32 %v1912_v40, %v1911_v5  ;;  %v1993_v9 = vadd.f32 %v1992_v7, %v1991_v6 }
 0x10a   :  { %v3799_v43 = vadd.f32 %v1993_v9, %v1913_v8 }
 0x10b   :  { %v1914_v45 = vpop.f32.mrb[8].mxu0 }
 0x10c   :  { %v1915_v50 = vpop.f32.mrb[9].mxu0  ;;  %v1994_v10 = vpop.f32.mrb[8].mxu1 }
 0x10d   :  { %v1916_v15 = vadd.f32 %v1915_v50, %v1914_v45  ;;  %v1995_v25 = vpop.f32.mrb[9].mxu1 }
 0x10e   :  { %v1996_v11 = vadd.f32 %v1995_v25, %v1994_v10 }
 0x110   :  { %v3801_v12 = vadd.f32 %v1996_v11, %v1916_v15 }
 0x112   :  { %v1917_v47 = vpop.f32.mrb[10].mxu0 }
 0x113   :  { %v1997_v13 = vpop.f32.mrb[10].mxu1  ;;  %v1918_v46 = vpop.f32.mrb[11].mxu0 }
 0x114   :  { %v1919_v24 = vadd.f32 %v1918_v46, %v1917_v47  ;;  %v1998_v16 = vpop.f32.mrb[11].mxu1 }
 0x115   :  { %v1999_v26 = vadd.f32 %v1998_v16, %v1997_v13 }
 0x117   :  { %v3803_v17 = vadd.f32 %v1999_v26, %v1919_v24  ;;  %v1920_v48 = vpop.f32.mrb[12].mxu0 }
 0x118   :  { %v2000_v18 = vpop.f32.mrb[12].mxu1  ;;  %v1921_v56 = vpop.f32.mrb[13].mxu0 }
 0x119   :  { %v1922_v19 = vadd.f32 %v1921_v56, %v1920_v48  ;;  %v2001_v20 = vpop.f32.mrb[13].mxu1 }
 0x11a   :  { %v2002_v21 = vadd.f32 %v2001_v20, %v2000_v18 }
 0x11c   :  { %v3805_v22 = vadd.f32 %v2002_v21, %v1922_v19 }
 0x11d   :  { %v1923_v23 = vpop.f32.mrb[14].mxu0  ;;  %v2003_v27 = vpop.f32.mrb[14].mxu1 }
 0x11e   :  { %v1924_v31 = vpop.f32.mrb[15].mxu0  ;;  %v2004_v28 = vpop.f32.mrb[15].mxu1 }
 0x11f   :  { %v1925_v29 = vadd.f32 %v1924_v31, %v1923_v23  ;;  %v2005_v0 = vadd.f32 %v2004_v28, %v2003_v27 }
 0x121   :  { %v3807_v33 = vadd.f32 %v2005_v0, %v1925_v29 }
 0x123   :  { %v1926_v37 = vpop.f32.mrb[16].mxu0 }
 0x124   :  { %v1927_v38 = vpop.f32.mrb[17].mxu0 }
 0x125   :  { %v2006_v30 = vpop.f32.mrb[16].mxu1  ;;  %v1928_v35 = vadd.f32 %v1927_v38, %v1926_v37 }
 0x126   :  { %v2007_v41 = vpop.f32.mrb[17].mxu1 }
 0x127   :  { %v2008_v42 = vadd.f32 %v2007_v41, %v2006_v30 }
 0x128   :  { %v1929_v32 = vpop.f32.mrb[18].mxu0 }
 0x129   :  { %v3809_v36 = vadd.f32 %v2008_v42, %v1928_v35  ;;  %v2009_v14 = vpop.f32.mrb[18].mxu1  ;;  %v1930_v39 = vpop.f32.mrb[19].mxu0 }
 0x12a   :  { %v1931_v44 = vadd.f32 %v1930_v39, %v1929_v32  ;;  %v2010_v49 = vpop.f32.mrb[19].mxu1 }
 0x12b   :  { %v2011_v51 = vadd.f32 %v2010_v49, %v2009_v14 }
 0x12d   :  { %v3811_v52 = vadd.f32 %v2011_v51, %v1931_v44 }
 0x12e   :  { %v1932_v53 = vpop.f32.mrb[20].mxu0 }
 0x12f   :  { %v2012_v34 = vpop.f32.mrb[20].mxu1  ;;  %v1933_v55 = vpop.f32.mrb[21].mxu0 }
 0x130   :  { %v1934_v57 = vadd.f32 %v1933_v55, %v1932_v53  ;;  %v2013_v58 = vpop.f32.mrb[21].mxu1 }
 0x131   :  { %v2014_v59 = vadd.f32 %v2013_v58, %v2012_v34 }
 0x133   :  { %v3813_v60 = vadd.f32 %v2014_v59, %v1934_v57 }
 0x134   :  { %v1935_v62 = vpop.f32.mrb[22].mxu0  ;;  %v2015_v63 = vpop.f32.mrb[22].mxu1 }
 0x135   :  { %v1936_v1 = vpop.f32.mrb[23].mxu0  ;;  %v2016_v2 = vpop.f32.mrb[23].mxu1 }
 0x136   :  { %v1937_v3 = vadd.f32 %v1936_v1, %v1935_v62  ;;  %v2017_v5 = vadd.f32 %v2016_v2, %v2015_v63 }
 0x138   :  { %v3815_v6 = vadd.f32 %v2017_v5, %v1937_v3  ;;  %v1938_v40 = vpop.f32.mrb[24].mxu0 }
 0x139   :  { %v1939_v7 = vpop.f32.mrb[25].mxu0 }
 0x13a   :  { %v1940_v8 = vadd.f32 %v1939_v7, %v1938_v40 }
 0x13c   :  { %v2018_v9 = vpop.f32.mrb[24].mxu1 }
 0x13d   :  { %v2019_v45 = vpop.f32.mrb[25].mxu1 }
 0x13e   :  { %v2020_v50 = vadd.f32 %v2019_v45, %v2018_v9 }
 0x13f   :  { %v1941_v15 = vpop.f32.mrb[26].mxu0 }
 0x140   :  { %v3817_v10 = vadd.f32 %v2020_v50, %v1940_v8  ;;  %v2021_v25 = vpop.f32.mrb[26].mxu1  ;;  %v1942_v11 = vpop.f32.mrb[27].mxu0 }
 0x141   :  { %v2022_v47 = vpop.f32.mrb[27].mxu1  ;;  %v1943_v13 = vadd.f32 %v1942_v11, %v1941_v15 }
 0x142   :  { %v2023_v46 = vadd.f32 %v2022_v47, %v2021_v25 }
 0x144   :  { %v3819_v24 = vadd.f32 %v2023_v46, %v1943_v13 }
 0x145   :  { %v1944_v16 = vpop.f32.mrb[28].mxu0 }
 0x146   :  { %v1945_v26 = vpop.f32.mrb[29].mxu0  ;;  %v2024_v48 = vpop.f32.mrb[28].mxu1 }
 0x147   :  { %v1946_v18 = vadd.f32 %v1945_v26, %v1944_v16  ;;  %v2025_v56 = vpop.f32.mrb[29].mxu1 }
 0x148   :  { %v2026_v19 = vadd.f32 %v2025_v56, %v2024_v48 }
 0x14a   :  { %v3821_v20 = vadd.f32 %v2026_v19, %v1946_v18 }
 0x14b   :  { %v1947_v21 = vpop.f32.mrb[30].mxu0 }
 0x14c   :  { %v2027_v23 = vpop.f32.mrb[30].mxu1  ;;  %v1948_v27 = vpop.f32.mrb[31].mxu0 }
 0x14d   :  { %v1949_v31 = vadd.f32 %v1948_v27, %v1947_v21  ;;  %v2028_v28 = vpop.f32.mrb[31].mxu1 }
 0x14e   :  { %v2029_v29 = vadd.f32 %v2028_v28, %v2027_v23 }
 0x150   :  { %v3823_v0 = vadd.f32 %v2029_v29, %v1949_v31 }
 0x153   :  { %v2062_v37 = vpop.f32.mrb[32].mxu0 }
 0x154   :  { %v2142_v38 = vpop.f32.mrb[32].mxu1  ;;  %v2063_v30 = vpop.f32.mrb[33].mxu0 }
 0x155   :  { %v2064_v35 = vadd.f32 %v2063_v30, %v2062_v37  ;;  %v2143_v41 = vpop.f32.mrb[33].mxu1 }
 0x156   :  { %v2144_v42 = vadd.f32 %v2143_v41, %v2142_v38 }
 0x157   :  { %v1480_v32 = vadd.f32 %v2064_v35, %v3793_v54  ;;  %v2065_v14 = vpop.f32.mrb[34].mxu0 }
 0x158   :  { %v2145_v39 = vpop.f32.mrb[34].mxu1  ;;  %v2066_v44 = vpop.f32.mrb[35].mxu0 }
 0x159   :  { %v2067_v49 = vadd.f32 %v2066_v44, %v2065_v14  ;;  %v2146_v51 = vpop.f32.mrb[35].mxu1  ;;  %v3826_v53 = vadd.f32 %v2144_v42, %v1480_v32 }
 0x15a   :  { %v2147_v34 = vadd.f32 %v2146_v51, %v2145_v39 }
 0x15b   :  { %v1485_v55 = vadd.f32 %v2067_v49, %v3795_v61 }
 0x15c   :  { %v2068_v57 = vpop.f32.mrb[36].mxu0 }
 0x15d   :  { %v2069_v58 = vpop.f32.mrb[37].mxu0  ;;  %v3829_v59 = vadd.f32 %v2147_v34, %v1485_v55 }
 0x15e   :  { %v2148_v62 = vpop.f32.mrb[36].mxu1  ;;  %v2070_v63 = vadd.f32 %v2069_v58, %v2068_v57 }
 0x15f   :  { %v2149_v1 = vpop.f32.mrb[37].mxu1 }
 0x160   :  { %v1490_v2 = vadd.f32 %v2070_v63, %v3797_v4  ;;  %v2150_v54 = vadd.f32 %v2149_v1, %v2148_v62 }
 0x161   :  { %v2071_v3 = vpop.f32.mrb[38].mxu0 }
 0x162   :  { %v2072_v5 = vpop.f32.mrb[39].mxu0  ;;  %v3832_v40 = vadd.f32 %v2150_v54, %v1490_v2 }
 0x163   :  { %v2073_v7 = vadd.f32 %v2072_v5, %v2071_v3 }
 0x164   :  { %v2151_v8 = vpop.f32.mrb[38].mxu1 }
 0x165   :  { %v1495_v9 = vadd.f32 %v2073_v7, %v3799_v43  ;;  %v2152_v45 = vpop.f32.mrb[39].mxu1 }
 0x166   :  { %v2153_v61 = vadd.f32 %v2152_v45, %v2151_v8 }
 0x167   :  { %v2074_v50 = vpop.f32.mrb[40].mxu0 }
 0x168   :  { %v2154_v15 = vpop.f32.mrb[40].mxu1  ;;  %v2075_v25 = vpop.f32.mrb[41].mxu0  ;;  %v3835_v11 = vadd.f32 %v2153_v61, %v1495_v9 }
 0x169   :  { %v2076_v47 = vadd.f32 %v2075_v25, %v2074_v50  ;;  %v2155_v13 = vpop.f32.mrb[41].mxu1 }
 0x16a   :  { %v2156_v46 = vadd.f32 %v2155_v13, %v2154_v15 }
 0x16b   :  { %v1500_v4 = vadd.f32 %v2076_v47, %v3801_v12 }
 0x16d   :  { %v2077_v16 = vpop.f32.mrb[42].mxu0  ;;  %v2157_v26 = vpop.f32.mrb[42].mxu1  ;;  %v3838_v48 = vadd.f32 %v2156_v46, %v1500_v4 }
 0x16e   :  { %v2078_v18 = vpop.f32.mrb[43].mxu0  ;;  %v2158_v56 = vpop.f32.mrb[43].mxu1 }
 0x16f   :  { %v2079_v19 = vadd.f32 %v2078_v18, %v2077_v16  ;;  %v2159_v43 = vadd.f32 %v2158_v56, %v2157_v26 }
 0x171   :  { %v1505_v21 = vadd.f32 %v2079_v19, %v3803_v17  ;;  %v2080_v23 = vpop.f32.mrb[44].mxu0 }
 0x172   :  { %v2081_v27 = vpop.f32.mrb[45].mxu0 }
 0x173   :  { %v2082_v31 = vadd.f32 %v2081_v27, %v2080_v23  ;;  %v3841_v28 = vadd.f32 %v2159_v43, %v1505_v21 }
 0x174   :  { %v2160_v29 = vpop.f32.mrb[44].mxu1 }
 0x175   :  { %v1510_v37 = vadd.f32 %v2082_v31, %v3805_v22  ;;  %v2161_v38 = vpop.f32.mrb[45].mxu1 }
 0x176   :  { %v2162_v12 = vadd.f32 %v2161_v38, %v2160_v29 }
 0x177   :  { %v2083_v30 = vpop.f32.mrb[46].mxu0 }
 0x178   :  { %v2163_v35 = vpop.f32.mrb[46].mxu1  ;;  %v2084_v41 = vpop.f32.mrb[47].mxu0  ;;  %v3844_v42 = vadd.f32 %v2162_v12, %v1510_v37 }
 0x179   :  { %v2085_v32 = vadd.f32 %v2084_v41, %v2083_v30  ;;  %v2164_v14 = vpop.f32.mrb[47].mxu1 }
 0x17a   :  { %v2165_v39 = vadd.f32 %v2164_v14, %v2163_v35 }
 0x17b   :  { %v1515_v17 = vadd.f32 %v2085_v32, %v3807_v33 }
 0x17d   :  { %v2086_v44 = vpop.f32.mrb[48].mxu0  ;;  %v2166_v49 = vpop.f32.mrb[48].mxu1  ;;  %v3847_v51 = vadd.f32 %v2165_v39, %v1515_v17 }
 0x17e   :  { %v2087_v34 = vpop.f32.mrb[49].mxu0  ;;  %v2167_v55 = vpop.f32.mrb[49].mxu1 }
 0x17f   :  { %v2088_v57 = vadd.f32 %v2087_v34, %v2086_v44  ;;  %v2168_v22 = vadd.f32 %v2167_v55, %v2166_v49 }
 0x181   :  { %v1520_v58 = vadd.f32 %v2088_v57, %v3809_v36 }
 0x182   :  { %v2089_v62 = vpop.f32.mrb[50].mxu0 }
 0x183   :  { %v2169_v63 = vpop.f32.mrb[50].mxu1  ;;  %v2090_v1 = vpop.f32.mrb[51].mxu0  ;;  %v3850_v2 = vadd.f32 %v2168_v22, %v1520_v58 }
 0x184   :  { %v2091_v54 = vadd.f32 %v2090_v1, %v2089_v62  ;;  %v2170_v3 = vpop.f32.mrb[51].mxu1 }
 0x185   :  { %v2171_v5 = vadd.f32 %v2170_v3, %v2169_v63 }
 0x186   :  { %v1525_v33 = vadd.f32 %v2091_v54, %v3811_v52  ;;  %v2092_v7 = vpop.f32.mrb[52].mxu0 }
 0x187   :  { %v2093_v8 = vpop.f32.mrb[53].mxu0 }
 0x188   :  { %v2172_v9 = vpop.f32.mrb[52].mxu1  ;;  %v2094_v45 = vadd.f32 %v2093_v8, %v2092_v7  ;;  %v1670_v61 = vadd.f32 %v2171_v5, %v1525_v33 }
 0x189   :  { %v2173_v50 = vpop.f32.mrb[53].mxu1 }
 0x18a   :  { %v1530_v15 = vadd.f32 %v2094_v45, %v3813_v60  ;;  %v2174_v25 = vadd.f32 %v2173_v50, %v2172_v9 }
 0x18c   :  { %v3854_v36 = vadd.f32 %v2174_v25, %v1530_v15 }
 0x18d   :  { %v2095_v47 = vpop.f32.mrb[54].mxu0 }
 0x18e   :  { %v2175_v13 = vpop.f32.mrb[54].mxu1  ;;  %v2096_v46 = vpop.f32.mrb[55].mxu0 }
 0x18f   :  { %v2097_v4 = vadd.f32 %v2096_v46, %v2095_v47  ;;  %v2176_v16 = vpop.f32.mrb[55].mxu1 }
 0x190   :  { %v2177_v26 = vadd.f32 %v2176_v16, %v2175_v13 }
 0x191   :  { %v1535_v18 = vadd.f32 %v2097_v4, %v3815_v6  ;;  %v2098_v52 = vpop.f32.mrb[56].mxu0 }
 0x192   :  { %v2178_v56 = vpop.f32.mrb[56].mxu1  ;;  %v2099_v19 = vpop.f32.mrb[57].mxu0 }
 0x193   :  { %v2100_v43 = vadd.f32 %v2099_v19, %v2098_v52  ;;  %v2179_v21 = vpop.f32.mrb[57].mxu1  ;;  %v1680_v23 = vadd.f32 %v2177_v26, %v1535_v18 }
 0x194   :  { %v2180_v27 = vadd.f32 %v2179_v21, %v2178_v56 }
 0x195   :  { %v1540_v60 = vadd.f32 %v2100_v43, %v3817_v10 }
 0x196   :  { %v2101_v31 = vpop.f32.mrb[58].mxu0 }
 0x197   :  { %v2181_v29 = vpop.f32.mrb[58].mxu1  ;;  %v2102_v37 = vpop.f32.mrb[59].mxu0  ;;  %v1685_v38 = vadd.f32 %v2180_v27, %v1540_v60 }
 0x198   :  { %v2103_v12 = vadd.f32 %v2102_v37, %v2101_v31  ;;  %v2182_v30 = vpop.f32.mrb[59].mxu1 }
 0x199   :  { %v2183_v35 = vadd.f32 %v2182_v30, %v2181_v29 }
 0x19a   :  { %v1545_v41 = vadd.f32 %v2103_v12, %v3819_v24 }
 0x19c   :  { %v2104_v32 = vpop.f32.mrb[60].mxu0  ;;  %v1690_v6 = vadd.f32 %v2183_v35, %v1545_v41 }
 0x19d   :  { %v2184_v14 = vpop.f32.mrb[60].mxu1  ;;  %v2105_v39 = vpop.f32.mrb[61].mxu0 }
 0x19e   :  { %v2106_v17 = vadd.f32 %v2105_v39, %v2104_v32  ;;  %v2185_v44 = vpop.f32.mrb[61].mxu1 }
 0x19f   :  { %v2186_v49 = vadd.f32 %v2185_v44, %v2184_v14 }
 0x1a0   :  { %v1550_v34 = vadd.f32 %v2106_v17, %v3821_v20  ;;  %v2107_v55 = vpop.f32.mrb[62].mxu0 }
 0x1a1   :  { %v2108_v10 = vpop.f32.mrb[63].mxu0 }
 0x1a2   :  { %v2187_v57 = vpop.f32.mrb[62].mxu1  ;;  %v2109_v22 = vadd.f32 %v2108_v10, %v2107_v55  ;;  %v1695_v58 = vadd.f32 %v2186_v49, %v1550_v34 }
 0x1a3   :  { %v2188_v62 = vpop.f32.mrb[63].mxu1 }
 0x1a4   :  { %v1555_v63 = vadd.f32 %v2109_v22, %v3823_v0  ;;  %v2189_v1 = vadd.f32 %v2188_v62, %v2187_v57 }
 0x1a6   :  { %v2256_v54 = vpop.f32.mrb[64].mxu0  ;;  %v1700_v24 = vadd.f32 %v2189_v1, %v1555_v63 }
 0x1a7   :  { %v1775_v3 = vadd.f32 %v2256_v54, %v3829_v59  ;;  %v1769_v5 = vpop.f32.mrb[65].mxu0 }
 0x1a8   :  { %v2268_v33 = vpop.f32.mrb[64].mxu1  ;;  %v1770_v7 = vadd.f32 %v1769_v5, %v3826_v53 }
 0x1a9   :  { %1849 = vst [vmem:[%s3923_s4 + $0x8] sm:$0xff] %v1775_v3  ;;  %v1815_v20 = vadd.f32 %v2268_v33, %v1670_v61  ;;  %v1809_v8 = vpop.f32.mrb[65].mxu1 }
 0x1aa   :  { %1848 = vst [vmem:[%s3923_s4] sm:$0xff] %v1770_v7  ;;  %v1810_v0 = vadd.f32 %v1809_v8, %v3850_v2 }
 0x1ab   :  { %1857 = vst [vmem:[%s3923_s4 + $0x48] sm:$0xff] %v1815_v20  ;;  %v2259_v59 = vpop.f32.mrb[66].mxu0 }
 0x1ac   :  { %1856 = vst [vmem:[%s3923_s4 + $0x40] sm:$0xff] %v1810_v0  ;;  %v1785_v53 = vadd.f32 %v2259_v59, %v3835_v11  ;;  %v1779_v9 = vpop.f32.mrb[67].mxu0 }
 0x1ad   :  { %v1780_v45 = vadd.f32 %v1779_v9, %v3832_v40 }
 0x1ae   :  { %1851 = vst [vmem:[%s3923_s4 + $0x18] sm:$0xff] %v1785_v53  ;;  %v2271_v61 = vpop.f32.mrb[66].mxu1 }
 0x1af   :  { %v1825_v2 = vadd.f32 %v2271_v61, %v1680_v23  ;;  %1850 = vst [vmem:[%s3923_s4 + $0x10] sm:$0xff] %v1780_v45  ;;  %v1819_v50 = vpop.f32.mrb[67].mxu1 }
 0x1b0   :  { %v1820_v15 = vadd.f32 %v1819_v50, %v3854_v36 }
 0x1b1   :  { %1859 = vst [vmem:[%s3923_s4 + $0x58] sm:$0xff] %v1825_v2  ;;  %v2262_v11 = vpop.f32.mrb[68].mxu0 }
 0x1b2   :  { %1858 = vst [vmem:[%s3923_s4 + $0x50] sm:$0xff] %v1820_v15  ;;  %v1795_v40 = vadd.f32 %v2262_v11, %v3841_v28  ;;  %v2274_v25 = vpop.f32.mrb[68].mxu1  ;;  %v1789_v47 = vpop.f32.mrb[69].mxu0 }
 0x1b3   :  { %v1835_v13 = vadd.f32 %v2274_v25, %v1690_v6  ;;  %v1790_v46 = vadd.f32 %v1789_v47, %v3838_v48  ;;  %v1829_v4 = vpop.f32.mrb[69].mxu1 }
 0x1b4   :  { %1853 = vst [vmem:[%s3923_s4 + $0x28] sm:$0xff] %v1795_v40  ;;  %v1830_v36 = vadd.f32 %v1829_v4, %v1685_v38 }
 0x1b5   :  { %1861 = vst [vmem:[%s3923_s4 + $0x68] sm:$0xff] %v1835_v13  ;;  %1852 = vst [vmem:[%s3923_s4 + $0x20] sm:$0xff] %v1790_v46 }
 0x1b6   :  { %1860 = vst [vmem:[%s3923_s4 + $0x60] sm:$0xff] %v1830_v36 }
 0x1b7   :  { %v2265_v28 = vpop.f32.mrb[70].mxu0  ;;  %v2277_v48 = vpop.f32.mrb[70].mxu1 }
 0x1b8   :  { %v1805_v16 = vadd.f32 %v2265_v28, %v3847_v51  ;;  %v1845_v26 = vadd.f32 %v2277_v48, %v1700_v24  ;;  %v1799_v18 = vpop.f32.mrb[71].mxu0  ;;  %v1839_v52 = vpop.f32.mrb[71].mxu1 }
 0x1b9   :  { %v1800_v56 = vadd.f32 %v1799_v18, %v3844_v42  ;;  %v1840_v19 = vadd.f32 %v1839_v52, %v1695_v58 }
 0x1ba   :  { %1855 = vst [vmem:[%s3923_s4 + $0x38] sm:$0xff] %v1805_v16  ;;  %1863 = vst [vmem:[%s3923_s4 + $0x78] sm:$0xff] %v1845_v26 }
 0x1bb   :  { %1854 = vst [vmem:[%s3923_s4 + $0x30] sm:$0xff] %v1800_v56  ;;  %1862 = vst [vmem:[%s3923_s4 + $0x70] sm:$0xff] %v1840_v19 }

// kernel: network_block_forward.6
= control target key start
LH: loop header
LB: loop body
LE: loop exit
PB: predicated region body
PF: predicated region fallthrough
CT: control target
= control target key end

     0   :  { %s661_s1 = inlined_call_operand.vmem [shape: f32[128,128], index: 1, kind: input, shape index: {}]   ;;  %s662_s0 = inlined_call_operand.vmem [shape: f32[128,128], index: 0, kind: input, shape index: {}]   ;;  %s663_s2 = inlined_call_operand.vmem [shape: f32[1,128], index: 2, kind: input, shape index: {}]   ;;  %s664_s3 = inlined_call_operand.vmem [shape: f32[1,128], index: 3, kind: input, shape index: {}]   ;;  %s665_s4 = inlined_call_operand.vmem [shape: f32[128,128], index: 4, kind: output, shape index: {}]  }
   0x1   :  { %v127_v0 = vld [vmem:[%s661_s1] sm:$0xff]  ;;  %v128_v1 = vld [vmem:[%s661_s1 + $0x8] sm:$0xff]  ;;  %v129_v2 = vld [vmem:[%s661_s1 + $0x10] sm:$0xff] }
   0x2   :  { %v398_v3 = vpack.c.bf16 %v128_v1, %v127_v0  ;;  %v130_v4 = vld [vmem:[%s661_s1 + $0x18] sm:$0xff]  ;;  %v131_v6 = vld [vmem:[%s661_s1 + $0x20] sm:$0xff]  ;;  %v132_v7 = vld [vmem:[%s661_s1 + $0x28] sm:$0xff] }
   0x3   :  { %v402_v5 = vpack.c.bf16 %v130_v4, %v129_v2  ;;  %v406_v8 = vpack.c.bf16 %v132_v7, %v131_v6  ;;  %v133_v9 = vld [vmem:[%s661_s1 + $0x30] sm:$0xff]  ;;  %v17_v10 = vld [vmem:[%s662_s0] sm:$0xff]  ;;  %v134_v12 = vld [vmem:[%s661_s1 + $0x38] sm:$0xff] }
   0x4   :  { %399 = vmatprep.subr.bf16.mxu0 %v398_v3  ;;  %430 = vmatprep.subr.bf16.mxu1 %v398_v3  ;;  %v498_v11 = vld [vmem:[%s663_s2] ss:$0 sm:$0xff]  ;;  %v410_v18 = vpack.c.bf16 %v134_v12, %v133_v9  ;;  %v136_v21 = vld [vmem:[%s661_s1 + $0x48] sm:$0xff]  ;;  %v137_v29 = vld [vmem:[%s661_s1 + $0x50] sm:$0xff] }
   0x5   :  { %401 = vmatpush3.bf16.msra.mxu0 %v398_v3  ;;  %438 = vmatpush3.bf16.msra.mxu1 %v398_v3  ;;  %v40_v13 = vmul.f32 %v498_v11, %v17_v10  ;;  %v507_v14 = vld [vmem:[%s664_s3] ss:$0 sm:$0xff]  ;;  %v18_v27 = vld [vmem:[%s662_s0 + $0x8] sm:$0xff]  ;;  %v138_v30 = vld [vmem:[%s661_s1 + $0x58] sm:$0xff] }
   0x6   :  { %403 = vmatprep.subr.bf16.mxu0 %v402_v5  ;;  %431 = vmatprep.subr.bf16.mxu1 %v402_v5  ;;  %v25_v15 = vld [vmem:[%s662_s0 + $0x40] sm:$0xff]  ;;  %v26_v28 = vld [vmem:[%s662_s0 + $0x48] sm:$0xff]  ;;  %v19_v31 = vld [vmem:[%s662_s0 + $0x10] sm:$0xff]  ;;  %v41_v32 = vmul.f32 %v498_v11, %v18_v27  ;;  %v418_v34 = vpack.c.bf16 %v138_v30, %v137_v29 }
   0x7   :  { %v48_v16 = vmul.f32 %v498_v11, %v25_v15  ;;  %v63_v17 = vadd.f32 %v507_v14, %v40_v13  ;;  %v135_v20 = vld [vmem:[%s661_s1 + $0x40] sm:$0xff]  ;;  %v49_v33 = vmul.f32 %v498_v11, %v26_v28  ;;  %v140_v36 = vld [vmem:[%s661_s1 + $0x68] sm:$0xff]  ;;  %v42_v37 = vmul.f32 %v498_v11, %v19_v31  ;;  %v27_v38 = vld [vmem:[%s662_s0 + $0x50] sm:$0xff] }
   0x8   :  { %v414_v25 = vpack.c.bf16 %v136_v21, %v135_v20  ;;  %v139_v35 = vld [vmem:[%s661_s1 + $0x60] sm:$0xff]  ;;  %v20_v39 = vld [vmem:[%s662_s0 + $0x18] sm:$0xff]  ;;  %v64_v40 = vadd.f32 %v507_v14, %v41_v32  ;;  %v141_v45 = vld [vmem:[%s661_s1 + $0x70] sm:$0xff]  ;;  %v50_v47 = vmul.f32 %v498_v11, %v27_v38 }
   0x9   :  { %405 = vmatpush3.bf16.msra.mxu0 %v402_v5  ;;  %439 = vmatpush3.bf16.msra.mxu1 %v402_v5  ;;  %v71_v19 = vadd.f32 %v507_v14, %v48_v16  ;;  %vm79_vm0 = vcmp.ge.f32.partialorder %v63_v17, 0.0  ;;  %v95_v22 = vmul.f32 0.1, %v63_v17  ;;  %v72_v41 = vadd.f32 %v507_v14, %v49_v33  ;;  %v28_v42 = vld [vmem:[%s662_s0 + $0x58] sm:$0xff]  ;;  %v21_v43 = vld [vmem:[%s662_s0 + $0x20] sm:$0xff]  ;;  %v22_v56 = vld [vmem:[%s662_s0 + $0x28] sm:$0xff] }
   0xa   :  { %407 = vmatprep.subr.bf16.mxu0 %v406_v8  ;;  %432 = vmatprep.subr.bf16.mxu1 %v406_v8  ;;  %v422_v44 = vpack.c.bf16 %v140_v36, %v139_v35  ;;  %v142_v46 = vld [vmem:[%s661_s1 + $0x78] sm:$0xff]  ;;  %v65_v48 = vadd.f32 %v507_v14, %v42_v37  ;;  %v43_v49 = vmul.f32 %v498_v11, %v20_v39  ;;  %v29_v50 = vld [vmem:[%s662_s0 + $0x60] sm:$0xff]  ;;  %v96_v54 = vmul.f32 0.1, %v64_v40  ;;  %v30_v59 = vld [vmem:[%s662_s0 + $0x68] sm:$0xff] }
   0xb   :  { %vm87_vm1 = vcmp.ge.f32.partialorder %v71_v19, 0.0  ;;  %v103_v23 = vmul.f32 0.1, %v71_v19  ;;  %v111_v24 = vsel %vm79_vm0, %v63_v17, %v95_v22  ;;  %v51_v51 = vmul.f32 %v498_v11, %v28_v42  ;;  %v23_v62 = vld [vmem:[%s662_s0 + $0x30] sm:$0xff]  ;;  %v24_v10 = vld [vmem:[%s662_s0 + $0x38] sm:$0xff] }
   0xc   :  { %374 = vmatprep.mubr.f32.mxu0 %v111_v24  ;;  %v44_v52 = vmul.f32 %v498_v11, %v21_v43  ;;  %v426_v53 = vpack.c.bf16 %v142_v46, %v141_v45  ;;  %v104_v55 = vmul.f32 0.1, %v72_v41  ;;  %vm80_vm2 = vcmp.ge.f32.partialorder %v64_v40, 0.0  ;;  %v31_v63 = vld [vmem:[%s662_s0 + $0x70] sm:$0xff]  ;;  %v32_v12 = vld [vmem:[%s662_s0 + $0x78] sm:$0xff] }
   0xd   :  { %409 = vmatpush3.bf16.msra.mxu0 %v406_v8  ;;  %440 = vmatpush3.bf16.msra.mxu1 %v406_v8  ;;  %v119_v26 = vsel %vm87_vm1, %v71_v19, %v103_v23  ;;  %vm88_vm3 = vcmp.ge.f32.partialorder %v72_v41, 0.0  ;;  %v73_v57 = vadd.f32 %v507_v14, %v50_v47  ;;  %v52_v58 = vmul.f32 %v498_v11, %v29_v50 }
   0xe   :  { %411 = vmatprep.subr.bf16.mxu0 %v410_v18  ;;  %433 = vmatprep.subr.bf16.mxu1 %v410_v18  ;;  %v97_v60 = vmul.f32 0.1, %v65_v48  ;;  %v66_v61 = vadd.f32 %v507_v14, %v43_v49  ;;  %vm81_vm4 = vcmp.ge.f32.partialorder %v65_v48, 0.0  ;;  %v74_v0 = vadd.f32 %v507_v14, %v51_v51 }
   0xf   :  { %386 = vmatprep.mubr.f32.mxu1 %v119_v26  ;;  %v67_v1 = vadd.f32 %v507_v14, %v44_v52  ;;  %v45_v2 = vmul.f32 %v498_v11, %v22_v56  ;;  %v112_v3 = vsel %vm80_vm2, %v64_v40, %v96_v54  ;;  %v120_v4 = vsel %vm88_vm3, %v72_v41, %v104_v55 }
  0x10   :  { %v53_v5 = vmul.f32 %v498_v11, %v30_v59  ;;  %v105_v6 = vmul.f32 0.1, %v73_v57  ;;  %v75_v7 = vadd.f32 %v507_v14, %v52_v58  ;;  %v46_v8 = vmul.f32 %v498_v11, %v23_v62 }
  0x11   :  { %413 = vmatpush3.bf16.msra.mxu0 %v410_v18  ;;  %441 = vmatpush3.bf16.msra.mxu1 %v410_v18  ;;  %v54_v9 = vmul.f32 %v498_v11, %v31_v63  ;;  %v113_v13 = vsel %vm81_vm4, %v65_v48, %v97_v60  ;;  %vm89_vm5 = vcmp.ge.f32.partialorder %v73_v57, 0.0  ;;  %vm82_vm6 = vcmp.ge.f32.partialorder %v66_v61, 0.0 }
  0x12   :  { %415 = vmatprep.subr.bf16.mxu0 %v414_v25  ;;  %434 = vmatprep.subr.bf16.mxu1 %v414_v25  ;;  %v98_v15 = vmul.f32 0.1, %v66_v61  ;;  %vm90_vm7 = vcmp.ge.f32.partialorder %v74_v0, 0.0  ;;  %v106_v16 = vmul.f32 0.1, %v74_v0  ;;  %v68_v18 = vadd.f32 %v507_v14, %v45_v2 }
  0x13   :  { %v99_v17 = vmul.f32 0.1, %v67_v1  ;;  %vm83_vm8 = vcmp.ge.f32.partialorder %v67_v1, 0.0  ;;  %v76_v19 = vadd.f32 %v507_v14, %v53_v5  ;;  %v47_v20 = vmul.f32 %v498_v11, %v24_v10 }
  0x14   :  { %v55_v21 = vmul.f32 %v498_v11, %v32_v12  ;;  %v121_v22 = vsel %vm89_vm5, %v73_v57, %v105_v6  ;;  %v107_v23 = vmul.f32 0.1, %v75_v7  ;;  %v69_v24 = vadd.f32 %v507_v14, %v46_v8 }
  0x15   :  { %417 = vmatpush3.bf16.msra.mxu0 %v414_v25  ;;  %442 = vmatpush3.bf16.msra.mxu1 %v414_v25  ;;  %v77_v25 = vadd.f32 %v507_v14, %v54_v9  ;;  %vm91_vm9 = vcmp.ge.f32.partialorder %v75_v7, 0.0  ;;  %v114_v26 = vsel %vm82_vm6, %v66_v61, %v98_v15  ;;  %v122_v27 = vsel %vm90_vm7, %v74_v0, %v106_v16 }
  0x16   :  { %419 = vmatprep.subr.bf16.mxu0 %v418_v34  ;;  %435 = vmatprep.subr.bf16.mxu1 %v418_v34  ;;  %v115_v28 = vsel %vm83_vm8, %v67_v1, %v99_v17  ;;  %vm84_vm10 = vcmp.ge.f32.partialorder %v68_v18, 0.0  ;;  %v100_v29 = vmul.f32 0.1, %v68_v18  ;;  %v108_v30 = vmul.f32 0.1, %v76_v19 }
  0x17   :  { %v70_v11 = vadd.f32 %v507_v14, %v47_v20  ;;  %v78_v31 = vadd.f32 %v507_v14, %v55_v21  ;;  %v123_v32 = vsel %vm91_vm9, %v75_v7, %v107_v23  ;;  %vm92_vm11 = vcmp.ge.f32.partialorder %v76_v19, 0.0 }
  0x18   :  { %v101_v33 = vmul.f32 0.1, %v69_v24  ;;  %vm85_vm12 = vcmp.ge.f32.partialorder %v69_v24, 0.0  ;;  %vm93_vm13 = vcmp.ge.f32.partialorder %v77_v25, 0.0  ;;  %v116_v35 = vsel %vm84_vm10, %v68_v18, %v100_v29 }
  0x19   :  { %421 = vmatpush3.bf16.msra.mxu0 %v418_v34  ;;  %443 = vmatpush3.bf16.msra.mxu1 %v418_v34  ;;  %v109_v34 = vmul.f32 0.1, %v77_v25  ;;  %v124_v36 = vsel %vm92_vm11, %v76_v19, %v108_v30  ;;  %v102_v37 = vmul.f32 0.1, %v70_v11  ;;  %v110_v38 = vmul.f32 0.1, %v78_v31 }
  0x1a   :  { %423 = vmatprep.subr.bf16.mxu0 %v422_v44  ;;  %436 = vmatprep.subr.bf16.mxu1 %v422_v44  ;;  %v117_v39 = vsel %vm85_vm12, %v69_v24, %v101_v33  ;;  %vm86_vm14 = vcmp.ge.f32.partialorder %v70_v11, 0.0  ;;  %vm94_vm15 = vcmp.ge.f32.partialorder %v78_v31, 0.0 }
  0x1b   :  { %v125_v40 = vsel %vm93_vm13, %v77_v25, %v109_v34  ;;  %v118_v14 = vsel %vm86_vm14, %v70_v11, %v102_v37  ;;  %v126_v41 = vsel %vm94_vm15, %v78_v31, %v110_v38 }
  0x1d   :  { %425 = vmatpush3.bf16.msra.mxu0 %v422_v44  ;;  %444 = vmatpush3.bf16.msra.mxu1 %v422_v44 }
  0x1e   :  { %427 = vmatprep.subr.bf16.mxu0 %v426_v53  ;;  %437 = vmatprep.subr.bf16.mxu1 %v426_v53 }
  0x21   :  { %429 = vmatpush3.bf16.msra.mxu0 %v426_v53  ;;  %445 = vmatpush3.bf16.msra.mxu1 %v426_v53 }
  0x24   :  { %375 = vmatmul.mubr.f32.vlgmr.msra.gmra.mrb[0].mxu0 %v112_v3  ;;  %387 = vmatmul.mubr.f32.vlgmr.msra.gmra.mrb[0].mxu1 %v120_v4 }
  0x25   :  { %377 = vmatprep.mubr.f32.mxu0 %v113_v13  ;;  %389 = vmatprep.mubr.f32.mxu1 %v121_v22 }
  0x28   :  { %378 = vmatmul.mubr.f32.gmra.mrb[2].mxu0 %v114_v26  ;;  %390 = vmatmul.mubr.f32.gmra.mrb[2].mxu1 %v122_v27 }
  0x29   :  { %380 = vmatprep.mubr.f32.mxu0 %v115_v28  ;;  %392 = vmatprep.mubr.f32.mxu1 %v123_v32 }
  0x2c   :  { %381 = vmatmul.mubr.f32.gmra.mrb[4].mxu0 %v116_v35  ;;  %393 = vmatmul.mubr.f32.gmra.mrb[4].mxu1 %v124_v36 }
  0x2d   :  { %383 = vmatprep.mubr.f32.mxu0 %v117_v39  ;;  %395 = vmatprep.mubr.f32.mxu1 %v125_v40 }
  0x30   :  { %384 = vmatmul.mubr.f32.gmra.mrb[6].mxu0 %v118_v14  ;;  %396 = vmatmul.mubr.f32.gmra.mrb[6].mxu1 %v126_v41 }
  0xf7   :  { %v376_v42 = vpop.f32.mrb[0].mxu0  ;;  %v388_v43 = vpop.f32.mrb[0].mxu1 }
  0xf8   :  { %289 = vst [vmem:[%s665_s4 + $0x8] sm:$0xff] %v376_v42  ;;  %297 = vst [vmem:[%s665_s4 + $0x48] sm:$0xff] %v388_v43  ;;  %v209_v44 = vpop.f32.mrb[1].mxu0  ;;  %v249_v45 = vpop.f32.mrb[1].mxu1 }
  0xf9   :  { %288 = vst [vmem:[%s665_s4] sm:$0xff] %v209_v44  ;;  %296 = vst [vmem:[%s665_s4 + $0x40] sm:$0xff] %v249_v45 }
  0xfb   :  { %v379_v46 = vpop.f32.mrb[2].mxu0  ;;  %v391_v47 = vpop.f32.mrb[2].mxu1 }
  0xfc   :  { %291 = vst [vmem:[%s665_s4 + $0x18] sm:$0xff] %v379_v46  ;;  %299 = vst [vmem:[%s665_s4 + $0x58] sm:$0xff] %v391_v47  ;;  %v219_v48 = vpop.f32.mrb[3].mxu0  ;;  %v259_v49 = vpop.f32.mrb[3].mxu1 }
  0xfd   :  { %290 = vst [vmem:[%s665_s4 + $0x10] sm:$0xff] %v219_v48  ;;  %298 = vst [vmem:[%s665_s4 + $0x50] sm:$0xff] %v259_v49 }
  0xff   :  { %v382_v50 = vpop.f32.mrb[4].mxu0  ;;  %v394_v51 = vpop.f32.mrb[4].mxu1 }
 0x100   :  { %293 = vst [vmem:[%s665_s4 + $0x28] sm:$0xff] %v382_v50  ;;  %301 = vst [vmem:[%s665_s4 + $0x68] sm:$0xff] %v394_v51  ;;  %v229_v52 = vpop.f32.mrb[5].mxu0  ;;  %v269_v53 = vpop.f32.mrb[5].mxu1 }
 0x101   :  { %292 = vst [vmem:[%s665_s4 + $0x20] sm:$0xff] %v229_v52  ;;  %300 = vst [vmem:[%s665_s4 + $0x60] sm:$0xff] %v269_v53 }
 0x103   :  { %v385_v54 = vpop.f32.mrb[6].mxu0  ;;  %v397_v55 = vpop.f32.mrb[6].mxu1 }
 0x104   :  { %295 = vst [vmem:[%s665_s4 + $0x38] sm:$0xff] %v385_v54  ;;  %303 = vst [vmem:[%s665_s4 + $0x78] sm:$0xff] %v397_v55  ;;  %v239_v56 = vpop.f32.mrb[7].mxu0  ;;  %v279_v57 = vpop.f32.mrb[7].mxu1 }
 0x105   :  { %294 = vst [vmem:[%s665_s4 + $0x30] sm:$0xff] %v239_v56  ;;  %302 = vst [vmem:[%s665_s4 + $0x70] sm:$0xff] %v279_v57 }

// kernel: network_block_forward.7
= control target key start
LH: loop header
LB: loop body
LE: loop exit
PB: predicated region body
PF: predicated region fallthrough
CT: control target
= control target key end

     0   :  { %v168_v47 = vlaneseq  ;;  %s3991_s1 = inlined_call_operand.vmem [shape: f32[1152,128], index: 1, kind: input, shape index: {}]   ;;  %s3992_s0 = inlined_call_operand.vmem [shape: f32[128,1152], index: 0, kind: input, shape index: {}]   ;;  %s3993_s2 = inlined_call_operand.vmem [shape: f32[1,1152], index: 2, kind: input, shape index: {}]   ;;  %s3994_s3 = inlined_call_operand.vmem [shape: f32[1,1152], index: 3, kind: input, shape index: {}]   ;;  %s3995_s4 = inlined_call_operand.vmem [shape: f32[128,128], index: 4, kind: input, shape index: {}]   ;;  %s3996_s5 = inlined_call_operand.vmem [shape: f32[128,128], index: 5, kind: output, shape index: {}]  }
   0x1   :  { %v998_v0 = vld [vmem:[%s3991_s1 + $0x80] sm:$0xff]  ;;  %v999_v1 = vld [vmem:[%s3991_s1 + $0x88] sm:$0xff]  ;;  %v1000_v11 = vld [vmem:[%s3991_s1 + $0x90] sm:$0xff] }
   0x2   :  { %v1030_v2 = vld [vmem:[%s3991_s1 + $0x180] sm:$0xff]  ;;  %v2297_v3 = vpack.c.bf16 %v999_v1, %v998_v0  ;;  %v1031_v4 = vld [vmem:[%s3991_s1 + $0x188] sm:$0xff]  ;;  %v1001_v13 = vld [vmem:[%s3991_s1 + $0x98] sm:$0xff]  ;;  %v2642_v0 = vshrl.u32 %v168_v47, 7 }
   0x3   :  { %v982_v5 = vld [vmem:[%s3991_s1] sm:$0xff]  ;;  %v983_v6 = vld [vmem:[%s3991_s1 + $0x8] sm:$0xff]  ;;  %v2329_v7 = vpack.c.bf16 %v1031_v4, %v1030_v2  ;;  %v1032_v14 = vld [vmem:[%s3991_s1 + $0x190] sm:$0xff]  ;;  %v2301_v16 = vpack.c.bf16 %v1001_v13, %v1000_v11 }
   0x4   :  { %v2299_v8 = vpack.c.bf16 %v983_v6, %v982_v5  ;;  %v1014_v9 = vld [vmem:[%s3991_s1 + $0x100] sm:$0xff]  ;;  %v1015_v10 = vld [vmem:[%s3991_s1 + $0x108] sm:$0xff]  ;;  %2298 = vmatprep.subr.bf16.mxu0 %v2297_v3  ;;  %v1033_v15 = vld [vmem:[%s3991_s1 + $0x198] sm:$0xff] }
   0x5   :  { %v2331_v12 = vpack.c.bf16 %v1015_v10, %v1014_v9  ;;  %2330 = vmatprep.subr.bf16.mxu1 %v2329_v7  ;;  %v2333_v17 = vpack.c.bf16 %v1033_v15, %v1032_v14  ;;  %v984_v18 = vld [vmem:[%s3991_s1 + $0x10] sm:$0xff]  ;;  %v985_v19 = vld [vmem:[%s3991_s1 + $0x18] sm:$0xff]  ;;  %v1002_v23 = vld [vmem:[%s3991_s1 + $0xa0] sm:$0xff] }
   0x6   :  { %2300 = vmatpush3.bf16.msra.mxu0 %v2299_v8  ;;  %v1016_v20 = vld [vmem:[%s3991_s1 + $0x110] sm:$0xff]  ;;  %v2303_v21 = vpack.c.bf16 %v985_v19, %v984_v18  ;;  %v1017_v22 = vld [vmem:[%s3991_s1 + $0x118] sm:$0xff]  ;;  %v1003_v24 = vld [vmem:[%s3991_s1 + $0xa8] sm:$0xff]  ;;  %v182_v18 = vsub.s32 3, %v2642_v0  ;;  %v170_v19 = vsub.s32 0, %v2642_v0 }
   0x7   :  { %2332 = vmatpush3.bf16.msra.mxu1 %v2331_v12  ;;  %2302 = vmatprep.subr.bf16.mxu0 %v2301_v16  ;;  %v2335_v25 = vpack.c.bf16 %v1017_v22, %v1016_v20  ;;  %v2305_v26 = vpack.c.bf16 %v1003_v24, %v1002_v23  ;;  %v1034_v27 = vld [vmem:[%s3991_s1 + $0x1a0] sm:$0xff]  ;;  %v1035_v28 = vld [vmem:[%s3991_s1 + $0x1a8] sm:$0xff]  ;;  %v1004_v35 = vld [vmem:[%s3991_s1 + $0xb0] sm:$0xff] }
   0x8   :  { %2334 = vmatprep.subr.bf16.mxu1 %v2333_v17  ;;  %v986_v29 = vld [vmem:[%s3991_s1 + $0x20] sm:$0xff]  ;;  %v2337_v30 = vpack.c.bf16 %v1035_v28, %v1034_v27  ;;  %v987_v31 = vld [vmem:[%s3991_s1 + $0x28] sm:$0xff]  ;;  %v1005_v36 = vld [vmem:[%s3991_s1 + $0xb8] sm:$0xff]  ;;  %v174_v17 = vsub.s32 1, %v2642_v0 }
   0x9   :  { %v1018_v32 = vld [vmem:[%s3991_s1 + $0x120] sm:$0xff]  ;;  %v1019_v33 = vld [vmem:[%s3991_s1 + $0x128] sm:$0xff]  ;;  %v2307_v34 = vpack.c.bf16 %v987_v31, %v986_v29  ;;  %v1036_v37 = vld [vmem:[%s3991_s1 + $0x1b0] sm:$0xff]  ;;  %v2309_v39 = vpack.c.bf16 %v1005_v36, %v1004_v35 }
   0xa   :  { %2304 = vmatpush3.bf16.msra.mxu0 %v2303_v21  ;;  %v2339_v38 = vpack.c.bf16 %v1019_v33, %v1018_v32  ;;  %v1037_v40 = vld [vmem:[%s3991_s1 + $0x1b8] sm:$0xff]  ;;  %v988_v41 = vld [vmem:[%s3991_s1 + $0x30] sm:$0xff]  ;;  %v1006_v46 = vld [vmem:[%s3991_s1 + $0xc0] sm:$0xff] }
   0xb   :  { %2336 = vmatpush3.bf16.msra.mxu1 %v2335_v25  ;;  %2306 = vmatprep.subr.bf16.mxu0 %v2305_v26  ;;  %v989_v42 = vld [vmem:[%s3991_s1 + $0x38] sm:$0xff]  ;;  %v2341_v43 = vpack.c.bf16 %v1037_v40, %v1036_v37  ;;  %v1020_v44 = vld [vmem:[%s3991_s1 + $0x130] sm:$0xff]  ;;  %v1007_v48 = vld [vmem:[%s3991_s1 + $0xc8] sm:$0xff]  ;;  %v178_v25 = vsub.s32 2, %v2642_v0 }
   0xc   :  { %2338 = vmatprep.subr.bf16.mxu1 %v2337_v30  ;;  %v1021_v45 = vld [vmem:[%s3991_s1 + $0x138] sm:$0xff]  ;;  %v1038_v49 = vld [vmem:[%s3991_s1 + $0x1c0] sm:$0xff]  ;;  %v1039_v50 = vld [vmem:[%s3991_s1 + $0x1c8] sm:$0xff]  ;;  %v2311_v51 = vpack.c.bf16 %v989_v42, %v988_v41  ;;  %v2313_v56 = vpack.c.bf16 %v1007_v48, %v1006_v46 }
   0xd   :  { %v990_v52 = vld [vmem:[%s3991_s1 + $0x40] sm:$0xff]  ;;  %v991_v53 = vld [vmem:[%s3991_s1 + $0x48] sm:$0xff]  ;;  %v2343_v55 = vpack.c.bf16 %v1021_v45, %v1020_v44  ;;  %v1008_v58 = vld [vmem:[%s3991_s1 + $0xd0] sm:$0xff]  ;;  %v2345_v60 = vpack.c.bf16 %v1039_v50, %v1038_v49 }
   0xe   :  { %2308 = vmatpush3.bf16.msra.mxu0 %v2307_v34  ;;  %v1022_v54 = vld [vmem:[%s3991_s1 + $0x140] sm:$0xff]  ;;  %v1023_v57 = vld [vmem:[%s3991_s1 + $0x148] sm:$0xff]  ;;  %v1009_v59 = vld [vmem:[%s3991_s1 + $0xd8] sm:$0xff]  ;;  %v2315_v4 = vpack.c.bf16 %v991_v53, %v990_v52 }
   0xf   :  { %2340 = vmatpush3.bf16.msra.mxu1 %v2339_v38  ;;  %2310 = vmatprep.subr.bf16.mxu0 %v2309_v39  ;;  %v1040_v61 = vld [vmem:[%s3991_s1 + $0x1d0] sm:$0xff]  ;;  %v1041_v62 = vld [vmem:[%s3991_s1 + $0x1d8] sm:$0xff]  ;;  %v2662_v5 = vld [vmem:[%s3991_s1 + $0xe0] sm:$0xff]  ;;  %v2347_v8 = vpack.c.bf16 %v1023_v57, %v1022_v54  ;;  %v2317_v9 = vpack.c.bf16 %v1009_v59, %v1008_v58 }
  0x10   :  { %2342 = vmatprep.subr.bf16.mxu1 %v2341_v43  ;;  %v2640_v63 = vld [vmem:[%s3991_s1 + $0x50] sm:$0xff]  ;;  %v2647_v1 = vld [vmem:[%s3991_s1 + $0x58] sm:$0xff]  ;;  %v2667_v6 = vld [vmem:[%s3991_s1 + $0xe8] sm:$0xff]  ;;  %v2349_v13 = vpack.c.bf16 %v1041_v62, %v1040_v61 }
  0x11   :  { %v2652_v2 = vld [vmem:[%s3991_s1 + $0x150] sm:$0xff]  ;;  %v2657_v3 = vld [vmem:[%s3991_s1 + $0x158] sm:$0xff]  ;;  %v2672_v7 = vld [vmem:[%s3991_s1 + $0x1e0] sm:$0xff]  ;;  %v2319_v20 = vpack.c.bf16 %v2647_v1, %v2640_v63  ;;  %v2321_v26 = vpack.c.bf16 %v2667_v6, %v2662_v5 }
  0x12   :  { %2312 = vmatpush3.bf16.msra.mxu0 %v2311_v51  ;;  %v2677_v10 = vld [vmem:[%s3991_s1 + $0x1e8] sm:$0xff]  ;;  %v2682_v11 = vld [vmem:[%s3991_s1 + $0x60] sm:$0xff]  ;;  %v2702_v16 = vld [vmem:[%s3991_s1 + $0xf0] sm:$0xff]  ;;  %v2351_v21 = vpack.c.bf16 %v2657_v3, %v2652_v2 }
  0x13   :  { %2344 = vmatpush3.bf16.msra.mxu1 %v2343_v55  ;;  %2314 = vmatprep.subr.bf16.mxu0 %v2313_v56  ;;  %v2687_v12 = vld [vmem:[%s3991_s1 + $0x68] sm:$0xff]  ;;  %v2692_v14 = vld [vmem:[%s3991_s1 + $0x160] sm:$0xff]  ;;  %v2714_v22 = vld [vmem:[%s3991_s1 + $0xf8] sm:$0xff]  ;;  %v2353_v27 = vpack.c.bf16 %v2677_v10, %v2672_v7 }
  0x14   :  { %2346 = vmatprep.subr.bf16.mxu1 %v2345_v60  ;;  %v2697_v15 = vld [vmem:[%s3991_s1 + $0x168] sm:$0xff]  ;;  %v2719_v23 = vld [vmem:[%s3991_s1 + $0x1f0] sm:$0xff]  ;;  %v2724_v24 = vld [vmem:[%s3991_s1 + $0x1f8] sm:$0xff]  ;;  %v2323_v28 = vpack.c.bf16 %v2687_v12, %v2682_v11  ;;  %v2325_v33 = vpack.c.bf16 %v2714_v22, %v2702_v16 }
  0x15   :  { %v2355_v29 = vpack.c.bf16 %v2697_v15, %v2692_v14  ;;  %v2738_v30 = vld [vmem:[%s3991_s1 + $0x70] sm:$0xff]  ;;  %v2743_v31 = vld [vmem:[%s3991_s1 + $0x78] sm:$0xff]  ;;  %v2357_v34 = vpack.c.bf16 %v2724_v24, %v2719_v23  ;;  %v21_v37 = vld [vmem:[%s3992_s0 + $0x8] sm:$0xff] }
  0x16   :  { %2316 = vmatpush3.bf16.msra.mxu0 %v2315_v4  ;;  %v2748_v32 = vld [vmem:[%s3991_s1 + $0x170] sm:$0xff]  ;;  %v2327_v35 = vpack.c.bf16 %v2743_v31, %v2738_v30  ;;  %v2759_v36 = vld [vmem:[%s3991_s1 + $0x178] sm:$0xff]  ;;  %v164_v38 = vld [vmem:[%s3993_s2] sm:$0xff] }
  0x17   :  { %2348 = vmatpush3.bf16.msra.mxu1 %v2347_v8  ;;  %2318 = vmatprep.subr.bf16.mxu0 %v2317_v9  ;;  %v2359_v39 = vpack.c.bf16 %v2759_v36, %v2748_v32  ;;  %v2769_v40 = vrot.slane %v164_v38, %v174_v17  ;;  %v357_v41 = vld [vmem:[%s3994_s3] sm:$0xff]  ;;  %v23_v42 = vld [vmem:[%s3992_s0 + $0x18] sm:$0xff]  ;;  %v2777_v43 = vrot.slane %v164_v38, %v182_v18  ;;  %v22_v49 = vld [vmem:[%s3992_s0 + $0x10] sm:$0xff] }
  0x18   :  { %2350 = vmatprep.subr.bf16.mxu1 %v2349_v13  ;;  %v20_v44 = vld [vmem:[%s3992_s0] sm:$0xff]  ;;  %v2782_v45 = vrot.slane %v164_v38, %v170_v19  ;;  %v2784_v46 = vrot.slane %v357_v41, %v174_v17  ;;  %v2786_v47 = vrot.slane %v357_v41, %v182_v18  ;;  %v2788_v48 = vrot.slane %v357_v41, %v170_v19  ;;  %v1063_v52 = vld [vmem:[%s3991_s1 + $0x288] sm:$0xff]  ;;  %v30_v7 = vld [vmem:[%s3992_s0 + $0x50] sm:$0xff] }
  0x19   :  { %v2793_v50 = vrot.slane %v164_v38, %v178_v25  ;;  %v1062_v51 = vld [vmem:[%s3991_s1 + $0x280] sm:$0xff]  ;;  %v214_v53 = vmul.f32 %v2769_v40, %v21_v37  ;;  %v216_v54 = vmul.f32 %v2777_v43, %v23_v42  ;;  %v2804_v56 = vrot.slane %v357_v41, %v178_v25  ;;  %v1095_v58 = vld [vmem:[%s3991_s1 + $0x388] sm:$0xff]  ;;  %v31_v22 = vld [vmem:[%s3992_s0 + $0x58] sm:$0xff] }
  0x1a   :  { %2320 = vmatpush3.bf16.msra.mxu0 %v2319_v20  ;;  %v213_v55 = vmul.f32 %v2782_v45, %v20_v44  ;;  %v1094_v57 = vld [vmem:[%s3991_s1 + $0x380] sm:$0xff]  ;;  %v2361_v61 = vpack.c.bf16 %v1063_v52, %v1062_v51  ;;  %v2821_v63 = vld [vmem:[%s3991_s1 + $0x208] sm:$0xff]  ;;  %v223_v11 = vmul.f32 %v2769_v40, %v30_v7  ;;  %v39_v23 = vld [vmem:[%s3992_s0 + $0x98] sm:$0xff] }
  0x1b   :  { %v2815_v59 = vld [vmem:[%s3991_s1 + $0x200] sm:$0xff]  ;;  %2352 = vmatpush3.bf16.msra.mxu1 %v2351_v21  ;;  %2322 = vmatprep.subr.bf16.mxu0 %v2321_v26  ;;  %v215_v60 = vmul.f32 %v2793_v50, %v22_v49  ;;  %v2393_v62 = vpack.c.bf16 %v1095_v58, %v1094_v57  ;;  %v2831_v2 = vld [vmem:[%s3991_s1 + $0x308] sm:$0xff]  ;;  %v407_v3 = vadd.f32 %v2784_v46, %v214_v53  ;;  %v1064_v44 = vld [vmem:[%s3991_s1 + $0x290] sm:$0xff] }
  0x1c   :  { %v2826_v1 = vld [vmem:[%s3991_s1 + $0x300] sm:$0xff]  ;;  %2354 = vmatprep.subr.bf16.mxu1 %v2353_v27  ;;  %v409_v4 = vadd.f32 %v2786_v47, %v216_v54  ;;  %v406_v5 = vadd.f32 %v2788_v48, %v213_v55  ;;  %v2363_v6 = vpack.c.bf16 %v2821_v63, %v2815_v59  ;;  %v29_v13 = vld [vmem:[%s3992_s0 + $0x48] sm:$0xff]  ;;  %v416_v20 = vadd.f32 %v2784_v46, %v223_v11  ;;  %v1065_v49 = vld [vmem:[%s3991_s1 + $0x298] sm:$0xff] }
  0x1d   :  { %v32_v8 = vld [vmem:[%s3992_s0 + $0x60] sm:$0xff]  ;;  %v408_v9 = vadd.f32 %v2804_v56, %v215_v60  ;;  %v2395_v10 = vpack.c.bf16 %v2831_v2, %v2826_v1  ;;  %vm551_vm0 = vcmp.ge.f32.partialorder %v407_v3, 0.0  ;;  %v695_v14 = vmul.f32 0.1, %v407_v3  ;;  %v41_v27 = vld [vmem:[%s3992_s0 + $0xa8] sm:$0xff]  ;;  %v1096_v51 = vld [vmem:[%s3991_s1 + $0x390] sm:$0xff] }
  0x1e   :  { %v225_v12 = vmul.f32 %v2777_v43, %v32_v8  ;;  %2324 = vmatpush3.bf16.msra.mxu0 %v2323_v28  ;;  %vm553_vm1 = vcmp.ge.f32.partialorder %v409_v4, 0.0  ;;  %v697_v15 = vmul.f32 0.1, %v409_v4  ;;  %vm550_vm2 = vcmp.ge.f32.partialorder %v406_v5, 0.0  ;;  %v38_v28 = vld [vmem:[%s3992_s0 + $0x90] sm:$0xff]  ;;  %v40_v30 = vld [vmem:[%s3992_s0 + $0xa0] sm:$0xff] }
  0x1f   :  { %2356 = vmatpush3.bf16.msra.mxu1 %v2355_v29  ;;  %2326 = vmatprep.subr.bf16.mxu0 %v2325_v33  ;;  %v694_v16 = vmul.f32 0.1, %v406_v5  ;;  %vm552_vm3 = vcmp.ge.f32.partialorder %v408_v9, 0.0  ;;  %v696_v17 = vmul.f32 0.1, %v408_v9  ;;  %v839_v18 = vsel %vm551_vm0, %v407_v3, %v695_v14  ;;  %v1097_v55 = vld [vmem:[%s3991_s1 + $0x398] sm:$0xff] }
  0x20   :  { %2358 = vmatprep.subr.bf16.mxu1 %v2357_v34  ;;  %v841_v19 = vsel %vm553_vm1, %v409_v4, %v697_v15  ;;  %v418_v21 = vadd.f32 %v2786_v47, %v225_v12  ;;  %1206 = vmatprep.mubr.f32.mxu0 %v839_v18  ;;  %v222_v26 = vmul.f32 %v2782_v45, %v29_v13  ;;  %vm560_vm4 = vcmp.ge.f32.partialorder %v416_v20, 0.0  ;;  %v1048_v57 = vld [vmem:[%s3991_s1 + $0x210] sm:$0xff]  ;;  %v1049_v58 = vld [vmem:[%s3991_s1 + $0x218] sm:$0xff]  ;;  %v49_v13 = vld [vmem:[%s3992_s0 + $0xe8] sm:$0xff] }
  0x21   :  { %1351 = vmatprep.mubr.f32.mxu1 %v841_v19  ;;  %v838_v24 = vsel %vm550_vm2, %v406_v5, %v694_v16  ;;  %v840_v25 = vsel %vm552_vm3, %v408_v9, %v696_v17  ;;  %v704_v29 = vmul.f32 0.1, %v416_v20  ;;  %v224_v37 = vmul.f32 %v2793_v50, %v31_v22  ;;  %v50_v7 = vld [vmem:[%s3992_s0 + $0xf0] sm:$0xff]  ;;  %v47_v8 = vld [vmem:[%s3992_s0 + $0xd8] sm:$0xff]  ;;  %v57_v14 = vld [vmem:[%s3992_s0 + $0x128] sm:$0xff] }
  0x22   :  { %2328 = vmatpush3.bf16.msra.mxu0 %v2327_v35  ;;  %vm562_vm5 = vcmp.ge.f32.partialorder %v418_v21, 0.0  ;;  %v706_v33 = vmul.f32 0.1, %v418_v21  ;;  %v415_v34 = vadd.f32 %v2788_v48, %v222_v26  ;;  %v232_v38 = vmul.f32 %v2769_v40, %v39_v23  ;;  %v56_v22 = vld [vmem:[%s3992_s0 + $0x120] sm:$0xff] }
  0x23   :  { %2360 = vmatpush3.bf16.msra.mxu1 %v2359_v39  ;;  %2362 = vmatprep.subr.bf16.mxu0 %v2361_v61  ;;  %v848_v31 = vsel %vm560_vm4, %v416_v20, %v704_v29  ;;  %v234_v41 = vmul.f32 %v2777_v43, %v41_v27  ;;  %v231_v42 = vmul.f32 %v2782_v45, %v38_v28  ;;  %v1080_v61 = vld [vmem:[%s3991_s1 + $0x310] sm:$0xff] }
  0x24   :  { %2394 = vmatprep.subr.bf16.mxu1 %v2393_v62  ;;  %v850_v35 = vsel %vm562_vm5, %v418_v21, %v706_v33  ;;  %vm559_vm6 = vcmp.ge.f32.partialorder %v415_v34, 0.0  ;;  %v703_v32 = vmul.f32 0.1, %v415_v34  ;;  %v417_v36 = vadd.f32 %v2804_v56, %v224_v37  ;;  %v1081_v62 = vld [vmem:[%s3991_s1 + $0x318] sm:$0xff] }
  0x25   :  { %1207 = vmatmul.mubr.f32.vlgmr.msra.gmra.mrb[0].mxu0 %v838_v24  ;;  %v425_v39 = vadd.f32 %v2784_v46, %v232_v38  ;;  %v427_v52 = vadd.f32 %v2786_v47, %v234_v41  ;;  %v424_v53 = vadd.f32 %v2788_v48, %v231_v42  ;;  %v233_v54 = vmul.f32 %v2793_v50, %v40_v30  ;;  %v59_v21 = vld [vmem:[%s3992_s0 + $0x138] sm:$0xff]  ;;  %v58_v38 = vld [vmem:[%s3992_s0 + $0x130] sm:$0xff] }
  0x26   :  { %1352 = vmatmul.mubr.f32.vlgmr.msra.gmra.mrb[0].mxu1 %v840_v25  ;;  %2364 = vmatpush3.bf16.msra.mxu0 %v2363_v6  ;;  %v847_v59 = vsel %vm559_vm6, %v415_v34, %v703_v32  ;;  %vm561_vm7 = vcmp.ge.f32.partialorder %v417_v36, 0.0  ;;  %v705_v60 = vmul.f32 0.1, %v417_v36  ;;  %v2365_v5 = vpack.c.bf16 %v1065_v49, %v1064_v44  ;;  %v48_v6 = vld [vmem:[%s3992_s0 + $0xe0] sm:$0xff]  ;;  %v1067_v44 = vld [vmem:[%s3991_s1 + $0x2a8] sm:$0xff] }
  0x27   :  { %2396 = vmatpush3.bf16.msra.mxu1 %v2395_v10  ;;  %1211 = vmatprep.mubr.f32.mxu0 %v848_v31  ;;  %vm569_vm8 = vcmp.ge.f32.partialorder %v425_v39, 0.0  ;;  %v713_v63 = vmul.f32 0.1, %v425_v39  ;;  %vm571_vm9 = vcmp.ge.f32.partialorder %v427_v52, 0.0  ;;  %v715_v1 = vmul.f32 0.1, %v427_v52 }
  0x28   :  { %1356 = vmatprep.mubr.f32.mxu1 %v850_v35  ;;  %vm568_vm10 = vcmp.ge.f32.partialorder %v424_v53, 0.0  ;;  %v849_v2 = vsel %vm561_vm7, %v417_v36, %v705_v60  ;;  %v712_v3 = vmul.f32 0.1, %v424_v53  ;;  %v426_v4 = vadd.f32 %v2804_v56, %v233_v54  ;;  %2366 = vmatprep.subr.bf16.mxu0 %v2365_v5  ;;  %v1066_v35 = vld [vmem:[%s3991_s1 + $0x2a0] sm:$0xff] }
  0x29   :  { %1212 = vmatmul.mubr.f32.gmra.mrb[2].mxu0 %v847_v59  ;;  %v857_v9 = vsel %vm569_vm8, %v425_v39, %v713_v63  ;;  %v859_v10 = vsel %vm571_vm9, %v427_v52, %v715_v1  ;;  %v2397_v11 = vpack.c.bf16 %v1097_v55, %v1096_v51  ;;  %v2367_v12 = vpack.c.bf16 %v1049_v58, %v1048_v57  ;;  %v1098_v49 = vld [vmem:[%s3991_s1 + $0x3a0] sm:$0xff]  ;;  %v1099_v51 = vld [vmem:[%s3991_s1 + $0x3a8] sm:$0xff]  ;;  %v66_v63 = vld [vmem:[%s3992_s0 + $0x170] sm:$0xff] }
  0x2a   :  { %1357 = vmatmul.mubr.f32.gmra.mrb[2].mxu1 %v849_v2  ;;  %1216 = vmatprep.mubr.f32.mxu0 %v857_v9  ;;  %v856_v15 = vsel %vm568_vm10, %v424_v53, %v712_v3  ;;  %vm570_vm11 = vcmp.ge.f32.partialorder %v426_v4, 0.0  ;;  %v714_v16 = vmul.f32 0.1, %v426_v4  ;;  %v2399_v17 = vpack.c.bf16 %v1081_v62, %v1080_v61  ;;  %v1050_v55 = vld [vmem:[%s3991_s1 + $0x220] sm:$0xff]  ;;  %v1051_v57 = vld [vmem:[%s3991_s1 + $0x228] sm:$0xff]  ;;  %v67_v9 = vld [vmem:[%s3992_s0 + $0x178] sm:$0xff] }
  0x2b   :  { %1361 = vmatprep.mubr.f32.mxu1 %v859_v10  ;;  %2398 = vmatprep.subr.bf16.mxu1 %v2397_v11  ;;  %v241_v18 = vmul.f32 %v2769_v40, %v48_v6  ;;  %v243_v19 = vmul.f32 %v2777_v43, %v50_v7  ;;  %v240_v20 = vmul.f32 %v2782_v45, %v47_v8  ;;  %v1082_v61 = vld [vmem:[%s3991_s1 + $0x320] sm:$0xff]  ;;  %v1083_v62 = vld [vmem:[%s3991_s1 + $0x328] sm:$0xff] }
  0x2c   :  { %v858_v23 = vsel %vm570_vm11, %v426_v4, %v714_v16  ;;  %2400 = vmatpush3.bf16.msra.mxu1 %v2399_v17  ;;  %v242_v24 = vmul.f32 %v2793_v50, %v49_v13  ;;  %v250_v25 = vmul.f32 %v2769_v40, %v57_v14  ;;  %2368 = vmatpush3.bf16.msra.mxu0 %v2367_v12  ;;  %v68_v4 = vld [vmem:[%s3992_s0 + $0x180] sm:$0xff]  ;;  %v65_v8 = vld [vmem:[%s3992_s0 + $0x168] sm:$0xff]  ;;  %v75_v13 = vld [vmem:[%s3992_s0 + $0x1b8] sm:$0xff] }
  0x2d   :  { %1217 = vmatmul.mubr.f32.gmra.mrb[4].mxu0 %v856_v15  ;;  %v434_v26 = vadd.f32 %v2784_v46, %v241_v18  ;;  %v436_v27 = vadd.f32 %v2786_v47, %v243_v19  ;;  %v433_v28 = vadd.f32 %v2788_v48, %v240_v20  ;;  %v252_v34 = vmul.f32 %v2777_v43, %v59_v21  ;;  %v77_v14 = vld [vmem:[%s3992_s0 + $0x1c8] sm:$0xff] }
  0x2e   :  { %1362 = vmatmul.mubr.f32.gmra.mrb[4].mxu1 %v858_v23  ;;  %v435_v29 = vadd.f32 %v2804_v56, %v242_v24  ;;  %v443_v33 = vadd.f32 %v2784_v46, %v250_v25  ;;  %v249_v37 = vmul.f32 %v2782_v45, %v56_v22  ;;  %v251_v60 = vmul.f32 %v2793_v50, %v58_v38  ;;  %v1068_v38 = vld [vmem:[%s3991_s1 + $0x2b0] sm:$0xff] }
  0x2f   :  { %vm578_vm12 = vcmp.ge.f32.partialorder %v434_v26, 0.0  ;;  %v722_v30 = vmul.f32 0.1, %v434_v26  ;;  %vm580_vm13 = vcmp.ge.f32.partialorder %v436_v27, 0.0  ;;  %v724_v31 = vmul.f32 0.1, %v436_v27 }
  0x30   :  { %vm577_vm14 = vcmp.ge.f32.partialorder %v433_v28, 0.0  ;;  %v721_v41 = vmul.f32 0.1, %v433_v28  ;;  %vm579_vm15 = vcmp.ge.f32.partialorder %v435_v29, 0.0  ;;  %v723_v42 = vmul.f32 0.1, %v435_v29 }
  0x31   :  { %v866_v32 = vsel %vm578_vm12, %v434_v26, %v722_v30  ;;  %v868_v36 = vsel %vm580_vm13, %v436_v27, %v724_v31  ;;  %vm587_vm0 = vcmp.ge.f32.partialorder %v443_v33, 0.0  ;;  %v731_v39 = vmul.f32 0.1, %v443_v33  ;;  %v1069_v30 = vld [vmem:[%s3991_s1 + $0x2b8] sm:$0xff] }
  0x32   :  { %1221 = vmatprep.mubr.f32.mxu0 %v866_v32  ;;  %1366 = vmatprep.mubr.f32.mxu1 %v868_v36  ;;  %v865_v52 = vsel %vm577_vm14, %v433_v28, %v721_v41  ;;  %v867_v53 = vsel %vm579_vm15, %v435_v29, %v723_v42  ;;  %v445_v54 = vadd.f32 %v2786_v47, %v252_v34  ;;  %v74_v28 = vld [vmem:[%s3992_s0 + $0x1b0] sm:$0xff]  ;;  %v1101_v42 = vld [vmem:[%s3991_s1 + $0x3b8] sm:$0xff] }
  0x33   :  { %1222 = vmatmul.mubr.f32.gmra.mrb[6].mxu0 %v865_v52  ;;  %1367 = vmatmul.mubr.f32.gmra.mrb[6].mxu1 %v867_v53  ;;  %v875_v58 = vsel %vm587_vm0, %v443_v33, %v731_v39  ;;  %v442_v59 = vadd.f32 %v2788_v48, %v249_v37  ;;  %v2369_v2 = vpack.c.bf16 %v1067_v44, %v1066_v35  ;;  %v76_v37 = vld [vmem:[%s3992_s0 + $0x1c0] sm:$0xff]  ;;  %v1100_v41 = vld [vmem:[%s3991_s1 + $0x3b0] sm:$0xff]  ;;  %v1053_v53 = vld [vmem:[%s3991_s1 + $0x238] sm:$0xff] }
  0x34   :  { %1226 = vmatprep.mubr.f32.mxu0 %v875_v58  ;;  %vm589_vm1 = vcmp.ge.f32.partialorder %v445_v54, 0.0  ;;  %v733_v1 = vmul.f32 0.1, %v445_v54  ;;  %v2401_v3 = vpack.c.bf16 %v1099_v51, %v1098_v49  ;;  %v444_v6 = vadd.f32 %v2804_v56, %v251_v60  ;;  %v1052_v44 = vld [vmem:[%s3991_s1 + $0x230] sm:$0xff] }
  0x35   :  { %vm586_vm2 = vcmp.ge.f32.partialorder %v442_v59, 0.0  ;;  %v730_v5 = vmul.f32 0.1, %v442_v59  ;;  %v2371_v7 = vpack.c.bf16 %v1051_v57, %v1050_v55  ;;  %2370 = vmatprep.subr.bf16.mxu0 %v2369_v2  ;;  %v2403_v11 = vpack.c.bf16 %v1083_v62, %v1082_v61  ;;  %v1085_v55 = vld [vmem:[%s3991_s1 + $0x338] sm:$0xff]  ;;  %v84_v61 = vld [vmem:[%s3992_s0 + $0x200] sm:$0xff]  ;;  %v86_v62 = vld [vmem:[%s3992_s0 + $0x210] sm:$0xff] }
  0x36   :  { %v877_v10 = vsel %vm589_vm1, %v445_v54, %v733_v1  ;;  %2402 = vmatprep.subr.bf16.mxu1 %v2401_v3  ;;  %v259_v12 = vmul.f32 %v2769_v40, %v66_v63  ;;  %vm588_vm3 = vcmp.ge.f32.partialorder %v444_v6, 0.0  ;;  %v732_v16 = vmul.f32 0.1, %v444_v6  ;;  %v1084_v54 = vld [vmem:[%s3991_s1 + $0x330] sm:$0xff]  ;;  %v83_v3 = vld [vmem:[%s3992_s0 + $0x1f8] sm:$0xff] }
  0x37   :  { %1371 = vmatprep.mubr.f32.mxu1 %v877_v10  ;;  %v874_v15 = vsel %vm586_vm2, %v442_v59, %v730_v5  ;;  %2372 = vmatpush3.bf16.msra.mxu0 %v2371_v7  ;;  %v261_v17 = vmul.f32 %v2777_v43, %v68_v4  ;;  %v258_v19 = vmul.f32 %v2782_v45, %v65_v8  ;;  %v85_v4 = vld [vmem:[%s3992_s0 + $0x208] sm:$0xff] }
  0x38   :  { %1227 = vmatmul.mubr.f32.gmra.mrb[8].mxu0 %v874_v15  ;;  %2404 = vmatpush3.bf16.msra.mxu1 %v2403_v11  ;;  %v452_v18 = vadd.f32 %v2784_v46, %v259_v12  ;;  %v260_v20 = vmul.f32 %v2793_v50, %v67_v9  ;;  %v876_v21 = vsel %vm588_vm3, %v444_v6, %v732_v16  ;;  %v93_v8 = vld [vmem:[%s3992_s0 + $0x248] sm:$0xff]  ;;  %v95_v12 = vld [vmem:[%s3992_s0 + $0x258] sm:$0xff] }
  0x39   :  { %v454_v22 = vadd.f32 %v2786_v47, %v261_v17  ;;  %v268_v23 = vmul.f32 %v2769_v40, %v75_v13  ;;  %v270_v24 = vmul.f32 %v2777_v43, %v77_v14  ;;  %1372 = vmatmul.mubr.f32.gmra.mrb[8].mxu1 %v876_v21  ;;  %v451_v26 = vadd.f32 %v2788_v48, %v258_v19 }
  0x3a   :  { %vm596_vm4 = vcmp.ge.f32.partialorder %v452_v18, 0.0  ;;  %v740_v25 = vmul.f32 0.1, %v452_v18  ;;  %v453_v27 = vadd.f32 %v2804_v56, %v260_v20  ;;  %v267_v52 = vmul.f32 %v2782_v45, %v74_v28  ;;  %v1070_v28 = vld [vmem:[%s3991_s1 + $0x2c0] sm:$0xff] }
  0x3b   :  { %vm598_vm5 = vcmp.ge.f32.partialorder %v454_v22, 0.0  ;;  %v742_v29 = vmul.f32 0.1, %v454_v22  ;;  %v461_v33 = vadd.f32 %v2784_v46, %v268_v23  ;;  %v463_v34 = vadd.f32 %v2786_v47, %v270_v24  ;;  %v92_v24 = vld [vmem:[%s3992_s0 + $0x240] sm:$0xff] }
  0x3c   :  { %v884_v31 = vsel %vm596_vm4, %v452_v18, %v740_v25  ;;  %vm595_vm6 = vcmp.ge.f32.partialorder %v451_v26, 0.0  ;;  %v739_v35 = vmul.f32 0.1, %v451_v26  ;;  %vm597_vm7 = vcmp.ge.f32.partialorder %v453_v27, 0.0 }
  0x3d   :  { %1231 = vmatprep.mubr.f32.mxu0 %v884_v31  ;;  %v886_v32 = vsel %vm598_vm5, %v454_v22, %v742_v29  ;;  %v741_v36 = vmul.f32 0.1, %v453_v27  ;;  %vm605_vm8 = vcmp.ge.f32.partialorder %v461_v33, 0.0  ;;  %v749_v39 = vmul.f32 0.1, %v461_v33  ;;  %v1071_v29 = vld [vmem:[%s3991_s1 + $0x2c8] sm:$0xff] }
  0x3e   :  { %1376 = vmatprep.mubr.f32.mxu1 %v886_v32  ;;  %v883_v49 = vsel %vm595_vm6, %v451_v26, %v739_v35  ;;  %vm607_vm9 = vcmp.ge.f32.partialorder %v463_v34, 0.0  ;;  %v751_v51 = vmul.f32 0.1, %v463_v34  ;;  %v269_v59 = vmul.f32 %v2793_v50, %v76_v37  ;;  %v1055_v32 = vld [vmem:[%s3991_s1 + $0x248] sm:$0xff] }
  0x3f   :  { %1232 = vmatmul.mubr.f32.gmra.mrb[10].mxu0 %v883_v49  ;;  %v885_v57 = vsel %vm597_vm7, %v453_v27, %v741_v36  ;;  %v893_v58 = vsel %vm605_vm8, %v461_v33, %v749_v39  ;;  %v2373_v60 = vpack.c.bf16 %v1069_v30, %v1068_v38  ;;  %v460_v1 = vadd.f32 %v2788_v48, %v267_v52  ;;  %v94_v27 = vld [vmem:[%s3992_s0 + $0x250] sm:$0xff]  ;;  %v1102_v33 = vld [vmem:[%s3991_s1 + $0x3c0] sm:$0xff] }
  0x40   :  { %1377 = vmatmul.mubr.f32.gmra.mrb[10].mxu1 %v885_v57  ;;  %1236 = vmatprep.mubr.f32.mxu0 %v893_v58  ;;  %v895_v63 = vsel %vm607_vm9, %v463_v34, %v751_v51  ;;  %v2405_v2 = vpack.c.bf16 %v1101_v42, %v1100_v41  ;;  %v462_v5 = vadd.f32 %v2804_v56, %v269_v59  ;;  %v1103_v41 = vld [vmem:[%s3991_s1 + $0x3c8] sm:$0xff]  ;;  %v1054_v42 = vld [vmem:[%s3991_s1 + $0x240] sm:$0xff]  ;;  %v102_v52 = vld [vmem:[%s3992_s0 + $0x290] sm:$0xff] }
  0x41   :  { %1381 = vmatprep.mubr.f32.mxu1 %v895_v63  ;;  %2374 = vmatprep.subr.bf16.mxu0 %v2373_v60  ;;  %v2375_v6 = vpack.c.bf16 %v1053_v53, %v1052_v44  ;;  %v2407_v7 = vpack.c.bf16 %v1085_v55, %v1084_v54  ;;  %vm604_vm10 = vcmp.ge.f32.partialorder %v460_v1, 0.0  ;;  %v748_v9 = vmul.f32 0.1, %v460_v1  ;;  %v1086_v49 = vld [vmem:[%s3991_s1 + $0x340] sm:$0xff]  ;;  %v1087_v51 = vld [vmem:[%s3991_s1 + $0x348] sm:$0xff] }
  0x42   :  { %2406 = vmatprep.subr.bf16.mxu1 %v2405_v2  ;;  %v277_v10 = vmul.f32 %v2769_v40, %v84_v61  ;;  %v279_v11 = vmul.f32 %v2777_v43, %v86_v62  ;;  %vm606_vm11 = vcmp.ge.f32.partialorder %v462_v5, 0.0  ;;  %v750_v13 = vmul.f32 0.1, %v462_v5  ;;  %v104_v60 = vld [vmem:[%s3992_s0 + $0x2a0] sm:$0xff]  ;;  %v101_v61 = vld [vmem:[%s3992_s0 + $0x288] sm:$0xff]  ;;  %v103_v62 = vld [vmem:[%s3992_s0 + $0x298] sm:$0xff] }
  0x43   :  { %2376 = vmatpush3.bf16.msra.mxu0 %v2375_v6  ;;  %2408 = vmatpush3.bf16.msra.mxu1 %v2407_v7  ;;  %v276_v14 = vmul.f32 %v2782_v45, %v83_v3  ;;  %v278_v15 = vmul.f32 %v2793_v50, %v85_v4  ;;  %v892_v16 = vsel %vm604_vm10, %v460_v1, %v748_v9  ;;  %v111_v7 = vld [vmem:[%s3992_s0 + $0x2d8] sm:$0xff] }
  0x44   :  { %v470_v17 = vadd.f32 %v2784_v46, %v277_v10  ;;  %v472_v18 = vadd.f32 %v2786_v47, %v279_v11  ;;  %v286_v19 = vmul.f32 %v2769_v40, %v93_v8  ;;  %1237 = vmatmul.mubr.f32.gmra.mrb[12].mxu0 %v892_v16  ;;  %v894_v20 = vsel %vm606_vm11, %v462_v5, %v750_v13  ;;  %v113_v11 = vld [vmem:[%s3992_s0 + $0x2e8] sm:$0xff] }
  0x45   :  { %v469_v21 = vadd.f32 %v2788_v48, %v276_v14  ;;  %v471_v22 = vadd.f32 %v2804_v56, %v278_v15  ;;  %v288_v23 = vmul.f32 %v2777_v43, %v95_v12  ;;  %1382 = vmatmul.mubr.f32.gmra.mrb[12].mxu1 %v894_v20  ;;  %v285_v44 = vmul.f32 %v2782_v45, %v92_v24 }
  0x46   :  { %vm614_vm12 = vcmp.ge.f32.partialorder %v470_v17, 0.0  ;;  %v758_v25 = vmul.f32 0.1, %v470_v17  ;;  %vm616_vm13 = vcmp.ge.f32.partialorder %v472_v18, 0.0  ;;  %v760_v26 = vmul.f32 0.1, %v472_v18 }
  0x47   :  { %vm613_vm14 = vcmp.ge.f32.partialorder %v469_v21, 0.0  ;;  %v757_v34 = vmul.f32 0.1, %v469_v21  ;;  %vm615_vm15 = vcmp.ge.f32.partialorder %v471_v22, 0.0  ;;  %v759_v37 = vmul.f32 0.1, %v471_v22 }
  0x48   :  { %v902_v38 = vsel %vm614_vm12, %v470_v17, %v758_v25  ;;  %v904_v30 = vsel %vm616_vm13, %v472_v18, %v760_v26  ;;  %v479_v31 = vadd.f32 %v2784_v46, %v286_v19  ;;  %v481_v35 = vadd.f32 %v2786_v47, %v288_v23  ;;  %v112_v23 = vld [vmem:[%s3992_s0 + $0x2e0] sm:$0xff] }
  0x49   :  { %1241 = vmatprep.mubr.f32.mxu0 %v902_v38  ;;  %1386 = vmatprep.mubr.f32.mxu1 %v904_v30  ;;  %v901_v36 = vsel %vm613_vm14, %v469_v21, %v757_v34  ;;  %v903_v39 = vsel %vm615_vm15, %v471_v22, %v759_v37  ;;  %v478_v55 = vadd.f32 %v2788_v48, %v285_v44  ;;  %v110_v22 = vld [vmem:[%s3992_s0 + $0x2d0] sm:$0xff] }
  0x4a   :  { %1242 = vmatmul.mubr.f32.gmra.mrb[14].mxu0 %v901_v36  ;;  %1387 = vmatmul.mubr.f32.gmra.mrb[14].mxu1 %v903_v39  ;;  %vm623_vm0 = vcmp.ge.f32.partialorder %v479_v31, 0.0  ;;  %v767_v53 = vmul.f32 0.1, %v479_v31  ;;  %vm625_vm1 = vcmp.ge.f32.partialorder %v481_v35, 0.0  ;;  %v769_v54 = vmul.f32 0.1, %v481_v35 }
  0x4b   :  { %v287_v57 = vmul.f32 %v2793_v50, %v94_v27  ;;  %v2377_v58 = vpack.c.bf16 %v1071_v29, %v1070_v28  ;;  %v2409_v59 = vpack.c.bf16 %v1103_v41, %v1102_v33  ;;  %v2379_v2 = vpack.c.bf16 %v1055_v32, %v1054_v42  ;;  %v1072_v29 = vld [vmem:[%s3991_s1 + $0x2d0] sm:$0xff]  ;;  %v1073_v33 = vld [vmem:[%s3991_s1 + $0x2d8] sm:$0xff] }
  0x4c   :  { %v911_v63 = vsel %vm623_vm0, %v479_v31, %v767_v53  ;;  %v913_v1 = vsel %vm625_vm1, %v481_v35, %v769_v54  ;;  %v2411_v3 = vpack.c.bf16 %v1087_v51, %v1086_v49  ;;  %vm622_vm2 = vcmp.ge.f32.partialorder %v478_v55, 0.0  ;;  %v1104_v34 = vld [vmem:[%s3991_s1 + $0x3d0] sm:$0xff]  ;;  %v1105_v35 = vld [vmem:[%s3991_s1 + $0x3d8] sm:$0xff]  ;;  %v120_v54 = vld [vmem:[%s3992_s0 + $0x320] sm:$0xff] }
  0x4d   :  { %1246 = vmatprep.mubr.f32.mxu0 %v911_v63  ;;  %1391 = vmatprep.mubr.f32.mxu1 %v913_v1  ;;  %v766_v4 = vmul.f32 0.1, %v478_v55  ;;  %v480_v5 = vadd.f32 %v2804_v56, %v287_v57  ;;  %v295_v6 = vmul.f32 %v2769_v40, %v102_v52  ;;  %v297_v8 = vmul.f32 %v2777_v43, %v104_v60  ;;  %v1056_v41 = vld [vmem:[%s3991_s1 + $0x250] sm:$0xff]  ;;  %v1057_v42 = vld [vmem:[%s3991_s1 + $0x258] sm:$0xff] }
  0x4e   :  { %2378 = vmatprep.subr.bf16.mxu0 %v2377_v58  ;;  %2410 = vmatprep.subr.bf16.mxu1 %v2409_v59  ;;  %v294_v9 = vmul.f32 %v2782_v45, %v101_v61  ;;  %v296_v10 = vmul.f32 %v2793_v50, %v103_v62  ;;  %v304_v18 = vmul.f32 %v2769_v40, %v111_v7  ;;  %v1088_v44 = vld [vmem:[%s3991_s1 + $0x350] sm:$0xff]  ;;  %v1089_v49 = vld [vmem:[%s3991_s1 + $0x358] sm:$0xff]  ;;  %v121_v62 = vld [vmem:[%s3992_s0 + $0x328] sm:$0xff] }
  0x4f   :  { %v910_v12 = vsel %vm622_vm2, %v478_v55, %v766_v4  ;;  %vm624_vm3 = vcmp.ge.f32.partialorder %v480_v5, 0.0  ;;  %v768_v13 = vmul.f32 0.1, %v480_v5  ;;  %2380 = vmatpush3.bf16.msra.mxu0 %v2379_v2  ;;  %2412 = vmatpush3.bf16.msra.mxu1 %v2411_v3  ;;  %v488_v14 = vadd.f32 %v2784_v46, %v295_v6  ;;  %v122_v55 = vld [vmem:[%s3992_s0 + $0x330] sm:$0xff]  ;;  %v119_v61 = vld [vmem:[%s3992_s0 + $0x318] sm:$0xff]  ;;  %v129_v3 = vld [vmem:[%s3992_s0 + $0x368] sm:$0xff] }
  0x50   :  { %1247 = vmatmul.mubr.f32.gmra.mrb[16].mxu0 %v910_v12  ;;  %v490_v15 = vadd.f32 %v2786_v47, %v297_v8  ;;  %v487_v16 = vadd.f32 %v2788_v48, %v294_v9  ;;  %v489_v17 = vadd.f32 %v2804_v56, %v296_v10  ;;  %v306_v21 = vmul.f32 %v2777_v43, %v113_v11  ;;  %v131_v7 = vld [vmem:[%s3992_s0 + $0x378] sm:$0xff]  ;;  %v128_v8 = vld [vmem:[%s3992_s0 + $0x360] sm:$0xff] }
  0x51   :  { %v912_v19 = vsel %vm624_vm3, %v480_v5, %v768_v13  ;;  %vm632_vm4 = vcmp.ge.f32.partialorder %v488_v14, 0.0  ;;  %v776_v20 = vmul.f32 0.1, %v488_v14  ;;  %v497_v28 = vadd.f32 %v2784_v46, %v304_v18 }
  0x52   :  { %1392 = vmatmul.mubr.f32.gmra.mrb[16].mxu1 %v912_v19  ;;  %vm634_vm5 = vcmp.ge.f32.partialorder %v490_v15, 0.0  ;;  %v778_v24 = vmul.f32 0.1, %v490_v15  ;;  %vm631_vm6 = vcmp.ge.f32.partialorder %v487_v16, 0.0  ;;  %v775_v25 = vmul.f32 0.1, %v487_v16 }
  0x53   :  { %v920_v26 = vsel %vm632_vm4, %v488_v14, %v776_v20  ;;  %vm633_vm7 = vcmp.ge.f32.partialorder %v489_v17, 0.0  ;;  %v777_v27 = vmul.f32 0.1, %v489_v17  ;;  %v499_v30 = vadd.f32 %v2786_v47, %v306_v21 }
  0x54   :  { %1251 = vmatprep.mubr.f32.mxu0 %v920_v26  ;;  %v922_v37 = vsel %vm634_vm5, %v490_v15, %v778_v24  ;;  %v919_v38 = vsel %vm631_vm6, %v487_v16, %v775_v25  ;;  %v303_v31 = vmul.f32 %v2782_v45, %v110_v22  ;;  %vm641_vm8 = vcmp.ge.f32.partialorder %v497_v28, 0.0  ;;  %v130_v22 = vld [vmem:[%s3992_s0 + $0x370] sm:$0xff]  ;;  %v1075_v24 = vld [vmem:[%s3991_s1 + $0x2e8] sm:$0xff] }
  0x55   :  { %1396 = vmatprep.mubr.f32.mxu1 %v922_v37  ;;  %1252 = vmatmul.mubr.f32.gmra.mrb[18].mxu0 %v919_v38  ;;  %v921_v32 = vsel %vm633_vm7, %v489_v17, %v777_v27  ;;  %v785_v36 = vmul.f32 0.1, %v497_v28  ;;  %v305_v39 = vmul.f32 %v2793_v50, %v112_v23  ;;  %vm643_vm9 = vcmp.ge.f32.partialorder %v499_v30, 0.0  ;;  %v1074_v23 = vld [vmem:[%s3991_s1 + $0x2e0] sm:$0xff]  ;;  %v1107_v37 = vld [vmem:[%s3991_s1 + $0x3e8] sm:$0xff] }
  0x56   :  { %1397 = vmatmul.mubr.f32.gmra.mrb[18].mxu1 %v921_v32  ;;  %v787_v51 = vmul.f32 0.1, %v499_v30  ;;  %v496_v52 = vadd.f32 %v2788_v48, %v303_v31  ;;  %v2381_v53 = vpack.c.bf16 %v1073_v33, %v1072_v29  ;;  %v2413_v59 = vpack.c.bf16 %v1105_v35, %v1104_v34  ;;  %v1106_v34 = vld [vmem:[%s3991_s1 + $0x3e0] sm:$0xff]  ;;  %v1091_v32 = vld [vmem:[%s3991_s1 + $0x368] sm:$0xff] }
  0x57   :  { %v929_v57 = vsel %vm641_vm8, %v497_v28, %v785_v36  ;;  %v498_v58 = vadd.f32 %v2804_v56, %v305_v39  ;;  %v2383_v60 = vpack.c.bf16 %v1057_v42, %v1056_v41  ;;  %v2415_v2 = vpack.c.bf16 %v1089_v49, %v1088_v44  ;;  %v1058_v38 = vld [vmem:[%s3991_s1 + $0x260] sm:$0xff]  ;;  %v1059_v41 = vld [vmem:[%s3991_s1 + $0x268] sm:$0xff] }
  0x58   :  { %1256 = vmatprep.mubr.f32.mxu0 %v929_v57  ;;  %v931_v63 = vsel %vm643_vm9, %v499_v30, %v787_v51  ;;  %vm640_vm10 = vcmp.ge.f32.partialorder %v496_v52, 0.0  ;;  %v784_v1 = vmul.f32 0.1, %v496_v52  ;;  %2382 = vmatprep.subr.bf16.mxu0 %v2381_v53  ;;  %v313_v5 = vmul.f32 %v2769_v40, %v120_v54  ;;  %v1090_v42 = vld [vmem:[%s3991_s1 + $0x360] sm:$0xff]  ;;  %v137_v54 = vld [vmem:[%s3992_s0 + $0x3a8] sm:$0xff] }
  0x59   :  { %1401 = vmatprep.mubr.f32.mxu1 %v931_v63  ;;  %vm642_vm11 = vcmp.ge.f32.partialorder %v498_v58, 0.0  ;;  %v786_v4 = vmul.f32 0.1, %v498_v58  ;;  %2414 = vmatprep.subr.bf16.mxu1 %v2413_v59  ;;  %v315_v6 = vmul.f32 %v2777_v43, %v122_v55  ;;  %v312_v10 = vmul.f32 %v2782_v45, %v119_v61  ;;  %v140_v53 = vld [vmem:[%s3992_s0 + $0x3c0] sm:$0xff]  ;;  %v147_v61 = vld [vmem:[%s3992_s0 + $0x3f8] sm:$0xff] }
  0x5a   :  { %v928_v9 = vsel %vm640_vm10, %v496_v52, %v784_v1  ;;  %2384 = vmatpush3.bf16.msra.mxu0 %v2383_v60  ;;  %2416 = vmatpush3.bf16.msra.mxu1 %v2415_v2  ;;  %v314_v11 = vmul.f32 %v2793_v50, %v121_v62  ;;  %v506_v13 = vadd.f32 %v2784_v46, %v313_v5  ;;  %v138_v52 = vld [vmem:[%s3992_s0 + $0x3b0] sm:$0xff]  ;;  %v139_v60 = vld [vmem:[%s3992_s0 + $0x3b8] sm:$0xff]  ;;  %v149_v2 = vld [vmem:[%s3992_s0 + $0x408] sm:$0xff] }
  0x5b   :  { %1257 = vmatmul.mubr.f32.gmra.mrb[20].mxu0 %v928_v9  ;;  %v930_v12 = vsel %vm642_vm11, %v498_v58, %v786_v4  ;;  %v508_v14 = vadd.f32 %v2786_v47, %v315_v6  ;;  %v322_v15 = vmul.f32 %v2769_v40, %v129_v3  ;;  %v505_v16 = vadd.f32 %v2788_v48, %v312_v10  ;;  %v146_v6 = vld [vmem:[%s3992_s0 + $0x3f0] sm:$0xff] }
  0x5c   :  { %1402 = vmatmul.mubr.f32.gmra.mrb[20].mxu1 %v930_v12  ;;  %v507_v17 = vadd.f32 %v2804_v56, %v314_v11  ;;  %v324_v18 = vmul.f32 %v2777_v43, %v131_v7  ;;  %v321_v19 = vmul.f32 %v2782_v45, %v128_v8  ;;  %vm650_vm12 = vcmp.ge.f32.partialorder %v506_v13, 0.0 }
  0x5d   :  { %v794_v20 = vmul.f32 0.1, %v506_v13  ;;  %vm652_vm13 = vcmp.ge.f32.partialorder %v508_v14, 0.0  ;;  %v796_v21 = vmul.f32 0.1, %v508_v14  ;;  %vm649_vm14 = vcmp.ge.f32.partialorder %v505_v16, 0.0 }
  0x5e   :  { %v793_v25 = vmul.f32 0.1, %v505_v16  ;;  %vm651_vm15 = vcmp.ge.f32.partialorder %v507_v17, 0.0  ;;  %v795_v26 = vmul.f32 0.1, %v507_v17  ;;  %v515_v29 = vadd.f32 %v2784_v46, %v322_v15 }
  0x5f   :  { %v938_v27 = vsel %vm650_vm12, %v506_v13, %v794_v20  ;;  %v940_v28 = vsel %vm652_vm13, %v508_v14, %v796_v21  ;;  %v517_v33 = vadd.f32 %v2786_v47, %v324_v18  ;;  %v514_v35 = vadd.f32 %v2788_v48, %v321_v19  ;;  %v148_v18 = vld [vmem:[%s3992_s0 + $0x400] sm:$0xff]  ;;  %v1076_v21 = vld [vmem:[%s3991_s1 + $0x2f0] sm:$0xff] }
  0x60   :  { %1261 = vmatprep.mubr.f32.mxu0 %v938_v27  ;;  %1406 = vmatprep.mubr.f32.mxu1 %v940_v28  ;;  %v937_v30 = vsel %vm649_vm14, %v505_v16, %v793_v25  ;;  %v939_v31 = vsel %vm651_vm15, %v507_v17, %v795_v26  ;;  %vm659_vm0 = vcmp.ge.f32.partialorder %v515_v29, 0.0  ;;  %v803_v36 = vmul.f32 0.1, %v515_v29  ;;  %v1077_v27 = vld [vmem:[%s3991_s1 + $0x2f8] sm:$0xff]  ;;  %v1108_v28 = vld [vmem:[%s3991_s1 + $0x3f0] sm:$0xff] }
  0x61   :  { %1262 = vmatmul.mubr.f32.gmra.mrb[22].mxu0 %v937_v30  ;;  %1407 = vmatmul.mubr.f32.gmra.mrb[22].mxu1 %v939_v31  ;;  %vm661_vm1 = vcmp.ge.f32.partialorder %v517_v33, 0.0  ;;  %v805_v39 = vmul.f32 0.1, %v517_v33  ;;  %vm658_vm2 = vcmp.ge.f32.partialorder %v514_v35, 0.0  ;;  %v802_v44 = vmul.f32 0.1, %v514_v35 }
  0x62   :  { %v323_v49 = vmul.f32 %v2793_v50, %v130_v22  ;;  %v2385_v51 = vpack.c.bf16 %v1075_v24, %v1074_v23  ;;  %v947_v55 = vsel %vm659_vm0, %v515_v29, %v803_v36  ;;  %v2417_v58 = vpack.c.bf16 %v1107_v37, %v1106_v34  ;;  %v1109_v29 = vld [vmem:[%s3991_s1 + $0x3f8] sm:$0xff] }
  0x63   :  { %v949_v57 = vsel %vm661_vm1, %v517_v33, %v805_v39  ;;  %v2387_v59 = vpack.c.bf16 %v1059_v41, %v1058_v38  ;;  %1266 = vmatprep.mubr.f32.mxu0 %v947_v55  ;;  %v946_v62 = vsel %vm658_vm2, %v514_v35, %v802_v44  ;;  %v2419_v1 = vpack.c.bf16 %v1091_v32, %v1090_v42  ;;  %v1060_v38 = vld [vmem:[%s3991_s1 + $0x270] sm:$0xff]  ;;  %v1061_v30 = vld [vmem:[%s3991_s1 + $0x278] sm:$0xff]  ;;  %v156_v39 = vld [vmem:[%s3992_s0 + $0x440] sm:$0xff] }
  0x64   :  { %1411 = vmatprep.mubr.f32.mxu1 %v949_v57  ;;  %v516_v63 = vadd.f32 %v2804_v56, %v323_v49  ;;  %2386 = vmatprep.subr.bf16.mxu0 %v2385_v51  ;;  %v331_v3 = vmul.f32 %v2769_v40, %v138_v52  ;;  %v333_v4 = vmul.f32 %v2777_v43, %v140_v53  ;;  %v190_v31 = vsub.s32 5, %v2642_v0  ;;  %v1092_v32 = vld [vmem:[%s3991_s1 + $0x370] sm:$0xff]  ;;  %v1093_v36 = vld [vmem:[%s3991_s1 + $0x378] sm:$0xff] }
  0x65   :  { %1267 = vmatmul.mubr.f32.gmra.mrb[24].mxu0 %v946_v62  ;;  %v330_v5 = vmul.f32 %v2782_v45, %v137_v54  ;;  %2418 = vmatprep.subr.bf16.mxu1 %v2417_v58  ;;  %v332_v8 = vmul.f32 %v2793_v50, %v139_v60  ;;  %v340_v9 = vmul.f32 %v2769_v40, %v147_v61  ;;  %v198_v44 = vsub.s32 7, %v2642_v0  ;;  %v158_v53 = vld [vmem:[%s3992_s0 + $0x450] sm:$0xff]  ;;  %v155_v58 = vld [vmem:[%s3992_s0 + $0x438] sm:$0xff] }
  0x66   :  { %vm660_vm3 = vcmp.ge.f32.partialorder %v516_v63, 0.0  ;;  %v804_v7 = vmul.f32 0.1, %v516_v63  ;;  %2388 = vmatpush3.bf16.msra.mxu0 %v2387_v59  ;;  %2420 = vmatpush3.bf16.msra.mxu1 %v2419_v1  ;;  %v524_v10 = vadd.f32 %v2784_v46, %v331_v3  ;;  %v526_v11 = vadd.f32 %v2786_v47, %v333_v4  ;;  %v157_v59 = vld [vmem:[%s3992_s0 + $0x448] sm:$0xff] }
  0x67   :  { %v523_v12 = vadd.f32 %v2788_v48, %v330_v5  ;;  %v342_v13 = vmul.f32 %v2777_v43, %v149_v2  ;;  %v525_v15 = vadd.f32 %v2804_v56, %v332_v8  ;;  %v533_v16 = vadd.f32 %v2784_v46, %v340_v9 }
  0x68   :  { %v948_v14 = vsel %vm660_vm3, %v516_v63, %v804_v7  ;;  %v339_v17 = vmul.f32 %v2782_v45, %v146_v6  ;;  %vm668_vm4 = vcmp.ge.f32.partialorder %v524_v10, 0.0  ;;  %v812_v19 = vmul.f32 0.1, %v524_v10 }
  0x69   :  { %1412 = vmatmul.mubr.f32.gmra.mrb[24].mxu1 %v948_v14  ;;  %vm670_vm5 = vcmp.ge.f32.partialorder %v526_v11, 0.0  ;;  %v814_v20 = vmul.f32 0.1, %v526_v11  ;;  %vm667_vm6 = vcmp.ge.f32.partialorder %v523_v12, 0.0  ;;  %v811_v22 = vmul.f32 0.1, %v523_v12 }
  0x6a   :  { %vm669_vm7 = vcmp.ge.f32.partialorder %v525_v15, 0.0  ;;  %v813_v23 = vmul.f32 0.1, %v525_v15  ;;  %v956_v24 = vsel %vm668_vm4, %v524_v10, %v812_v19  ;;  %vm677_vm8 = vcmp.ge.f32.partialorder %v533_v16, 0.0 }
  0x6b   :  { %v958_v25 = vsel %vm670_vm5, %v526_v11, %v814_v20  ;;  %v821_v26 = vmul.f32 0.1, %v533_v16  ;;  %1271 = vmatprep.mubr.f32.mxu0 %v956_v24  ;;  %v955_v33 = vsel %vm667_vm6, %v523_v12, %v811_v22  ;;  %v535_v37 = vadd.f32 %v2786_v47, %v342_v13  ;;  %v24_v20 = vld [vmem:[%s3992_s0 + $0x20] sm:$0xff]  ;;  %v1111_v22 = vld [vmem:[%s3991_s1 + $0x408] sm:$0xff] }
  0x6c   :  { %1416 = vmatprep.mubr.f32.mxu1 %v958_v25  ;;  %v957_v34 = vsel %vm669_vm7, %v525_v15, %v813_v23  ;;  %1272 = vmatmul.mubr.f32.gmra.mrb[26].mxu0 %v955_v33  ;;  %v532_v41 = vadd.f32 %v2788_v48, %v339_v17  ;;  %v341_v42 = vmul.f32 %v2793_v50, %v148_v18  ;;  %v186_v63 = vsub.s32 4, %v2642_v0 }
  0x6d   :  { %1417 = vmatmul.mubr.f32.gmra.mrb[26].mxu1 %v957_v34  ;;  %v965_v35 = vsel %vm677_vm8, %v533_v16, %v821_v26  ;;  %vm679_vm9 = vcmp.ge.f32.partialorder %v535_v37, 0.0  ;;  %v823_v49 = vmul.f32 0.1, %v535_v37  ;;  %v2389_v51 = vpack.c.bf16 %v1077_v27, %v1076_v21  ;;  %v1110_v21 = vld [vmem:[%s3991_s1 + $0x400] sm:$0xff]  ;;  %v26_v27 = vld [vmem:[%s3992_s0 + $0x30] sm:$0xff] }
  0x6e   :  { %1276 = vmatprep.mubr.f32.mxu0 %v965_v35  ;;  %v2421_v52 = vpack.c.bf16 %v1109_v29, %v1108_v28  ;;  %vm676_vm10 = vcmp.ge.f32.partialorder %v532_v41, 0.0  ;;  %v820_v54 = vmul.f32 0.1, %v532_v41  ;;  %v534_v55 = vadd.f32 %v2804_v56, %v341_v42  ;;  %v34_v28 = vld [vmem:[%s3992_s0 + $0x70] sm:$0xff]  ;;  %v36_v29 = vld [vmem:[%s3992_s0 + $0x80] sm:$0xff] }
  0x6f   :  { %v2391_v57 = vpack.c.bf16 %v1061_v30, %v1060_v38  ;;  %v967_v60 = vsel %vm679_vm9, %v535_v37, %v823_v49  ;;  %2390 = vmatprep.subr.bf16.mxu0 %v2389_v51  ;;  %v2423_v61 = vpack.c.bf16 %v1093_v36, %v1092_v32  ;;  %v349_v62 = vmul.f32 %v2769_v40, %v156_v39  ;;  %v25_v40 = vld [vmem:[%s3992_s0 + $0x28] sm:$0xff] }
  0x70   :  { %2422 = vmatprep.subr.bf16.mxu1 %v2421_v52  ;;  %1421 = vmatprep.mubr.f32.mxu1 %v967_v60  ;;  %v964_v1 = vsel %vm676_vm10, %v532_v41, %v820_v54  ;;  %vm678_vm11 = vcmp.ge.f32.partialorder %v534_v55, 0.0  ;;  %v822_v2 = vmul.f32 0.1, %v534_v55  ;;  %v351_v3 = vmul.f32 %v2777_v43, %v158_v53  ;;  %v2473_v43 = vld [vmem:[%s3993_s2] sm:$0xff]  ;;  %v33_v37 = vld [vmem:[%s3992_s0 + $0x68] sm:$0xff]  ;;  %v35_v41 = vld [vmem:[%s3992_s0 + $0x78] sm:$0xff] }
  0x71   :  { %2392 = vmatpush3.bf16.msra.mxu0 %v2391_v57  ;;  %2424 = vmatpush3.bf16.msra.mxu1 %v2423_v61  ;;  %v542_v4 = vadd.f32 %v2784_v46, %v349_v62  ;;  %v348_v5 = vmul.f32 %v2782_v45, %v155_v58  ;;  %v350_v6 = vmul.f32 %v2793_v50, %v157_v59  ;;  %v194_v7 = vsub.s32 6, %v2642_v0  ;;  %v2474_v45 = vld [vmem:[%s3994_s3] sm:$0xff]  ;;  %v43_v60 = vld [vmem:[%s3992_s0 + $0xb8] sm:$0xff]  ;;  %v45_v61 = vld [vmem:[%s3992_s0 + $0xc8] sm:$0xff] }
  0x72   :  { %1277 = vmatmul.mubr.f32.gmra.mrb[28].mxu0 %v964_v1  ;;  %v966_v8 = vsel %vm678_vm11, %v534_v55, %v822_v2  ;;  %v544_v9 = vadd.f32 %v2786_v47, %v351_v3  ;;  %v3328_v10 = vrot.slane %v2473_v43, %v190_v31  ;;  %v3333_v46 = vrot.slane %v2474_v45, %v190_v31  ;;  %v27_v47 = vld [vmem:[%s3992_s0 + $0x38] sm:$0xff]  ;;  %v42_v3 = vld [vmem:[%s3992_s0 + $0xb0] sm:$0xff] }
  0x73   :  { %1422 = vmatmul.mubr.f32.gmra.mrb[28].mxu1 %v966_v8  ;;  %vm686_vm12 = vcmp.ge.f32.partialorder %v542_v4, 0.0  ;;  %v830_v50 = vmul.f32 0.1, %v542_v4  ;;  %v541_v11 = vadd.f32 %v2788_v48, %v348_v5  ;;  %v543_v12 = vadd.f32 %v2804_v56, %v350_v6  ;;  %v1112_v8 = vld [vmem:[%s3991_s1 + $0x410] sm:$0xff] }
  0x74   :  { %vm688_vm13 = vcmp.ge.f32.partialorder %v544_v9, 0.0  ;;  %v832_v13 = vmul.f32 0.1, %v544_v9  ;;  %v218_v14 = vmul.f32 %v3328_v10, %v25_v40  ;;  %v3343_v15 = vrot.slane %v2473_v43, %v198_v44 }
  0x75   :  { %v974_v16 = vsel %vm686_vm12, %v542_v4, %v830_v50  ;;  %vm685_vm14 = vcmp.ge.f32.partialorder %v541_v11, 0.0  ;;  %v829_v17 = vmul.f32 0.1, %v541_v11  ;;  %vm687_vm15 = vcmp.ge.f32.partialorder %v543_v12, 0.0 }
  0x76   :  { %1281 = vmatprep.mubr.f32.mxu0 %v974_v16  ;;  %v976_v48 = vsel %vm688_vm13, %v544_v9, %v832_v13  ;;  %v831_v18 = vmul.f32 0.1, %v543_v12  ;;  %v411_v56 = vadd.f32 %v3333_v46, %v218_v14  ;;  %v220_v19 = vmul.f32 %v3343_v15, %v27_v47  ;;  %v1113_v9 = vld [vmem:[%s3991_s1 + $0x418] sm:$0xff] }
  0x77   :  { %1426 = vmatprep.mubr.f32.mxu1 %v976_v48  ;;  %v973_v23 = vsel %vm685_vm14, %v541_v11, %v829_v17  ;;  %v3358_v24 = vrot.slane %v2474_v45, %v198_v44  ;;  %v3360_v25 = vrot.slane %v2473_v43, %v186_v63  ;;  %v3362_v26 = vrot.slane %v2474_v45, %v186_v63  ;;  %v52_v11 = vld [vmem:[%s3992_s0 + $0x100] sm:$0xff] }
  0x78   :  { %1282 = vmatmul.mubr.f32.gmra.mrb[30].mxu0 %v973_v23  ;;  %v975_v0 = vsel %vm687_vm15, %v543_v12, %v831_v18  ;;  %vm555_vm0 = vcmp.ge.f32.partialorder %v411_v56, 0.0  ;;  %v699_v33 = vmul.f32 0.1, %v411_v56  ;;  %v3374_v34 = vrot.slane %v2473_v43, %v194_v7  ;;  %v54_v12 = vld [vmem:[%s3992_s0 + $0x110] sm:$0xff] }
  0x79   :  { %1427 = vmatmul.mubr.f32.gmra.mrb[30].mxu1 %v975_v0  ;;  %v413_v38 = vadd.f32 %v3358_v24, %v220_v19  ;;  %v217_v30 = vmul.f32 %v3360_v25, %v24_v20  ;;  %v3381_v31 = vrot.slane %v2474_v45, %v194_v7  ;;  %v2425_v35 = vpack.c.bf16 %v1111_v22, %v1110_v21  ;;  %v44_v7 = vld [vmem:[%s3992_s0 + $0xc0] sm:$0xff]  ;;  %v51_v22 = vld [vmem:[%s3992_s0 + $0xf8] sm:$0xff] }
  0x7a   :  { %v843_v42 = vsel %vm555_vm0, %v411_v56, %v699_v33  ;;  %v219_v32 = vmul.f32 %v3374_v34, %v26_v27  ;;  %v227_v36 = vmul.f32 %v3328_v10, %v34_v28  ;;  %v229_v39 = vmul.f32 %v3343_v15, %v36_v29 }
  0x7b   :  { %1496 = vmatprep.mubr.f32.mxu0 %v843_v42  ;;  %vm557_vm1 = vcmp.ge.f32.partialorder %v413_v38, 0.0  ;;  %v701_v44 = vmul.f32 0.1, %v413_v38  ;;  %v410_v49 = vadd.f32 %v3362_v26, %v217_v30  ;;  %2426 = vmatprep.subr.bf16.mxu0 %v2425_v35  ;;  %v226_v51 = vmul.f32 %v3360_v25, %v33_v37  ;;  %v63_v42 = vld [vmem:[%s3992_s0 + $0x158] sm:$0xff] }
  0x7c   :  { %v412_v52 = vadd.f32 %v3381_v31, %v219_v32  ;;  %2457 = vmatprep.subr.bf16.mxu1 %v2425_v35  ;;  %v420_v53 = vadd.f32 %v3333_v46, %v227_v36  ;;  %v422_v54 = vadd.f32 %v3358_v24, %v229_v39  ;;  %v228_v55 = vmul.f32 %v3374_v34, %v35_v41  ;;  %v61_v41 = vld [vmem:[%s3992_s0 + $0x148] sm:$0xff] }
  0x7d   :  { %v845_v57 = vsel %vm557_vm1, %v413_v38, %v701_v44  ;;  %vm554_vm2 = vcmp.ge.f32.partialorder %v410_v49, 0.0  ;;  %v698_v58 = vmul.f32 0.1, %v410_v49  ;;  %v419_v59 = vadd.f32 %v3362_v26, %v226_v51  ;;  %v60_v51 = vld [vmem:[%s3992_s0 + $0x140] sm:$0xff] }
  0x7e   :  { %1641 = vmatprep.mubr.f32.mxu1 %v845_v57  ;;  %vm556_vm3 = vcmp.ge.f32.partialorder %v412_v52, 0.0  ;;  %v700_v62 = vmul.f32 0.1, %v412_v52  ;;  %vm564_vm4 = vcmp.ge.f32.partialorder %v420_v53, 0.0  ;;  %v708_v63 = vmul.f32 0.1, %v420_v53 }
  0x7f   :  { %v842_v1 = vsel %vm554_vm2, %v410_v49, %v698_v58  ;;  %vm566_vm5 = vcmp.ge.f32.partialorder %v422_v54, 0.0  ;;  %v710_v2 = vmul.f32 0.1, %v422_v54  ;;  %vm563_vm6 = vcmp.ge.f32.partialorder %v419_v59, 0.0  ;;  %v62_v57 = vld [vmem:[%s3992_s0 + $0x150] sm:$0xff]  ;;  %v1114_v58 = vld [vmem:[%s3991_s1 + $0x420] sm:$0xff] }
  0x80   :  { %1497 = vmatmul.mubr.f32.vlgmr.msra.gmra.mrb[32].mxu0 %v842_v1  ;;  %v844_v4 = vsel %vm556_vm3, %v412_v52, %v700_v62  ;;  %v852_v5 = vsel %vm564_vm4, %v420_v53, %v708_v63  ;;  %v707_v6 = vmul.f32 0.1, %v419_v59  ;;  %v421_v40 = vadd.f32 %v3381_v31, %v228_v55 }
  0x81   :  { %1642 = vmatmul.mubr.f32.vlgmr.msra.gmra.mrb[32].mxu1 %v844_v4  ;;  %2428 = vmatpush3.bf16.msra.mxu0 %v2425_v35  ;;  %v854_v43 = vsel %vm566_vm5, %v422_v54, %v710_v2  ;;  %v236_v45 = vmul.f32 %v3328_v10, %v43_v60  ;;  %v238_v50 = vmul.f32 %v3343_v15, %v45_v61 }
  0x82   :  { %2465 = vmatpush3.bf16.msra.mxu1 %v2425_v35  ;;  %1501 = vmatprep.mubr.f32.mxu0 %v852_v5  ;;  %v851_v47 = vsel %vm563_vm6, %v419_v59, %v707_v6  ;;  %vm565_vm7 = vcmp.ge.f32.partialorder %v421_v40, 0.0  ;;  %v709_v13 = vmul.f32 0.1, %v421_v40  ;;  %v235_v14 = vmul.f32 %v3360_v25, %v42_v3  ;;  %v53_v35 = vld [vmem:[%s3992_s0 + $0x108] sm:$0xff] }
  0x83   :  { %1646 = vmatprep.mubr.f32.mxu1 %v854_v43  ;;  %v429_v16 = vadd.f32 %v3333_v46, %v236_v45  ;;  %v431_v17 = vadd.f32 %v3358_v24, %v238_v50  ;;  %v237_v48 = vmul.f32 %v3374_v34, %v44_v7  ;;  %v2429_v18 = vpack.c.bf16 %v1113_v9, %v1112_v8  ;;  %v1115_v59 = vld [vmem:[%s3991_s1 + $0x428] sm:$0xff]  ;;  %v72_v50 = vld [vmem:[%s3992_s0 + $0x1a0] sm:$0xff] }
  0x84   :  { %1502 = vmatmul.mubr.f32.gmra.mrb[34].mxu0 %v851_v47  ;;  %v853_v56 = vsel %vm565_vm7, %v421_v40, %v709_v13  ;;  %v428_v19 = vadd.f32 %v3362_v26, %v235_v14  ;;  %v245_v20 = vmul.f32 %v3328_v10, %v52_v11  ;;  %v247_v21 = vmul.f32 %v3343_v15, %v54_v12  ;;  %v70_v40 = vld [vmem:[%s3992_s0 + $0x190] sm:$0xff]  ;;  %v69_v11 = vld [vmem:[%s3992_s0 + $0x188] sm:$0xff]  ;;  %v71_v14 = vld [vmem:[%s3992_s0 + $0x198] sm:$0xff] }
  0x85   :  { %1647 = vmatmul.mubr.f32.gmra.mrb[34].mxu1 %v853_v56  ;;  %vm573_vm8 = vcmp.ge.f32.partialorder %v429_v16, 0.0  ;;  %v717_v23 = vmul.f32 0.1, %v429_v16  ;;  %vm575_vm9 = vcmp.ge.f32.partialorder %v431_v17, 0.0  ;;  %v719_v27 = vmul.f32 0.1, %v431_v17  ;;  %2430 = vmatprep.subr.bf16.mxu0 %v2429_v18 }
  0x86   :  { %vm572_vm10 = vcmp.ge.f32.partialorder %v428_v19, 0.0  ;;  %v716_v28 = vmul.f32 0.1, %v428_v19  ;;  %v430_v29 = vadd.f32 %v3381_v31, %v237_v48  ;;  %2458 = vmatprep.subr.bf16.mxu1 %v2429_v18  ;;  %2432 = vmatpush3.bf16.msra.mxu0 %v2429_v18  ;;  %v438_v0 = vadd.f32 %v3333_v46, %v245_v20 }
  0x87   :  { %v861_v33 = vsel %vm573_vm8, %v429_v16, %v717_v23  ;;  %v863_v37 = vsel %vm575_vm9, %v431_v17, %v719_v27  ;;  %2466 = vmatpush3.bf16.msra.mxu1 %v2429_v18  ;;  %v440_v38 = vadd.f32 %v3358_v24, %v247_v21  ;;  %v244_v30 = vmul.f32 %v3360_v25, %v51_v22  ;;  %v79_v16 = vld [vmem:[%s3992_s0 + $0x1d8] sm:$0xff]  ;;  %v81_v17 = vld [vmem:[%s3992_s0 + $0x1e8] sm:$0xff] }
  0x88   :  { %1506 = vmatprep.mubr.f32.mxu0 %v861_v33  ;;  %1651 = vmatprep.mubr.f32.mxu1 %v863_v37  ;;  %v860_v32 = vsel %vm572_vm10, %v428_v19, %v716_v28  ;;  %vm574_vm11 = vcmp.ge.f32.partialorder %v430_v29, 0.0  ;;  %v718_v36 = vmul.f32 0.1, %v430_v29  ;;  %vm582_vm12 = vcmp.ge.f32.partialorder %v438_v0, 0.0 }
  0x89   :  { %1507 = vmatmul.mubr.f32.gmra.mrb[36].mxu0 %v860_v32  ;;  %v726_v39 = vmul.f32 0.1, %v438_v0  ;;  %vm584_vm13 = vcmp.ge.f32.partialorder %v440_v38, 0.0  ;;  %v728_v44 = vmul.f32 0.1, %v440_v38  ;;  %v437_v49 = vadd.f32 %v3362_v26, %v244_v30 }
  0x8a   :  { %v862_v52 = vsel %vm574_vm11, %v430_v29, %v718_v36  ;;  %v246_v53 = vmul.f32 %v3374_v34, %v53_v35  ;;  %v254_v54 = vmul.f32 %v3328_v10, %v61_v41  ;;  %v256_v55 = vmul.f32 %v3343_v15, %v63_v42  ;;  %v78_v29 = vld [vmem:[%s3992_s0 + $0x1d0] sm:$0xff] }
  0x8b   :  { %1652 = vmatmul.mubr.f32.gmra.mrb[36].mxu1 %v862_v52  ;;  %v870_v60 = vsel %vm582_vm12, %v438_v0, %v726_v39  ;;  %v872_v61 = vsel %vm584_vm13, %v440_v38, %v728_v44  ;;  %vm581_vm14 = vcmp.ge.f32.partialorder %v437_v49, 0.0  ;;  %v725_v62 = vmul.f32 0.1, %v437_v49  ;;  %v80_v39 = vld [vmem:[%s3992_s0 + $0x1e0] sm:$0xff]  ;;  %v1116_v44 = vld [vmem:[%s3991_s1 + $0x430] sm:$0xff] }
  0x8c   :  { %1511 = vmatprep.mubr.f32.mxu0 %v870_v60  ;;  %1656 = vmatprep.mubr.f32.mxu1 %v872_v61  ;;  %v439_v63 = vadd.f32 %v3381_v31, %v246_v53  ;;  %v447_v1 = vadd.f32 %v3333_v46, %v254_v54  ;;  %v449_v2 = vadd.f32 %v3358_v24, %v256_v55  ;;  %v88_v55 = vld [vmem:[%s3992_s0 + $0x220] sm:$0xff]  ;;  %v90_v61 = vld [vmem:[%s3992_s0 + $0x230] sm:$0xff] }
  0x8d   :  { %v869_v3 = vsel %vm581_vm14, %v437_v49, %v725_v62  ;;  %v253_v4 = vmul.f32 %v3360_v25, %v60_v51  ;;  %v255_v5 = vmul.f32 %v3374_v34, %v62_v57  ;;  %v2433_v6 = vpack.c.bf16 %v1115_v59, %v1114_v58  ;;  %v1117_v49 = vld [vmem:[%s3991_s1 + $0x438] sm:$0xff] }
  0x8e   :  { %1512 = vmatmul.mubr.f32.gmra.mrb[38].mxu0 %v869_v3  ;;  %vm583_vm15 = vcmp.ge.f32.partialorder %v439_v63, 0.0  ;;  %v727_v7 = vmul.f32 0.1, %v439_v63  ;;  %vm591_vm0 = vcmp.ge.f32.partialorder %v447_v1, 0.0  ;;  %v735_v8 = vmul.f32 0.1, %v447_v1 }
  0x8f   :  { %vm593_vm1 = vcmp.ge.f32.partialorder %v449_v2, 0.0  ;;  %v737_v9 = vmul.f32 0.1, %v449_v2  ;;  %v446_v43 = vadd.f32 %v3362_v26, %v253_v4  ;;  %v448_v45 = vadd.f32 %v3381_v31, %v255_v5  ;;  %2434 = vmatprep.subr.bf16.mxu0 %v2433_v6  ;;  %2459 = vmatprep.subr.bf16.mxu1 %v2433_v6  ;;  %v87_v62 = vld [vmem:[%s3992_s0 + $0x218] sm:$0xff]  ;;  %v89_v3 = vld [vmem:[%s3992_s0 + $0x228] sm:$0xff] }
  0x90   :  { %v871_v12 = vsel %vm583_vm15, %v439_v63, %v727_v7  ;;  %v879_v47 = vsel %vm591_vm0, %v447_v1, %v735_v8  ;;  %2436 = vmatpush3.bf16.msra.mxu0 %v2433_v6  ;;  %2467 = vmatpush3.bf16.msra.mxu1 %v2433_v6  ;;  %v263_v13 = vmul.f32 %v3328_v10, %v70_v40 }
  0x91   :  { %1657 = vmatmul.mubr.f32.gmra.mrb[38].mxu1 %v871_v12  ;;  %1516 = vmatprep.mubr.f32.mxu0 %v879_v47  ;;  %v881_v48 = vsel %vm593_vm1, %v449_v2, %v737_v9  ;;  %vm590_vm2 = vcmp.ge.f32.partialorder %v446_v43, 0.0  ;;  %v734_v18 = vmul.f32 0.1, %v446_v43  ;;  %vm592_vm3 = vcmp.ge.f32.partialorder %v448_v45, 0.0  ;;  %v97_v9 = vld [vmem:[%s3992_s0 + $0x268] sm:$0xff] }
  0x92   :  { %1661 = vmatprep.mubr.f32.mxu1 %v881_v48  ;;  %v736_v56 = vmul.f32 0.1, %v448_v45  ;;  %v456_v19 = vadd.f32 %v3333_v46, %v263_v13  ;;  %v265_v20 = vmul.f32 %v3343_v15, %v72_v50  ;;  %v262_v21 = vmul.f32 %v3360_v25, %v69_v11  ;;  %v96_v48 = vld [vmem:[%s3992_s0 + $0x260] sm:$0xff] }
  0x93   :  { %v878_v22 = vsel %vm590_vm2, %v446_v43, %v734_v18  ;;  %v264_v23 = vmul.f32 %v3374_v34, %v71_v14  ;;  %v272_v27 = vmul.f32 %v3328_v10, %v79_v16  ;;  %v274_v28 = vmul.f32 %v3343_v15, %v81_v17  ;;  %v99_v17 = vld [vmem:[%s3992_s0 + $0x278] sm:$0xff]  ;;  %v98_v18 = vld [vmem:[%s3992_s0 + $0x270] sm:$0xff] }
  0x94   :  { %1517 = vmatmul.mubr.f32.gmra.mrb[40].mxu0 %v878_v22  ;;  %v880_v0 = vsel %vm592_vm3, %v448_v45, %v736_v56  ;;  %vm600_vm4 = vcmp.ge.f32.partialorder %v456_v19, 0.0  ;;  %v744_v33 = vmul.f32 0.1, %v456_v19  ;;  %v458_v37 = vadd.f32 %v3358_v24, %v265_v20  ;;  %v1118_v20 = vld [vmem:[%s3991_s1 + $0x440] sm:$0xff] }
  0x95   :  { %1662 = vmatmul.mubr.f32.gmra.mrb[40].mxu1 %v880_v0  ;;  %v455_v38 = vadd.f32 %v3362_v26, %v262_v21  ;;  %v457_v30 = vadd.f32 %v3381_v31, %v264_v23  ;;  %v465_v35 = vadd.f32 %v3333_v46, %v272_v27  ;;  %v467_v41 = vadd.f32 %v3358_v24, %v274_v28  ;;  %v1119_v21 = vld [vmem:[%s3991_s1 + $0x448] sm:$0xff] }
  0x96   :  { %v888_v42 = vsel %vm600_vm4, %v456_v19, %v744_v33  ;;  %vm602_vm5 = vcmp.ge.f32.partialorder %v458_v37, 0.0  ;;  %v746_v32 = vmul.f32 0.1, %v458_v37  ;;  %v271_v36 = vmul.f32 %v3360_v25, %v78_v29 }
  0x97   :  { %1521 = vmatprep.mubr.f32.mxu0 %v888_v42  ;;  %vm599_vm6 = vcmp.ge.f32.partialorder %v455_v38, 0.0  ;;  %v743_v51 = vmul.f32 0.1, %v455_v38  ;;  %vm601_vm7 = vcmp.ge.f32.partialorder %v457_v30, 0.0  ;;  %v745_v52 = vmul.f32 0.1, %v457_v30 }
  0x98   :  { %v890_v53 = vsel %vm602_vm5, %v458_v37, %v746_v32  ;;  %vm609_vm8 = vcmp.ge.f32.partialorder %v465_v35, 0.0  ;;  %v753_v54 = vmul.f32 0.1, %v465_v35  ;;  %vm611_vm9 = vcmp.ge.f32.partialorder %v467_v41, 0.0  ;;  %v106_v37 = vld [vmem:[%s3992_s0 + $0x2b0] sm:$0xff] }
  0x99   :  { %1666 = vmatprep.mubr.f32.mxu1 %v890_v53  ;;  %v887_v57 = vsel %vm599_vm6, %v455_v38, %v743_v51  ;;  %v889_v58 = vsel %vm601_vm7, %v457_v30, %v745_v52  ;;  %v755_v59 = vmul.f32 0.1, %v467_v41  ;;  %v464_v60 = vadd.f32 %v3362_v26, %v271_v36  ;;  %v108_v38 = vld [vmem:[%s3992_s0 + $0x2c0] sm:$0xff]  ;;  %v105_v52 = vld [vmem:[%s3992_s0 + $0x2a8] sm:$0xff]  ;;  %v107_v53 = vld [vmem:[%s3992_s0 + $0x2b8] sm:$0xff] }
  0x9a   :  { %1522 = vmatmul.mubr.f32.gmra.mrb[42].mxu0 %v887_v57  ;;  %1667 = vmatmul.mubr.f32.gmra.mrb[42].mxu1 %v889_v58  ;;  %v897_v63 = vsel %vm609_vm8, %v465_v35, %v753_v54  ;;  %v273_v1 = vmul.f32 %v3374_v34, %v80_v39  ;;  %v2437_v2 = vpack.c.bf16 %v1117_v49, %v1116_v44 }
  0x9b   :  { %1526 = vmatprep.mubr.f32.mxu0 %v897_v63  ;;  %v899_v4 = vsel %vm611_vm9, %v467_v41, %v755_v59  ;;  %vm608_vm10 = vcmp.ge.f32.partialorder %v464_v60, 0.0  ;;  %v752_v5 = vmul.f32 0.1, %v464_v60  ;;  %v281_v6 = vmul.f32 %v3328_v10, %v88_v55 }
  0x9c   :  { %1671 = vmatprep.mubr.f32.mxu1 %v899_v4  ;;  %v466_v40 = vadd.f32 %v3381_v31, %v273_v1  ;;  %2438 = vmatprep.subr.bf16.mxu0 %v2437_v2  ;;  %v283_v7 = vmul.f32 %v3343_v15, %v90_v61  ;;  %v280_v8 = vmul.f32 %v3360_v25, %v87_v62  ;;  %v115_v1 = vld [vmem:[%s3992_s0 + $0x2f8] sm:$0xff] }
  0x9d   :  { %v896_v43 = vsel %vm608_vm10, %v464_v60, %v752_v5  ;;  %2460 = vmatprep.subr.bf16.mxu1 %v2437_v2  ;;  %2440 = vmatpush3.bf16.msra.mxu0 %v2437_v2  ;;  %v474_v45 = vadd.f32 %v3333_v46, %v281_v6  ;;  %v282_v50 = vmul.f32 %v3374_v34, %v89_v3  ;;  %v114_v3 = vld [vmem:[%s3992_s0 + $0x2f0] sm:$0xff] }
  0x9e   :  { %1527 = vmatmul.mubr.f32.gmra.mrb[44].mxu0 %v896_v43  ;;  %vm610_vm11 = vcmp.ge.f32.partialorder %v466_v40, 0.0  ;;  %v754_v11 = vmul.f32 0.1, %v466_v40  ;;  %2468 = vmatpush3.bf16.msra.mxu1 %v2437_v2  ;;  %v476_v12 = vadd.f32 %v3358_v24, %v283_v7  ;;  %v473_v47 = vadd.f32 %v3362_v26, %v280_v8  ;;  %v117_v2 = vld [vmem:[%s3992_s0 + $0x308] sm:$0xff] }
  0x9f   :  { %vm618_vm12 = vcmp.ge.f32.partialorder %v474_v45, 0.0  ;;  %v762_v13 = vmul.f32 0.1, %v474_v45  ;;  %v475_v14 = vadd.f32 %v3381_v31, %v282_v50  ;;  %v290_v16 = vmul.f32 %v3328_v10, %v97_v9  ;;  %v116_v9 = vld [vmem:[%s3992_s0 + $0x300] sm:$0xff] }
  0xa0   :  { %v898_v56 = vsel %vm610_vm11, %v466_v40, %v754_v11  ;;  %vm620_vm13 = vcmp.ge.f32.partialorder %v476_v12, 0.0  ;;  %v764_v19 = vmul.f32 0.1, %v476_v12  ;;  %vm617_vm14 = vcmp.ge.f32.partialorder %v473_v47, 0.0 }
  0xa1   :  { %1672 = vmatmul.mubr.f32.gmra.mrb[44].mxu1 %v898_v56  ;;  %v906_v22 = vsel %vm618_vm12, %v474_v45, %v762_v13  ;;  %v761_v23 = vmul.f32 0.1, %v473_v47  ;;  %vm619_vm15 = vcmp.ge.f32.partialorder %v475_v14, 0.0  ;;  %v763_v27 = vmul.f32 0.1, %v475_v14  ;;  %v124_v13 = vld [vmem:[%s3992_s0 + $0x340] sm:$0xff] }
  0xa2   :  { %1531 = vmatprep.mubr.f32.mxu0 %v906_v22  ;;  %v908_v28 = vsel %vm620_vm13, %v476_v12, %v764_v19  ;;  %v483_v29 = vadd.f32 %v3333_v46, %v290_v16  ;;  %v292_v0 = vmul.f32 %v3343_v15, %v99_v17  ;;  %v289_v33 = vmul.f32 %v3360_v25, %v96_v48  ;;  %v1120_v12 = vld [vmem:[%s3991_s1 + $0x450] sm:$0xff] }
  0xa3   :  { %1676 = vmatprep.mubr.f32.mxu1 %v908_v28  ;;  %v905_v30 = vsel %vm617_vm14, %v473_v47, %v761_v23  ;;  %v907_v35 = vsel %vm619_vm15, %v475_v14, %v763_v27  ;;  %v291_v41 = vmul.f32 %v3374_v34, %v98_v18  ;;  %v2441_v42 = vpack.c.bf16 %v1119_v21, %v1118_v20  ;;  %v1121_v47 = vld [vmem:[%s3991_s1 + $0x458] sm:$0xff]  ;;  %v126_v23 = vld [vmem:[%s3992_s0 + $0x350] sm:$0xff] }
  0xa4   :  { %1532 = vmatmul.mubr.f32.gmra.mrb[46].mxu0 %v905_v30  ;;  %vm627_vm0 = vcmp.ge.f32.partialorder %v483_v29, 0.0  ;;  %v771_v32 = vmul.f32 0.1, %v483_v29  ;;  %v485_v36 = vadd.f32 %v3358_v24, %v292_v0  ;;  %v482_v39 = vadd.f32 %v3362_v26, %v289_v33 }
  0xa5   :  { %1677 = vmatmul.mubr.f32.gmra.mrb[46].mxu1 %v907_v35  ;;  %v484_v44 = vadd.f32 %v3381_v31, %v291_v41  ;;  %2442 = vmatprep.subr.bf16.mxu0 %v2441_v42  ;;  %v299_v49 = vmul.f32 %v3328_v10, %v106_v37  ;;  %v301_v51 = vmul.f32 %v3343_v15, %v108_v38  ;;  %v123_v37 = vld [vmem:[%s3992_s0 + $0x338] sm:$0xff]  ;;  %v125_v41 = vld [vmem:[%s3992_s0 + $0x348] sm:$0xff] }
  0xa6   :  { %v915_v54 = vsel %vm627_vm0, %v483_v29, %v771_v32  ;;  %vm629_vm1 = vcmp.ge.f32.partialorder %v485_v36, 0.0  ;;  %v773_v55 = vmul.f32 0.1, %v485_v36  ;;  %vm626_vm2 = vcmp.ge.f32.partialorder %v482_v39, 0.0  ;;  %2461 = vmatprep.subr.bf16.mxu1 %v2441_v42  ;;  %2444 = vmatpush3.bf16.msra.mxu0 %v2441_v42  ;;  %v135_v32 = vld [vmem:[%s3992_s0 + $0x398] sm:$0xff] }
  0xa7   :  { %1536 = vmatprep.mubr.f32.mxu0 %v915_v54  ;;  %v770_v57 = vmul.f32 0.1, %v482_v39  ;;  %vm628_vm3 = vcmp.ge.f32.partialorder %v484_v44, 0.0  ;;  %v772_v58 = vmul.f32 0.1, %v484_v44  ;;  %2469 = vmatpush3.bf16.msra.mxu1 %v2441_v42  ;;  %v492_v59 = vadd.f32 %v3333_v46, %v299_v49  ;;  %v133_v42 = vld [vmem:[%s3992_s0 + $0x388] sm:$0xff] }
  0xa8   :  { %v917_v60 = vsel %vm629_vm1, %v485_v36, %v773_v55  ;;  %v494_v61 = vadd.f32 %v3358_v24, %v301_v51  ;;  %v298_v62 = vmul.f32 %v3360_v25, %v105_v52  ;;  %v300_v63 = vmul.f32 %v3374_v34, %v107_v53  ;;  %v132_v53 = vld [vmem:[%s3992_s0 + $0x380] sm:$0xff] }
  0xa9   :  { %1681 = vmatprep.mubr.f32.mxu1 %v917_v60  ;;  %v914_v4 = vsel %vm626_vm2, %v482_v39, %v770_v57  ;;  %v916_v5 = vsel %vm628_vm3, %v484_v44, %v772_v58  ;;  %vm636_vm4 = vcmp.ge.f32.partialorder %v492_v59, 0.0  ;;  %v780_v6 = vmul.f32 0.1, %v492_v59 }
  0xaa   :  { %1537 = vmatmul.mubr.f32.gmra.mrb[48].mxu0 %v914_v4  ;;  %1682 = vmatmul.mubr.f32.gmra.mrb[48].mxu1 %v916_v5  ;;  %vm638_vm5 = vcmp.ge.f32.partialorder %v494_v61, 0.0  ;;  %v782_v40 = vmul.f32 0.1, %v494_v61  ;;  %v491_v7 = vadd.f32 %v3362_v26, %v298_v62  ;;  %v493_v8 = vadd.f32 %v3381_v31, %v300_v63 }
  0xab   :  { %v924_v43 = vsel %vm636_vm4, %v492_v59, %v780_v6  ;;  %v308_v45 = vmul.f32 %v3328_v10, %v115_v1  ;;  %v310_v50 = vmul.f32 %v3343_v15, %v117_v2  ;;  %v307_v11 = vmul.f32 %v3360_v25, %v114_v3  ;;  %v134_v59 = vld [vmem:[%s3992_s0 + $0x390] sm:$0xff] }
  0xac   :  { %1541 = vmatprep.mubr.f32.mxu0 %v924_v43  ;;  %v926_v14 = vsel %vm638_vm5, %v494_v61, %v782_v40  ;;  %vm635_vm6 = vcmp.ge.f32.partialorder %v491_v7, 0.0  ;;  %v779_v16 = vmul.f32 0.1, %v491_v7  ;;  %vm637_vm7 = vcmp.ge.f32.partialorder %v493_v8, 0.0  ;;  %v1122_v40 = vld [vmem:[%s3991_s1 + $0x460] sm:$0xff] }
  0xad   :  { %1686 = vmatprep.mubr.f32.mxu1 %v926_v14  ;;  %v781_v17 = vmul.f32 0.1, %v493_v8  ;;  %v501_v48 = vadd.f32 %v3333_v46, %v308_v45  ;;  %v503_v18 = vadd.f32 %v3358_v24, %v310_v50  ;;  %v500_v56 = vadd.f32 %v3362_v26, %v307_v11 }
  0xae   :  { %v923_v19 = vsel %vm635_vm6, %v491_v7, %v779_v16  ;;  %v309_v20 = vmul.f32 %v3374_v34, %v116_v9  ;;  %v2445_v21 = vpack.c.bf16 %v1121_v47, %v1120_v12  ;;  %v317_v22 = vmul.f32 %v3328_v10, %v124_v13  ;;  %v1123_v7 = vld [vmem:[%s3991_s1 + $0x468] sm:$0xff]  ;;  %v144_v12 = vld [vmem:[%s3992_s0 + $0x3e0] sm:$0xff] }
  0xaf   :  { %1542 = vmatmul.mubr.f32.gmra.mrb[50].mxu0 %v923_v19  ;;  %v925_v27 = vsel %vm637_vm7, %v493_v8, %v781_v17  ;;  %vm645_vm8 = vcmp.ge.f32.partialorder %v501_v48, 0.0  ;;  %v789_v28 = vmul.f32 0.1, %v501_v48  ;;  %vm647_vm9 = vcmp.ge.f32.partialorder %v503_v18, 0.0  ;;  %v142_v8 = vld [vmem:[%s3992_s0 + $0x3d0] sm:$0xff]  ;;  %v141_v47 = vld [vmem:[%s3992_s0 + $0x3c8] sm:$0xff] }
  0xb0   :  { %1687 = vmatmul.mubr.f32.gmra.mrb[50].mxu1 %v925_v27  ;;  %v791_v29 = vmul.f32 0.1, %v503_v18  ;;  %vm644_vm10 = vcmp.ge.f32.partialorder %v500_v56, 0.0  ;;  %v788_v0 = vmul.f32 0.1, %v500_v56  ;;  %v502_v33 = vadd.f32 %v3381_v31, %v309_v20  ;;  %2446 = vmatprep.subr.bf16.mxu0 %v2445_v21 }
  0xb1   :  { %v933_v38 = vsel %vm645_vm8, %v501_v48, %v789_v28  ;;  %2462 = vmatprep.subr.bf16.mxu1 %v2445_v21  ;;  %2448 = vmatpush3.bf16.msra.mxu0 %v2445_v21  ;;  %v510_v30 = vadd.f32 %v3333_v46, %v317_v22  ;;  %v319_v35 = vmul.f32 %v3343_v15, %v126_v23  ;;  %v143_v48 = vld [vmem:[%s3992_s0 + $0x3d8] sm:$0xff] }
  0xb2   :  { %1546 = vmatprep.mubr.f32.mxu0 %v933_v38  ;;  %v935_v36 = vsel %vm647_vm9, %v503_v18, %v791_v29  ;;  %v932_v39 = vsel %vm644_vm10, %v500_v56, %v788_v0  ;;  %vm646_vm11 = vcmp.ge.f32.partialorder %v502_v33, 0.0  ;;  %v790_v44 = vmul.f32 0.1, %v502_v33  ;;  %2470 = vmatpush3.bf16.msra.mxu1 %v2445_v21  ;;  %v151_v23 = vld [vmem:[%s3992_s0 + $0x418] sm:$0xff] }
  0xb3   :  { %1691 = vmatprep.mubr.f32.mxu1 %v935_v36  ;;  %1547 = vmatmul.mubr.f32.gmra.mrb[52].mxu0 %v932_v39  ;;  %vm654_vm12 = vcmp.ge.f32.partialorder %v510_v30, 0.0  ;;  %v798_v49 = vmul.f32 0.1, %v510_v30  ;;  %v512_v51 = vadd.f32 %v3358_v24, %v319_v35  ;;  %v316_v52 = vmul.f32 %v3360_v25, %v123_v37 }
  0xb4   :  { %v934_v54 = vsel %vm646_vm11, %v502_v33, %v790_v44  ;;  %v318_v55 = vmul.f32 %v3374_v34, %v125_v41  ;;  %v326_v57 = vmul.f32 %v3328_v10, %v133_v42  ;;  %v328_v58 = vmul.f32 %v3343_v15, %v135_v32  ;;  %v153_v41 = vld [vmem:[%s3992_s0 + $0x428] sm:$0xff]  ;;  %v150_v42 = vld [vmem:[%s3992_s0 + $0x410] sm:$0xff]  ;;  %v152_v32 = vld [vmem:[%s3992_s0 + $0x420] sm:$0xff] }
  0xb5   :  { %1692 = vmatmul.mubr.f32.gmra.mrb[52].mxu1 %v934_v54  ;;  %v942_v60 = vsel %vm654_vm12, %v510_v30, %v798_v49  ;;  %vm656_vm13 = vcmp.ge.f32.partialorder %v512_v51, 0.0  ;;  %v800_v61 = vmul.f32 0.1, %v512_v51  ;;  %v509_v62 = vadd.f32 %v3362_v26, %v316_v52  ;;  %v1124_v52 = vld [vmem:[%s3991_s1 + $0x470] sm:$0xff]  ;;  %v160_v54 = vld [vmem:[%s3992_s0 + $0x460] sm:$0xff] }
  0xb6   :  { %1551 = vmatprep.mubr.f32.mxu0 %v942_v60  ;;  %v511_v63 = vadd.f32 %v3381_v31, %v318_v55  ;;  %v519_v1 = vadd.f32 %v3333_v46, %v326_v57  ;;  %v521_v2 = vadd.f32 %v3358_v24, %v328_v58  ;;  %v325_v3 = vmul.f32 %v3360_v25, %v132_v53  ;;  %v1125_v53 = vld [vmem:[%s3991_s1 + $0x478] sm:$0xff]  ;;  %v162_v60 = vld [vmem:[%s3992_s0 + $0x470] sm:$0xff] }
  0xb7   :  { %v944_v4 = vsel %vm656_vm13, %v512_v51, %v800_v61  ;;  %vm653_vm14 = vcmp.ge.f32.partialorder %v509_v62, 0.0  ;;  %v797_v5 = vmul.f32 0.1, %v509_v62  ;;  %v327_v6 = vmul.f32 %v3374_v34, %v134_v59  ;;  %v159_v61 = vld [vmem:[%s3992_s0 + $0x458] sm:$0xff] }
  0xb8   :  { %1696 = vmatprep.mubr.f32.mxu1 %v944_v4  ;;  %vm655_vm15 = vcmp.ge.f32.partialorder %v511_v63, 0.0  ;;  %v799_v9 = vmul.f32 0.1, %v511_v63  ;;  %vm663_vm0 = vcmp.ge.f32.partialorder %v519_v1, 0.0  ;;  %v807_v43 = vmul.f32 0.1, %v519_v1 }
  0xb9   :  { %v941_v45 = vsel %vm653_vm14, %v509_v62, %v797_v5  ;;  %vm665_vm1 = vcmp.ge.f32.partialorder %v521_v2, 0.0  ;;  %v809_v50 = vmul.f32 0.1, %v521_v2  ;;  %v518_v11 = vadd.f32 %v3362_v26, %v325_v3 }
  0xba   :  { %1552 = vmatmul.mubr.f32.gmra.mrb[54].mxu0 %v941_v45  ;;  %v943_v13 = vsel %vm655_vm15, %v511_v63, %v799_v9  ;;  %v951_v14 = vsel %vm663_vm0, %v519_v1, %v807_v43  ;;  %v520_v16 = vadd.f32 %v3381_v31, %v327_v6  ;;  %v2449_v17 = vpack.c.bf16 %v1123_v7, %v1122_v40  ;;  %v161_v9 = vld [vmem:[%s3992_s0 + $0x468] sm:$0xff] }
  0xbb   :  { %1697 = vmatmul.mubr.f32.gmra.mrb[54].mxu1 %v943_v13  ;;  %1556 = vmatprep.mubr.f32.mxu0 %v951_v14  ;;  %v953_v18 = vsel %vm665_vm1, %v521_v2, %v809_v50  ;;  %vm662_vm2 = vcmp.ge.f32.partialorder %v518_v11, 0.0  ;;  %v806_v56 = vmul.f32 0.1, %v518_v11  ;;  %v335_v19 = vmul.f32 %v3328_v10, %v142_v8  ;;  %v3731_v14 = vld [vmem:[%s3993_s2 + $0x8] ss:$0 sm:$0xff] }
  0xbc   :  { %1701 = vmatprep.mubr.f32.mxu1 %v953_v18  ;;  %vm664_vm3 = vcmp.ge.f32.partialorder %v520_v16, 0.0  ;;  %v808_v20 = vmul.f32 0.1, %v520_v16  ;;  %2450 = vmatprep.subr.bf16.mxu0 %v2449_v17  ;;  %v337_v21 = vmul.f32 %v3343_v15, %v144_v12  ;;  %v334_v22 = vmul.f32 %v3360_v25, %v141_v47 }
  0xbd   :  { %v950_v27 = vsel %vm662_vm2, %v518_v11, %v806_v56  ;;  %2463 = vmatprep.subr.bf16.mxu1 %v2449_v17  ;;  %2452 = vmatpush3.bf16.msra.mxu0 %v2449_v17  ;;  %v528_v28 = vadd.f32 %v3333_v46, %v335_v19  ;;  %v336_v29 = vmul.f32 %v3374_v34, %v143_v48 }
  0xbe   :  { %1557 = vmatmul.mubr.f32.gmra.mrb[56].mxu0 %v950_v27  ;;  %v952_v0 = vsel %vm664_vm3, %v520_v16, %v808_v20  ;;  %2471 = vmatpush3.bf16.msra.mxu1 %v2449_v17  ;;  %v530_v33 = vadd.f32 %v3358_v24, %v337_v21  ;;  %v527_v37 = vadd.f32 %v3362_v26, %v334_v22  ;;  %v109_v22 = vld [vmem:[%s3992_s0 + $0x2c8] sm:$0xff]  ;;  %v118_v27 = vld [vmem:[%s3992_s0 + $0x310] sm:$0xff] }
  0xbf   :  { %1702 = vmatmul.mubr.f32.gmra.mrb[56].mxu1 %v952_v0  ;;  %vm672_vm4 = vcmp.ge.f32.partialorder %v528_v28, 0.0  ;;  %v816_v38 = vmul.f32 0.1, %v528_v28  ;;  %v529_v30 = vadd.f32 %v3381_v31, %v336_v29  ;;  %v344_v35 = vmul.f32 %v3328_v10, %v151_v23  ;;  %v46_v23 = vld [vmem:[%s3992_s0 + $0xd0] sm:$0xff] }
  0xc0   :  { %vm674_vm5 = vcmp.ge.f32.partialorder %v530_v33, 0.0  ;;  %v818_v36 = vmul.f32 0.1, %v530_v33  ;;  %vm671_vm6 = vcmp.ge.f32.partialorder %v527_v37, 0.0  ;;  %v815_v39 = vmul.f32 0.1, %v527_v37 }
  0xc1   :  { %v960_v44 = vsel %vm672_vm4, %v528_v28, %v816_v38  ;;  %vm673_vm7 = vcmp.ge.f32.partialorder %v529_v30, 0.0  ;;  %v817_v49 = vmul.f32 0.1, %v529_v30  ;;  %v537_v51 = vadd.f32 %v3333_v46, %v344_v35 }
  0xc2   :  { %1561 = vmatprep.mubr.f32.mxu0 %v960_v44  ;;  %v962_v55 = vsel %vm674_vm5, %v530_v33, %v818_v36  ;;  %v959_v57 = vsel %vm671_vm6, %v527_v37, %v815_v39  ;;  %v346_v58 = vmul.f32 %v3343_v15, %v153_v41  ;;  %v343_v59 = vmul.f32 %v3360_v25, %v150_v42  ;;  %v55_v42 = vld [vmem:[%s3992_s0 + $0x118] sm:$0xff] }
  0xc3   :  { %1706 = vmatprep.mubr.f32.mxu1 %v962_v55  ;;  %1562 = vmatmul.mubr.f32.gmra.mrb[58].mxu0 %v959_v57  ;;  %v961_v62 = vsel %vm673_vm7, %v529_v30, %v817_v49  ;;  %vm681_vm8 = vcmp.ge.f32.partialorder %v537_v51, 0.0  ;;  %v825_v63 = vmul.f32 0.1, %v537_v51  ;;  %v345_v1 = vmul.f32 %v3374_v34, %v152_v32  ;;  %v127_v55 = vld [vmem:[%s3992_s0 + $0x358] sm:$0xff]  ;;  %v64_v57 = vld [vmem:[%s3992_s0 + $0x160] sm:$0xff] }
  0xc4   :  { %1707 = vmatmul.mubr.f32.gmra.mrb[58].mxu1 %v961_v62  ;;  %v539_v2 = vadd.f32 %v3358_v24, %v346_v58  ;;  %v536_v3 = vadd.f32 %v3362_v26, %v343_v59  ;;  %v2453_v4 = vpack.c.bf16 %v1125_v53, %v1124_v52  ;;  %v353_v5 = vmul.f32 %v3328_v10, %v160_v54  ;;  %v136_v58 = vld [vmem:[%s3992_s0 + $0x3a0] sm:$0xff] }
  0xc5   :  { %v969_v6 = vsel %vm681_vm8, %v537_v51, %v825_v63  ;;  %v538_v40 = vadd.f32 %v3381_v31, %v345_v1  ;;  %v355_v7 = vmul.f32 %v3343_v15, %v162_v60  ;;  %v352_v8 = vmul.f32 %v3360_v25, %v159_v61  ;;  %v28_v25 = vld [vmem:[%s3992_s0 + $0x40] sm:$0xff] }
  0xc6   :  { %1566 = vmatprep.mubr.f32.mxu0 %v969_v6  ;;  %vm683_vm9 = vcmp.ge.f32.partialorder %v539_v2, 0.0  ;;  %v827_v43 = vmul.f32 0.1, %v539_v2  ;;  %vm680_vm10 = vcmp.ge.f32.partialorder %v536_v3, 0.0  ;;  %v824_v45 = vmul.f32 0.1, %v536_v3  ;;  %2454 = vmatprep.subr.bf16.mxu0 %v2453_v4 }
  0xc7   :  { %vm682_vm11 = vcmp.ge.f32.partialorder %v538_v40, 0.0  ;;  %v826_v50 = vmul.f32 0.1, %v538_v40  ;;  %2464 = vmatprep.subr.bf16.mxu1 %v2453_v4  ;;  %2456 = vmatpush3.bf16.msra.mxu0 %v2453_v4  ;;  %v546_v10 = vadd.f32 %v3333_v46, %v353_v5  ;;  %v548_v15 = vadd.f32 %v3358_v24, %v355_v7  ;;  %v100_v46 = vld [vmem:[%s3992_s0 + $0x280] sm:$0xff]  ;;  %v37_v24 = vld [vmem:[%s3992_s0 + $0x88] sm:$0xff] }
  0xc8   :  { %v971_v11 = vsel %vm683_vm9, %v539_v2, %v827_v43  ;;  %v968_v12 = vsel %vm680_vm10, %v536_v3, %v824_v45  ;;  %2472 = vmatpush3.bf16.msra.mxu1 %v2453_v4  ;;  %v545_v47 = vadd.f32 %v3362_v26, %v352_v8  ;;  %v354_v13 = vmul.f32 %v3374_v34, %v161_v9  ;;  %v3743_v34 = vld [vmem:[%s3994_s3 + $0x8] ss:$0 sm:$0xff] }
  0xc9   :  { %1711 = vmatprep.mubr.f32.mxu1 %v971_v11  ;;  %1567 = vmatmul.mubr.f32.gmra.mrb[60].mxu0 %v968_v12  ;;  %v970_v16 = vsel %vm682_vm11, %v538_v40, %v826_v50  ;;  %vm690_vm12 = vcmp.ge.f32.partialorder %v546_v10, 0.0  ;;  %v834_v26 = vmul.f32 0.1, %v546_v10  ;;  %vm692_vm13 = vcmp.ge.f32.partialorder %v548_v15, 0.0  ;;  %v73_v5 = vld [vmem:[%s3992_s0 + $0x1a8] sm:$0xff]  ;;  %v82_v40 = vld [vmem:[%s3992_s0 + $0x1f0] sm:$0xff] }
  0xca   :  { %1712 = vmatmul.mubr.f32.gmra.mrb[60].mxu1 %v970_v16  ;;  %v836_v17 = vmul.f32 0.1, %v548_v15  ;;  %vm689_vm14 = vcmp.ge.f32.partialorder %v545_v47, 0.0  ;;  %v833_v48 = vmul.f32 0.1, %v545_v47  ;;  %v547_v18 = vadd.f32 %v3381_v31, %v354_v13  ;;  %v145_v6 = vld [vmem:[%s3992_s0 + $0x3e8] sm:$0xff] }
  0xcb   :  { %v978_v56 = vsel %vm690_vm12, %v546_v10, %v834_v26  ;;  %v221_v19 = vmul.f32 %v3731_v14, %v28_v25  ;;  %v293_v20 = vmul.f32 %v3731_v14, %v100_v46  ;;  %v230_v21 = vmul.f32 %v3731_v14, %v37_v24  ;;  %v154_v12 = vld [vmem:[%s3992_s0 + $0x430] sm:$0xff] }
  0xcc   :  { %1571 = vmatprep.mubr.f32.mxu0 %v978_v56  ;;  %v980_v31 = vsel %vm692_vm13, %v548_v15, %v836_v17  ;;  %v977_v28 = vsel %vm689_vm14, %v545_v47, %v833_v48  ;;  %vm691_vm15 = vcmp.ge.f32.partialorder %v547_v18, 0.0  ;;  %v835_v29 = vmul.f32 0.1, %v547_v18  ;;  %v91_v56 = vld [vmem:[%s3992_s0 + $0x238] sm:$0xff] }
  0xcd   :  { %1716 = vmatprep.mubr.f32.mxu1 %v980_v31  ;;  %1572 = vmatmul.mubr.f32.gmra.mrb[62].mxu0 %v977_v28  ;;  %v414_v0 = vadd.f32 %v3743_v34, %v221_v19  ;;  %v486_v33 = vadd.f32 %v3743_v34, %v293_v20  ;;  %v423_v37 = vadd.f32 %v3743_v34, %v230_v21  ;;  %v163_v19 = vld [vmem:[%s3992_s0 + $0x478] sm:$0xff] }
  0xce   :  { %v979_v38 = vsel %vm691_vm15, %v547_v18, %v835_v29  ;;  %v302_v30 = vmul.f32 %v3731_v14, %v109_v22  ;;  %v239_v35 = vmul.f32 %v3731_v14, %v46_v23  ;;  %v311_v41 = vmul.f32 %v3731_v14, %v118_v27 }
  0xcf   :  { %1717 = vmatmul.mubr.f32.gmra.mrb[62].mxu1 %v979_v38  ;;  %vm558_vm0 = vcmp.ge.f32.partialorder %v414_v0, 0.0  ;;  %v702_v32 = vmul.f32 0.1, %v414_v0  ;;  %vm630_vm1 = vcmp.ge.f32.partialorder %v486_v33, 0.0  ;;  %v774_v36 = vmul.f32 0.1, %v486_v33 }
  0xd0   :  { %vm567_vm2 = vcmp.ge.f32.partialorder %v423_v37, 0.0  ;;  %v711_v39 = vmul.f32 0.1, %v423_v37  ;;  %v495_v44 = vadd.f32 %v3743_v34, %v302_v30  ;;  %v432_v49 = vadd.f32 %v3743_v34, %v239_v35 }
  0xd1   :  { %v846_v51 = vsel %vm558_vm0, %v414_v0, %v702_v32  ;;  %v918_v52 = vsel %vm630_vm1, %v486_v33, %v774_v36  ;;  %v504_v53 = vadd.f32 %v3743_v34, %v311_v41  ;;  %v248_v54 = vmul.f32 %v3731_v14, %v55_v42 }
  0xd2   :  { %2273 = vmatprep.mubr.f32.mxu0 %v846_v51  ;;  %2285 = vmatprep.mubr.f32.mxu1 %v918_v52  ;;  %v855_v59 = vsel %vm567_vm2, %v423_v37, %v711_v39  ;;  %vm639_vm3 = vcmp.ge.f32.partialorder %v495_v44, 0.0  ;;  %v783_v60 = vmul.f32 0.1, %v495_v44  ;;  %vm576_vm4 = vcmp.ge.f32.partialorder %v432_v49, 0.0 }
  0xd3   :  { %2274 = vmatmul.mubr.f32.vlgmr.msra.gmra.mrb[64].mxu0 %v855_v59  ;;  %v720_v61 = vmul.f32 0.1, %v432_v49  ;;  %vm648_vm5 = vcmp.ge.f32.partialorder %v504_v53, 0.0  ;;  %v792_v62 = vmul.f32 0.1, %v504_v53  ;;  %v441_v63 = vadd.f32 %v3743_v34, %v248_v54 }
  0xd4   :  { %v927_v1 = vsel %vm639_vm3, %v495_v44, %v783_v60  ;;  %v320_v2 = vmul.f32 %v3731_v14, %v127_v55  ;;  %v257_v3 = vmul.f32 %v3731_v14, %v64_v57  ;;  %v329_v4 = vmul.f32 %v3731_v14, %v136_v58  ;;  %v1126_v44 = vld [vmem:[%s3995_s4] sm:$0xff]  ;;  %v1127_v57 = vld [vmem:[%s3995_s4 + $0x8] sm:$0xff] }
  0xd5   :  { %2286 = vmatmul.mubr.f32.vlgmr.msra.gmra.mrb[64].mxu1 %v927_v1  ;;  %v864_v7 = vsel %vm576_vm4, %v432_v49, %v720_v61  ;;  %v936_v8 = vsel %vm648_vm5, %v504_v53, %v792_v62  ;;  %vm585_vm6 = vcmp.ge.f32.partialorder %v441_v63, 0.0  ;;  %v729_v9 = vmul.f32 0.1, %v441_v63 }
  0xd6   :  { %2276 = vmatprep.mubr.f32.mxu0 %v864_v7  ;;  %2288 = vmatprep.mubr.f32.mxu1 %v936_v8  ;;  %v513_v43 = vadd.f32 %v3743_v34, %v320_v2  ;;  %v450_v45 = vadd.f32 %v3743_v34, %v257_v3  ;;  %v522_v50 = vadd.f32 %v3743_v34, %v329_v4  ;;  %v1128_v3 = vld [vmem:[%s3995_s4 + $0x10] sm:$0xff] }
  0xd7   :  { %v873_v10 = vsel %vm585_vm6, %v441_v63, %v729_v9  ;;  %v266_v15 = vmul.f32 %v3731_v14, %v73_v5  ;;  %v338_v25 = vmul.f32 %v3731_v14, %v145_v6  ;;  %v275_v11 = vmul.f32 %v3731_v14, %v82_v40 }
  0xd8   :  { %2277 = vmatmul.mubr.f32.gmra.mrb[66].mxu0 %v873_v10  ;;  %vm657_vm7 = vcmp.ge.f32.partialorder %v513_v43, 0.0  ;;  %v801_v47 = vmul.f32 0.1, %v513_v43  ;;  %vm594_vm8 = vcmp.ge.f32.partialorder %v450_v45, 0.0  ;;  %v738_v13 = vmul.f32 0.1, %v450_v45 }
  0xd9   :  { %vm666_vm9 = vcmp.ge.f32.partialorder %v522_v50, 0.0  ;;  %v810_v46 = vmul.f32 0.1, %v522_v50  ;;  %v459_v24 = vadd.f32 %v3743_v34, %v266_v15  ;;  %v531_v16 = vadd.f32 %v3743_v34, %v338_v25 }
  0xda   :  { %v945_v26 = vsel %vm657_vm7, %v513_v43, %v801_v47  ;;  %v882_v17 = vsel %vm594_vm8, %v450_v45, %v738_v13  ;;  %v468_v48 = vadd.f32 %v3743_v34, %v275_v11  ;;  %v347_v18 = vmul.f32 %v3731_v14, %v154_v12 }
  0xdb   :  { %2289 = vmatmul.mubr.f32.gmra.mrb[66].mxu1 %v945_v26  ;;  %2279 = vmatprep.mubr.f32.mxu0 %v882_v17  ;;  %v954_v20 = vsel %vm666_vm9, %v522_v50, %v810_v46  ;;  %vm603_vm10 = vcmp.ge.f32.partialorder %v459_v24, 0.0  ;;  %v747_v21 = vmul.f32 0.1, %v459_v24  ;;  %vm675_vm11 = vcmp.ge.f32.partialorder %v531_v16, 0.0  ;;  %v1129_v50 = vld [vmem:[%s3995_s4 + $0x18] sm:$0xff]  ;;  %v1130_v46 = vld [vmem:[%s3995_s4 + $0x20] sm:$0xff] }
  0xdc   :  { %2291 = vmatprep.mubr.f32.mxu1 %v954_v20  ;;  %v819_v22 = vmul.f32 0.1, %v531_v16  ;;  %vm612_vm12 = vcmp.ge.f32.partialorder %v468_v48, 0.0  ;;  %v756_v23 = vmul.f32 0.1, %v468_v48  ;;  %v540_v27 = vadd.f32 %v3743_v34, %v347_v18 }
  0xdd   :  { %v891_v31 = vsel %vm603_vm10, %v459_v24, %v747_v21  ;;  %v284_v28 = vmul.f32 %v3731_v14, %v91_v56  ;;  %v356_v29 = vmul.f32 %v3731_v14, %v163_v19  ;;  %v1131_v21 = vld [vmem:[%s3995_s4 + $0x28] sm:$0xff] }
  0xde   :  { %2280 = vmatmul.mubr.f32.gmra.mrb[68].mxu0 %v891_v31  ;;  %v963_v0 = vsel %vm675_vm11, %v531_v16, %v819_v22  ;;  %v900_v33 = vsel %vm612_vm12, %v468_v48, %v756_v23  ;;  %vm684_vm13 = vcmp.ge.f32.partialorder %v540_v27, 0.0  ;;  %v828_v37 = vmul.f32 0.1, %v540_v27 }
  0xdf   :  { %2292 = vmatmul.mubr.f32.gmra.mrb[68].mxu1 %v963_v0  ;;  %2282 = vmatprep.mubr.f32.mxu0 %v900_v33  ;;  %v477_v38 = vadd.f32 %v3743_v34, %v284_v28  ;;  %v549_v30 = vadd.f32 %v3743_v34, %v356_v29 }
  0xe0   :  { %v972_v35 = vsel %vm684_vm13, %v540_v27, %v828_v37  ;;  %v1132_v37 = vld [vmem:[%s3995_s4 + $0x30] sm:$0xff] }
  0xe1   :  { %2294 = vmatprep.mubr.f32.mxu1 %v972_v35  ;;  %vm621_vm14 = vcmp.ge.f32.partialorder %v477_v38, 0.0  ;;  %v765_v41 = vmul.f32 0.1, %v477_v38  ;;  %vm693_vm15 = vcmp.ge.f32.partialorder %v549_v30, 0.0  ;;  %v837_v42 = vmul.f32 0.1, %v549_v30 }
  0xe3   :  { %v909_v32 = vsel %vm621_vm14, %v477_v38, %v765_v41  ;;  %v981_v36 = vsel %vm693_vm15, %v549_v30, %v837_v42 }
  0xe4   :  { %2283 = vmatmul.mubr.f32.gmra.mrb[70].mxu0 %v909_v32  ;;  %2295 = vmatmul.mubr.f32.gmra.mrb[70].mxu1 %v981_v36 }
  0xf8   :  { %v1921_v14 = vpop.f32.mrb[0].mxu0 }
  0xf9   :  { %v2001_v39 = vpop.f32.mrb[0].mxu1  ;;  %v1922_v49 = vpop.f32.mrb[1].mxu0 }
  0xfa   :  { %v1923_v51 = vadd.f32 %v1922_v49, %v1921_v14  ;;  %v2002_v52 = vpop.f32.mrb[1].mxu1 }
  0xfb   :  { %v2003_v34 = vadd.f32 %v2002_v52, %v2001_v39  ;;  %v1133_v39 = vld [vmem:[%s3995_s4 + $0x38] sm:$0xff] }
  0xfc   :  { %v1209_v53 = vadd.f32 %v1923_v51, %v1126_v44  ;;  %v1924_v54 = vpop.f32.mrb[2].mxu0 }
  0xfd   :  { %v2004_v55 = vpop.f32.mrb[2].mxu1  ;;  %v1925_v58 = vpop.f32.mrb[3].mxu0 }
  0xfe   :  { %v3823_v59 = vadd.f32 %v2003_v34, %v1209_v53  ;;  %v1926_v60 = vadd.f32 %v1925_v58, %v1924_v54  ;;  %v2005_v61 = vpop.f32.mrb[3].mxu1 }
  0xff   :  { %v2006_v62 = vadd.f32 %v2005_v61, %v2004_v55  ;;  %v1134_v55 = vld [vmem:[%s3995_s4 + $0x40] sm:$0xff] }
 0x100   :  { %v1214_v63 = vadd.f32 %v1926_v60, %v1127_v57  ;;  %v1927_v1 = vpop.f32.mrb[4].mxu0 }
 0x101   :  { %v2007_v2 = vpop.f32.mrb[4].mxu1  ;;  %v1928_v4 = vpop.f32.mrb[5].mxu0 }
 0x102   :  { %v3828_v5 = vadd.f32 %v2006_v62, %v1214_v63  ;;  %v1929_v6 = vadd.f32 %v1928_v4, %v1927_v1  ;;  %v2008_v40 = vpop.f32.mrb[5].mxu1  ;;  %v1135_v4 = vld [vmem:[%s3995_s4 + $0x48] sm:$0xff] }
 0x103   :  { %v2009_v7 = vadd.f32 %v2008_v40, %v2007_v2 }
 0x104   :  { %v1219_v8 = vadd.f32 %v1929_v6, %v1128_v3 }
 0x106   :  { %v3830_v9 = vadd.f32 %v2009_v7, %v1219_v8  ;;  %v1930_v43 = vpop.f32.mrb[6].mxu0  ;;  %v2010_v45 = vpop.f32.mrb[6].mxu1 }
 0x107   :  { %v1931_v10 = vpop.f32.mrb[7].mxu0  ;;  %v2011_v15 = vpop.f32.mrb[7].mxu1 }
 0x108   :  { %v1932_v25 = vadd.f32 %v1931_v10, %v1930_v43  ;;  %v2012_v11 = vadd.f32 %v2011_v15, %v2010_v45  ;;  %v1136_v15 = vld [vmem:[%s3995_s4 + $0x50] sm:$0xff] }
 0x10a   :  { %v1224_v12 = vadd.f32 %v1932_v25, %v1129_v50 }
 0x10b   :  { %v1933_v47 = vpop.f32.mrb[8].mxu0 }
 0x10c   :  { %v3835_v13 = vadd.f32 %v2012_v11, %v1224_v12  ;;  %v1934_v24 = vpop.f32.mrb[9].mxu0  ;;  %v2013_v16 = vpop.f32.mrb[8].mxu1 }
 0x10d   :  { %v1935_v26 = vadd.f32 %v1934_v24, %v1933_v47  ;;  %v2014_v17 = vpop.f32.mrb[9].mxu1 }
 0x10e   :  { %v2015_v18 = vadd.f32 %v2014_v17, %v2013_v16  ;;  %v1137_v17 = vld [vmem:[%s3995_s4 + $0x58] sm:$0xff] }
 0x10f   :  { %v1229_v48 = vadd.f32 %v1935_v26, %v1130_v46 }
 0x111   :  { %v3840_v56 = vadd.f32 %v2015_v18, %v1229_v48 }
 0x112   :  { %v1936_v19 = vpop.f32.mrb[10].mxu0 }
 0x113   :  { %v2016_v20 = vpop.f32.mrb[10].mxu1  ;;  %v1937_v22 = vpop.f32.mrb[11].mxu0 }
 0x114   :  { %v1938_v23 = vadd.f32 %v1937_v22, %v1936_v19  ;;  %v2017_v27 = vpop.f32.mrb[11].mxu1 }
 0x115   :  { %v2018_v31 = vadd.f32 %v2017_v27, %v2016_v20 }
 0x116   :  { %v1234_v28 = vadd.f32 %v1938_v23, %v1131_v21  ;;  %v1138_v23 = vld [vmem:[%s3995_s4 + $0x60] sm:$0xff] }
 0x117   :  { %v1939_v0 = vpop.f32.mrb[12].mxu0 }
 0x118   :  { %v3845_v29 = vadd.f32 %v2018_v31, %v1234_v28  ;;  %v2019_v33 = vpop.f32.mrb[12].mxu1  ;;  %v1940_v38 = vpop.f32.mrb[13].mxu0 }
 0x119   :  { %v1941_v30 = vadd.f32 %v1940_v38, %v1939_v0  ;;  %v2020_v35 = vpop.f32.mrb[13].mxu1 }
 0x11a   :  { %v2021_v41 = vadd.f32 %v2020_v35, %v2019_v33 }
 0x11b   :  { %v1239_v42 = vadd.f32 %v1941_v30, %v1132_v37 }
 0x11d   :  { %v1942_v32 = vpop.f32.mrb[14].mxu0  ;;  %v2022_v36 = vpop.f32.mrb[14].mxu1  ;;  %v3850_v14 = vadd.f32 %v2021_v41, %v1239_v42  ;;  %v1139_v42 = vld [vmem:[%s3995_s4 + $0x68] sm:$0xff] }
 0x11e   :  { %v1943_v44 = vpop.f32.mrb[15].mxu0  ;;  %v2023_v49 = vpop.f32.mrb[15].mxu1 }
 0x11f   :  { %v1944_v51 = vadd.f32 %v1943_v44, %v1942_v32  ;;  %v2024_v52 = vadd.f32 %v2023_v49, %v2022_v36 }
 0x121   :  { %v1244_v34 = vadd.f32 %v1944_v51, %v1133_v39 }
 0x123   :  { %v3855_v53 = vadd.f32 %v2024_v52, %v1244_v34  ;;  %v1945_v54 = vpop.f32.mrb[16].mxu0  ;;  %v1140_v34 = vld [vmem:[%s3995_s4 + $0x70] sm:$0xff] }
 0x124   :  { %v1946_v57 = vpop.f32.mrb[17].mxu0 }
 0x125   :  { %v2025_v58 = vpop.f32.mrb[16].mxu1  ;;  %v1947_v60 = vadd.f32 %v1946_v57, %v1945_v54 }
 0x126   :  { %v2026_v61 = vpop.f32.mrb[17].mxu1 }
 0x127   :  { %v1249_v62 = vadd.f32 %v1947_v60, %v1134_v55  ;;  %v2027_v63 = vadd.f32 %v2026_v61, %v2025_v58 }
 0x128   :  { %v1948_v1 = vpop.f32.mrb[18].mxu0 }
 0x129   :  { %v3860_v2 = vadd.f32 %v2027_v63, %v1249_v62  ;;  %v2028_v3 = vpop.f32.mrb[18].mxu1  ;;  %v1949_v6 = vpop.f32.mrb[19].mxu0 }
 0x12a   :  { %v1950_v40 = vadd.f32 %v1949_v6, %v1948_v1  ;;  %v2029_v7 = vpop.f32.mrb[19].mxu1 }
 0x12b   :  { %v2030_v8 = vadd.f32 %v2029_v7, %v2028_v3  ;;  %v1141_v3 = vld [vmem:[%s3995_s4 + $0x78] sm:$0xff] }
 0x12c   :  { %v1254_v43 = vadd.f32 %v1950_v40, %v1135_v4 }
 0x12e   :  { %v3865_v45 = vadd.f32 %v2030_v8, %v1254_v43  ;;  %v1951_v50 = vpop.f32.mrb[20].mxu0 }
 0x12f   :  { %v2031_v10 = vpop.f32.mrb[20].mxu1  ;;  %v1952_v25 = vpop.f32.mrb[21].mxu0 }
 0x130   :  { %v1953_v11 = vadd.f32 %v1952_v25, %v1951_v50  ;;  %v2032_v12 = vpop.f32.mrb[21].mxu1 }
 0x131   :  { %v2033_v47 = vadd.f32 %v2032_v12, %v2031_v10 }
 0x132   :  { %v1259_v46 = vadd.f32 %v1953_v11, %v1136_v15 }
 0x134   :  { %v3870_v24 = vadd.f32 %v2033_v47, %v1259_v46  ;;  %v1954_v16 = vpop.f32.mrb[22].mxu0  ;;  %v2034_v26 = vpop.f32.mrb[22].mxu1 }
 0x135   :  { %v1955_v48 = vpop.f32.mrb[23].mxu0  ;;  %v2035_v18 = vpop.f32.mrb[23].mxu1 }
 0x136   :  { %v1956_v19 = vadd.f32 %v1955_v48, %v1954_v16  ;;  %v2036_v20 = vadd.f32 %v2035_v18, %v2034_v26 }
 0x138   :  { %v1264_v21 = vadd.f32 %v1956_v19, %v1137_v17  ;;  %v1957_v22 = vpop.f32.mrb[24].mxu0 }
 0x139   :  { %v1958_v27 = vpop.f32.mrb[25].mxu0 }
 0x13a   :  { %v3878_v31 = vadd.f32 %v2036_v20, %v1264_v21  ;;  %v1959_v28 = vadd.f32 %v1958_v27, %v1957_v22 }
 0x13c   :  { %v2037_v0 = vpop.f32.mrb[24].mxu1  ;;  %v1269_v33 = vadd.f32 %v1959_v28, %v1138_v23 }
 0x13d   :  { %v2038_v37 = vpop.f32.mrb[25].mxu1 }
 0x13e   :  { %v2039_v38 = vadd.f32 %v2038_v37, %v2037_v0 }
 0x13f   :  { %v1960_v35 = vpop.f32.mrb[26].mxu0 }
 0x140   :  { %v3880_v30 = vadd.f32 %v2039_v38, %v1269_v33  ;;  %v2040_v41 = vpop.f32.mrb[26].mxu1  ;;  %v1961_v32 = vpop.f32.mrb[27].mxu0 }
 0x141   :  { %v2041_v36 = vpop.f32.mrb[27].mxu1  ;;  %v1962_v39 = vadd.f32 %v1961_v32, %v1960_v35 }
 0x142   :  { %v2042_v44 = vadd.f32 %v2041_v36, %v2040_v41 }
 0x143   :  { %v1274_v49 = vadd.f32 %v1962_v39, %v1139_v42 }
 0x145   :  { %v1963_v51 = vpop.f32.mrb[28].mxu0  ;;  %v3885_v52 = vadd.f32 %v2042_v44, %v1274_v49 }
 0x146   :  { %v1964_v54 = vpop.f32.mrb[29].mxu0  ;;  %v2043_v55 = vpop.f32.mrb[28].mxu1 }
 0x147   :  { %v1965_v57 = vadd.f32 %v1964_v54, %v1963_v51  ;;  %v2044_v58 = vpop.f32.mrb[29].mxu1 }
 0x148   :  { %v2045_v61 = vadd.f32 %v2044_v58, %v2043_v55 }
 0x149   :  { %v1279_v60 = vadd.f32 %v1965_v57, %v1140_v34 }
 0x14b   :  { %v3890_v62 = vadd.f32 %v2045_v61, %v1279_v60  ;;  %v1966_v63 = vpop.f32.mrb[30].mxu0 }
 0x14c   :  { %v2046_v1 = vpop.f32.mrb[30].mxu1  ;;  %v1967_v4 = vpop.f32.mrb[31].mxu0 }
 0x14d   :  { %v1968_v6 = vadd.f32 %v1967_v4, %v1966_v63  ;;  %v2047_v40 = vpop.f32.mrb[31].mxu1 }
 0x14e   :  { %v2048_v7 = vadd.f32 %v2047_v40, %v2046_v1 }
 0x14f   :  { %v1284_v8 = vadd.f32 %v1968_v6, %v1141_v3 }
 0x151   :  { %v3895_v43 = vadd.f32 %v2048_v7, %v1284_v8 }
 0x153   :  { %v2081_v50 = vpop.f32.mrb[32].mxu0 }
 0x154   :  { %v2161_v10 = vpop.f32.mrb[32].mxu1  ;;  %v2082_v15 = vpop.f32.mrb[33].mxu0 }
 0x155   :  { %v2083_v25 = vadd.f32 %v2082_v15, %v2081_v50  ;;  %v2162_v11 = vpop.f32.mrb[33].mxu1 }
 0x156   :  { %v2163_v12 = vadd.f32 %v2162_v11, %v2161_v10 }
 0x157   :  { %v1499_v47 = vadd.f32 %v2083_v25, %v3823_v59  ;;  %v2084_v46 = vpop.f32.mrb[34].mxu0 }
 0x158   :  { %v2164_v16 = vpop.f32.mrb[34].mxu1  ;;  %v2085_v26 = vpop.f32.mrb[35].mxu0 }
 0x159   :  { %v2086_v17 = vadd.f32 %v2085_v26, %v2084_v46  ;;  %v2165_v48 = vpop.f32.mrb[35].mxu1  ;;  %v3898_v18 = vadd.f32 %v2163_v12, %v1499_v47 }
 0x15a   :  { %v2166_v19 = vadd.f32 %v2165_v48, %v2164_v16 }
 0x15b   :  { %v1504_v20 = vadd.f32 %v2086_v17, %v3828_v5 }
 0x15c   :  { %v2087_v21 = vpop.f32.mrb[36].mxu0 }
 0x15d   :  { %v2088_v22 = vpop.f32.mrb[37].mxu0  ;;  %v3901_v23 = vadd.f32 %v2166_v19, %v1504_v20 }
 0x15e   :  { %v2167_v27 = vpop.f32.mrb[36].mxu1  ;;  %v2089_v28 = vadd.f32 %v2088_v22, %v2087_v21 }
 0x15f   :  { %v2168_v0 = vpop.f32.mrb[37].mxu1 }
 0x160   :  { %v1509_v33 = vadd.f32 %v2089_v28, %v3830_v9  ;;  %v2169_v59 = vadd.f32 %v2168_v0, %v2167_v27 }
 0x161   :  { %v2090_v37 = vpop.f32.mrb[38].mxu0 }
 0x162   :  { %v2091_v38 = vpop.f32.mrb[39].mxu0  ;;  %v3904_v35 = vadd.f32 %v2169_v59, %v1509_v33 }
 0x163   :  { %v2092_v41 = vadd.f32 %v2091_v38, %v2090_v37 }
 0x164   :  { %v2170_v42 = vpop.f32.mrb[38].mxu1 }
 0x165   :  { %v1514_v32 = vadd.f32 %v2092_v41, %v3835_v13  ;;  %v2171_v36 = vpop.f32.mrb[39].mxu1 }
 0x166   :  { %v2172_v5 = vadd.f32 %v2171_v36, %v2170_v42 }
 0x167   :  { %v2093_v39 = vpop.f32.mrb[40].mxu0 }
 0x168   :  { %v2173_v44 = vpop.f32.mrb[40].mxu1  ;;  %v2094_v49 = vpop.f32.mrb[41].mxu0  ;;  %v3907_v51 = vadd.f32 %v2172_v5, %v1514_v32 }
 0x169   :  { %v2095_v34 = vadd.f32 %v2094_v49, %v2093_v39  ;;  %v2174_v54 = vpop.f32.mrb[41].mxu1 }
 0x16a   :  { %v2175_v55 = vadd.f32 %v2174_v54, %v2173_v44 }
 0x16b   :  { %v1519_v9 = vadd.f32 %v2095_v34, %v3840_v56 }
 0x16d   :  { %v2096_v57 = vpop.f32.mrb[42].mxu0  ;;  %v2176_v58 = vpop.f32.mrb[42].mxu1  ;;  %v3910_v60 = vadd.f32 %v2175_v55, %v1519_v9 }
 0x16e   :  { %v2097_v61 = vpop.f32.mrb[43].mxu0  ;;  %v2177_v63 = vpop.f32.mrb[43].mxu1 }
 0x16f   :  { %v2098_v1 = vadd.f32 %v2097_v61, %v2096_v57  ;;  %v2178_v13 = vadd.f32 %v2177_v63, %v2176_v58 }
 0x171   :  { %v1524_v3 = vadd.f32 %v2098_v1, %v3845_v29  ;;  %v2099_v4 = vpop.f32.mrb[44].mxu0 }
 0x172   :  { %v2100_v6 = vpop.f32.mrb[45].mxu0 }
 0x173   :  { %v2101_v40 = vadd.f32 %v2100_v6, %v2099_v4  ;;  %v3913_v7 = vadd.f32 %v2178_v13, %v1524_v3 }
 0x174   :  { %v2179_v8 = vpop.f32.mrb[44].mxu1 }
 0x175   :  { %v1529_v50 = vadd.f32 %v2101_v40, %v3850_v14  ;;  %v2180_v10 = vpop.f32.mrb[45].mxu1 }
 0x176   :  { %v2181_v56 = vadd.f32 %v2180_v10, %v2179_v8 }
 0x177   :  { %v2102_v15 = vpop.f32.mrb[46].mxu0 }
 0x178   :  { %v2182_v25 = vpop.f32.mrb[46].mxu1  ;;  %v2103_v11 = vpop.f32.mrb[47].mxu0  ;;  %v3916_v12 = vadd.f32 %v2181_v56, %v1529_v50 }
 0x179   :  { %v2104_v47 = vadd.f32 %v2103_v11, %v2102_v15  ;;  %v2183_v46 = vpop.f32.mrb[47].mxu1 }
 0x17a   :  { %v2184_v16 = vadd.f32 %v2183_v46, %v2182_v25 }
 0x17b   :  { %v1534_v29 = vadd.f32 %v2104_v47, %v3855_v53 }
 0x17d   :  { %v2105_v26 = vpop.f32.mrb[48].mxu0  ;;  %v2185_v17 = vpop.f32.mrb[48].mxu1  ;;  %v3919_v48 = vadd.f32 %v2184_v16, %v1534_v29 }
 0x17e   :  { %v2106_v19 = vpop.f32.mrb[49].mxu0  ;;  %v2186_v20 = vpop.f32.mrb[49].mxu1 }
 0x17f   :  { %v2107_v21 = vadd.f32 %v2106_v19, %v2105_v26  ;;  %v2187_v14 = vadd.f32 %v2186_v20, %v2185_v17 }
 0x181   :  { %v1539_v22 = vadd.f32 %v2107_v21, %v3860_v2 }
 0x182   :  { %v2108_v27 = vpop.f32.mrb[50].mxu0 }
 0x183   :  { %v2188_v28 = vpop.f32.mrb[50].mxu1  ;;  %v2109_v0 = vpop.f32.mrb[51].mxu0  ;;  %v3922_v33 = vadd.f32 %v2187_v14, %v1539_v22 }
 0x184   :  { %v2110_v59 = vadd.f32 %v2109_v0, %v2108_v27  ;;  %v2189_v37 = vpop.f32.mrb[51].mxu1 }
 0x185   :  { %v2190_v38 = vadd.f32 %v2189_v37, %v2188_v28 }
 0x186   :  { %v1544_v53 = vadd.f32 %v2110_v59, %v3865_v45  ;;  %v2111_v41 = vpop.f32.mrb[52].mxu0 }
 0x187   :  { %v2112_v42 = vpop.f32.mrb[53].mxu0 }
 0x188   :  { %v2191_v32 = vpop.f32.mrb[52].mxu1  ;;  %v2113_v36 = vadd.f32 %v2112_v42, %v2111_v41  ;;  %v1689_v5 = vadd.f32 %v2190_v38, %v1544_v53 }
 0x189   :  { %v2192_v39 = vpop.f32.mrb[53].mxu1 }
 0x18a   :  { %v1549_v44 = vadd.f32 %v2113_v36, %v3870_v24  ;;  %v2193_v49 = vadd.f32 %v2192_v39, %v2191_v32 }
 0x18c   :  { %v3926_v2 = vadd.f32 %v2193_v49, %v1549_v44 }
 0x18d   :  { %v2114_v34 = vpop.f32.mrb[54].mxu0 }
 0x18e   :  { %v2194_v54 = vpop.f32.mrb[54].mxu1  ;;  %v2115_v55 = vpop.f32.mrb[55].mxu0 }
 0x18f   :  { %v2116_v9 = vadd.f32 %v2115_v55, %v2114_v34  ;;  %v2195_v57 = vpop.f32.mrb[55].mxu1 }
 0x190   :  { %v2196_v58 = vadd.f32 %v2195_v57, %v2194_v54 }
 0x191   :  { %v1554_v61 = vadd.f32 %v2116_v9, %v3878_v31  ;;  %v2117_v45 = vpop.f32.mrb[56].mxu0 }
 0x192   :  { %v2197_v63 = vpop.f32.mrb[56].mxu1  ;;  %v2118_v1 = vpop.f32.mrb[57].mxu0 }
 0x193   :  { %v2119_v13 = vadd.f32 %v2118_v1, %v2117_v45  ;;  %v2198_v3 = vpop.f32.mrb[57].mxu1  ;;  %v1699_v4 = vadd.f32 %v2196_v58, %v1554_v61 }
 0x194   :  { %v2199_v6 = vadd.f32 %v2198_v3, %v2197_v63 }
 0x195   :  { %v1559_v24 = vadd.f32 %v2119_v13, %v3880_v30 }
 0x196   :  { %v2120_v40 = vpop.f32.mrb[58].mxu0 }
 0x197   :  { %v2200_v8 = vpop.f32.mrb[58].mxu1  ;;  %v2121_v50 = vpop.f32.mrb[59].mxu0  ;;  %v1704_v10 = vadd.f32 %v2199_v6, %v1559_v24 }
 0x198   :  { %v2122_v56 = vadd.f32 %v2121_v50, %v2120_v40  ;;  %v2201_v15 = vpop.f32.mrb[59].mxu1 }
 0x199   :  { %v2202_v25 = vadd.f32 %v2201_v15, %v2200_v8 }
 0x19a   :  { %v1564_v11 = vadd.f32 %v2122_v56, %v3885_v52 }
 0x19c   :  { %v2123_v47 = vpop.f32.mrb[60].mxu0  ;;  %v1709_v31 = vadd.f32 %v2202_v25, %v1564_v11 }
 0x19d   :  { %v2203_v46 = vpop.f32.mrb[60].mxu1  ;;  %v2124_v16 = vpop.f32.mrb[61].mxu0 }
 0x19e   :  { %v2125_v29 = vadd.f32 %v2124_v16, %v2123_v47  ;;  %v2204_v26 = vpop.f32.mrb[61].mxu1 }
 0x19f   :  { %v2205_v17 = vadd.f32 %v2204_v26, %v2203_v46 }
 0x1a0   :  { %v1569_v19 = vadd.f32 %v2125_v29, %v3890_v62  ;;  %v2126_v20 = vpop.f32.mrb[62].mxu0 }
 0x1a1   :  { %v2127_v30 = vpop.f32.mrb[63].mxu0 }
 0x1a2   :  { %v2206_v21 = vpop.f32.mrb[62].mxu1  ;;  %v2128_v14 = vadd.f32 %v2127_v30, %v2126_v20  ;;  %v1714_v22 = vadd.f32 %v2205_v17, %v1569_v19 }
 0x1a3   :  { %v2207_v27 = vpop.f32.mrb[63].mxu1 }
 0x1a4   :  { %v1574_v28 = vadd.f32 %v2128_v14, %v3895_v43  ;;  %v2208_v0 = vadd.f32 %v2207_v27, %v2206_v21 }
 0x1a6   :  { %v2275_v59 = vpop.f32.mrb[64].mxu0  ;;  %v1719_v52 = vadd.f32 %v2208_v0, %v1574_v28 }
 0x1a7   :  { %v1794_v37 = vadd.f32 %v2275_v59, %v3901_v23  ;;  %v1788_v38 = vpop.f32.mrb[65].mxu0 }
 0x1a8   :  { %v2287_v53 = vpop.f32.mrb[64].mxu1  ;;  %v1789_v41 = vadd.f32 %v1788_v38, %v3898_v18 }
 0x1a9   :  { %1868 = vst [vmem:[%s3996_s5 + $0x8] sm:$0xff] %v1794_v37  ;;  %v1834_v62 = vadd.f32 %v2287_v53, %v1689_v5  ;;  %v1828_v42 = vpop.f32.mrb[65].mxu1 }
 0x1aa   :  { %1867 = vst [vmem:[%s3996_s5] sm:$0xff] %v1789_v41  ;;  %v1829_v43 = vadd.f32 %v1828_v42, %v3922_v33 }
 0x1ab   :  { %1876 = vst [vmem:[%s3996_s5 + $0x48] sm:$0xff] %v1834_v62  ;;  %v2278_v23 = vpop.f32.mrb[66].mxu0 }
 0x1ac   :  { %1875 = vst [vmem:[%s3996_s5 + $0x40] sm:$0xff] %v1829_v43  ;;  %v1804_v18 = vadd.f32 %v2278_v23, %v3907_v51  ;;  %v1798_v32 = vpop.f32.mrb[67].mxu0 }
 0x1ad   :  { %v1799_v36 = vadd.f32 %v1798_v32, %v3904_v35 }
 0x1ae   :  { %1870 = vst [vmem:[%s3996_s5 + $0x18] sm:$0xff] %v1804_v18  ;;  %v2290_v5 = vpop.f32.mrb[66].mxu1 }
 0x1af   :  { %v1844_v33 = vadd.f32 %v2290_v5, %v1699_v4  ;;  %1869 = vst [vmem:[%s3996_s5 + $0x10] sm:$0xff] %v1799_v36  ;;  %v1838_v39 = vpop.f32.mrb[67].mxu1 }
 0x1b0   :  { %v1839_v44 = vadd.f32 %v1838_v39, %v3926_v2 }
 0x1b1   :  { %1878 = vst [vmem:[%s3996_s5 + $0x58] sm:$0xff] %v1844_v33  ;;  %v2281_v51 = vpop.f32.mrb[68].mxu0 }
 0x1b2   :  { %1877 = vst [vmem:[%s3996_s5 + $0x50] sm:$0xff] %v1839_v44  ;;  %v1814_v35 = vadd.f32 %v2281_v51, %v3913_v7  ;;  %v2293_v49 = vpop.f32.mrb[68].mxu1  ;;  %v1808_v34 = vpop.f32.mrb[69].mxu0 }
 0x1b3   :  { %v1854_v54 = vadd.f32 %v2293_v49, %v1709_v31  ;;  %v1809_v55 = vadd.f32 %v1808_v34, %v3910_v60  ;;  %v1848_v9 = vpop.f32.mrb[69].mxu1 }
 0x1b4   :  { %1872 = vst [vmem:[%s3996_s5 + $0x28] sm:$0xff] %v1814_v35  ;;  %v1849_v2 = vadd.f32 %v1848_v9, %v1704_v10 }
 0x1b5   :  { %1880 = vst [vmem:[%s3996_s5 + $0x68] sm:$0xff] %v1854_v54  ;;  %1871 = vst [vmem:[%s3996_s5 + $0x20] sm:$0xff] %v1809_v55 }
 0x1b6   :  { %1879 = vst [vmem:[%s3996_s5 + $0x60] sm:$0xff] %v1849_v2 }
 0x1b7   :  { %v2284_v7 = vpop.f32.mrb[70].mxu0  ;;  %v2296_v60 = vpop.f32.mrb[70].mxu1 }
 0x1b8   :  { %v1824_v57 = vadd.f32 %v2284_v7, %v3919_v48  ;;  %v1864_v58 = vadd.f32 %v2296_v60, %v1719_v52  ;;  %v1818_v61 = vpop.f32.mrb[71].mxu0  ;;  %v1858_v45 = vpop.f32.mrb[71].mxu1 }
 0x1b9   :  { %v1819_v63 = vadd.f32 %v1818_v61, %v3916_v12  ;;  %v1859_v1 = vadd.f32 %v1858_v45, %v1714_v22 }
 0x1ba   :  { %1874 = vst [vmem:[%s3996_s5 + $0x38] sm:$0xff] %v1824_v57  ;;  %1882 = vst [vmem:[%s3996_s5 + $0x78] sm:$0xff] %v1864_v58 }
 0x1bb   :  { %1873 = vst [vmem:[%s3996_s5 + $0x30] sm:$0xff] %v1819_v63  ;;  %1881 = vst [vmem:[%s3996_s5 + $0x70] sm:$0xff] %v1859_v1 }

</bundles_post_ra>
